<compile_context>
chip_gen: v5e
topology: v5e:2x2
jax: 0.10.0
libtpu: 0.0.40
codegen_flags: <defaults>
</compile_context>

<pallas_src>
import jax
import jax.numpy as jnp
from jax.experimental import pallas as pl
from jax.experimental.pallas import tpu as pltpu

# ----------------------------------------------------------------------------
# Small synthetic stand-in for the HF protein LM (AutoModel) hyperparameters.
# ----------------------------------------------------------------------------
HIDDEN = 128
FFN = 256
HEADS = 4
HEAD_DIM = HIDDEN // HEADS
NUM_LAYERS = 2
VOCAB = 33          # ESM-style: specials + 20 amino acids
CLS_ID = 0
PAD_ID = 1
EOS_ID = 2
AA = "ACDEFGHIKLMNPQRSTVWY"
AA_TO_ID = {a: i + 4 for i, a in enumerate(AA)}

# Scaled-down analogues of self.max_len = 960, self.overlap = 31 so the
# multi-segment stitching path is exercised at small test sizes.
MAX_LEN = 16
OVERLAP = 4

WEIGHT_NAMES = ("ln1_g", "ln1_b", "wqkv", "bqkv", "wo", "bo",
                "ln2_g", "ln2_b", "w1", "b1", "w2", "b2",
                "lnf_g", "lnf_b")


def _round_up(n, m):
    return ((n + m - 1) // m) * m


# ----------------------------------------------------------------------------
# Pallas kernel: transformer-encoder forward for ONE window per grid step.
# Activations for the current window live in a (1, L, HIDDEN) VMEM tile; the
# full (small) weight stack stays resident in VMEM across all grid steps.
# ----------------------------------------------------------------------------
def encoder_kernel(x_ref, mask_ref,
                   ln1_g_ref, ln1_b_ref, wqkv_ref, bqkv_ref, wo_ref, bo_ref,
                   ln2_g_ref, ln2_b_ref, w1_ref, b1_ref, w2_ref, b2_ref,
                   lnf_g_ref, lnf_b_ref,
                   out_ref):

    def layer_norm(h, g, b):
        mu = jnp.mean(h, axis=-1, keepdims=True)
        var = jnp.mean(jnp.square(h - mu), axis=-1, keepdims=True)
        return (h - mu) * jax.lax.rsqrt(var + 1e-5) * g + b

    x = x_ref[0].astype(jnp.float32)          # (L, HIDDEN) activations, f32
    kmask = mask_ref[0]                       # (1, L): 0 for valid keys, -1e9 for pad
    L = x.shape[0]

    for l in range(NUM_LAYERS):
        # --- self-attention block ---
        h = layer_norm(x, ln1_g_ref[l], ln1_b_ref[l])
        qkv = jnp.dot(h.astype(jnp.bfloat16), wqkv_ref[l],      # bf16 x bf16 -> f32
                      preferred_element_type=jnp.float32) + bqkv_ref[l]
        # 128-lane-aligned slices; Q already carries the 1/sqrt(head_dim) scale.
        q16 = qkv[:, 0 * HIDDEN:1 * HIDDEN].astype(jnp.bfloat16)
        k16 = qkv[:, 1 * HIDDEN:2 * HIDDEN].astype(jnp.bfloat16)
        v16 = qkv[:, 2 * HIDDEN:3 * HIDDEN].astype(jnp.bfloat16)

        wo_l = wo_ref[l]                      # (HIDDEN, HIDDEN) bf16
        attn = jnp.broadcast_to(bo_ref[l], (L, HIDDEN))          # hoisted bias
        for hh in range(HEADS):
            sl = slice(hh * HEAD_DIM, (hh + 1) * HEAD_DIM)
            s = jnp.dot(q16[:, sl], k16[:, sl].T,
                        preferred_element_type=jnp.float32) + kmask
            s = s - jnp.max(s, axis=-1, keepdims=True)
            p = jnp.exp(s)
            p = p * pl.reciprocal(jnp.sum(p, axis=-1, keepdims=True), approx=True)
            oh = jnp.dot(p.astype(jnp.bfloat16), v16[:, sl],
                         preferred_element_type=jnp.float32)
            # Per-head output projection accumulation == concat(heads) @ Wo
            # (removes the cross-lane concat; wo row-slice is sublane-aligned).
            attn = attn + jnp.dot(oh.astype(jnp.bfloat16), wo_l[sl, :],
                                  preferred_element_type=jnp.float32)
        x = x + attn

        # --- feed-forward block ---
        h = layer_norm(x, ln2_g_ref[l], ln2_b_ref[l])
        ff = jnp.dot(h.astype(jnp.bfloat16), w1_ref[l],
                     preferred_element_type=jnp.float32) + b1_ref[l]
        # TODO(synk): HF ESM-style encoders use exact erf GELU; tanh approximation here.
        ff = jax.nn.gelu(ff, approximate=True)
        ff = jnp.dot(ff.astype(jnp.bfloat16), w2_ref[l],
                     preferred_element_type=jnp.float32) + b2_ref[l]
        x = x + ff

    out_ref[0] = layer_norm(x, lnf_g_ref[...], lnf_b_ref[...]).astype(out_ref.dtype)


def _resident_spec(arr):
    """Full-array block with a constant index_map -> stays resident in VMEM."""
    zeros = (0,) * arr.ndim
    return pl.BlockSpec(arr.shape, lambda i, _z=zeros: _z)


@jax.jit
def encode_windows(tok_ids, params):
    """Runs the Pallas encoder on all padded windows at once.

    tok_ids: (W, L) int32 (CLS ... EOS, padded with PAD_ID to fixed L).
    Returns (W, L, HIDDEN) float32 last_hidden_state per window.
    """
    W, L = tok_ids.shape
    # Glue: one embedding gather over all stacked windows (stays in plain JAX).
    x = jnp.take(params["embed"], tok_ids, axis=0)                 # (W, L, HIDDEN)
    kmask = jnp.where(tok_ids == PAD_ID, -1e9, 0.0).astype(jnp.float32)[:, None, :]

    weights = [params[n] for n in WEIGHT_NAMES]
    in_specs = [pl.BlockSpec((1, L, HIDDEN), lambda i: (i, 0, 0)),
                pl.BlockSpec((1, 1, L), lambda i: (i, 0, 0))]
    in_specs += [_resident_spec(w) for w in weights]

    return pl.pallas_call(
        encoder_kernel,
        out_shape=jax.ShapeDtypeStruct((W, L, HIDDEN), jnp.float32),
        grid=(W,),
        in_specs=in_specs,
        out_specs=pl.BlockSpec((1, L, HIDDEN), lambda i: (i, 0, 0)),
        compiler_params=pltpu.CompilerParams(
            dimension_semantics=("parallel",)),   # v7x: split windows over 2 TCs
    )(x, kmask, *weights)


# ----------------------------------------------------------------------------
# Deterministic synthetic "tokenizer" + parameter init / prep.
# ----------------------------------------------------------------------------
# TODO(synk): AutoTokenizer / AutoModel.from_pretrained (string tokenization,
# checkpoint load, fp16 autocast) have no Pallas equivalent; deterministic
# synthetic stand-ins (bf16 matmuls, f32 vector math) are used instead.
def tokenize_window(seq, tok_pad):
    ids = [CLS_ID] + [AA_TO_ID[c] for c in seq] + [EOS_ID]
    valid = len(ids)
    assert valid <= tok_pad
    return ids + [PAD_ID] * (tok_pad - valid), valid


def init_params(key):
    ks = jax.random.split(key, 8)

    def w(k, shape, scale=0.02):
        return (scale * jax.random.normal(k, shape)).astype(jnp.float32)

    return dict(
        embed=w(ks[0], (VOCAB, HIDDEN)),
        ln1_g=jnp.ones((NUM_LAYERS, 1, HIDDEN), jnp.float32),
        ln1_b=jnp.zeros((NUM_LAYERS, 1, HIDDEN), jnp.float32),
        wqkv=w(ks[1], (NUM_LAYERS, HIDDEN, 3 * HIDDEN)),
        bqkv=jnp.zeros((NUM_LAYERS, 1, 3 * HIDDEN), jnp.float32),
        wo=w(ks[2], (NUM_LAYERS, HIDDEN, HIDDEN)),
        bo=jnp.zeros((NUM_LAYERS, 1, HIDDEN), jnp.float32),
        ln2_g=jnp.ones((NUM_LAYERS, 1, HIDDEN), jnp.float32),
        ln2_b=jnp.zeros((NUM_LAYERS, 1, HIDDEN), jnp.float32),
        w1=w(ks[3], (NUM_LAYERS, HIDDEN, FFN)),
        b1=jnp.zeros((NUM_LAYERS, 1, FFN), jnp.float32),
        w2=w(ks[4], (NUM_LAYERS, FFN, HIDDEN)),
        b2=jnp.zeros((NUM_LAYERS, 1, HIDDEN), jnp.float32),
        lnf_g=jnp.ones((1, HIDDEN), jnp.float32),
        lnf_b=jnp.zeros((1, HIDDEN), jnp.float32),
    )


def prepare_params(raw):
    """Fold 1/sqrt(head_dim) into the Q projection; cast matmul weights to bf16."""
    scale = 1.0 / (HEAD_DIM ** 0.5)
    p = dict(raw)
    p["wqkv"] = raw["wqkv"].at[:, :, :HIDDEN].multiply(scale).astype(jnp.bfloat16)
    p["bqkv"] = raw["bqkv"].at[:, :, :HIDDEN].multiply(scale)
    p["wo"] = raw["wo"].astype(jnp.bfloat16)
    p["w1"] = raw["w1"].astype(jnp.bfloat16)
    p["w2"] = raw["w2"].astype(jnp.bfloat16)
    return p


# ----------------------------------------------------------------------------
# ProtEncoder forward (windowing / stitching logic mirrors the PyTorch code).
# ----------------------------------------------------------------------------
class ProtEncoder:
    def __init__(self, params, max_len=MAX_LEN, overlap=OVERLAP):
        self.params = params
        self.max_len = max_len
        self.overlap = overlap
        # Fixed, sublane-aligned token length (longest window + CLS/EOS).
        self.tok_pad = _round_up(max_len + 2 * overlap + 2, 8)

    def forward(self, _seqs):
        assert len(_seqs) == 1, "Only support batch size 1"
        seqs0 = _seqs[0]
        windows = [seqs0[max(0, i - self.overlap): i + self.max_len + self.overlap]
                   for i in range(0, len(seqs0), self.max_len)]

        ids, valid_lens = [], []
        for w in windows:
            t, v = tokenize_window(w, self.tok_pad)   # adds CLS ... EOS, pads
            ids.append(t)
            valid_lens.append(v)
        tok_ids = jnp.array(ids, dtype=jnp.int32)     # (W, tok_pad)

        segs = encode_windows(tok_ids, self.params)   # (W, tok_pad, HIDDEN)

        t = []
        n = len(windows)
        for i in range(n):
            if i == 0:
                end = min(1 + self.max_len, valid_lens[i])
                t.append(segs[i, 1:end])
            elif i == n - 1:
                t.append(segs[i, 1 + self.overlap:valid_lens[i]])
            else:
                t.append(segs[i, 1 + self.overlap:1 + self.max_len + self.overlap])
        outputs = jnp.concatenate(t, axis=0)[:len(seqs0)]
        assert outputs.shape[0] == len(seqs0)
        return outputs


if __name__ == "__main__":
    key = jax.random.PRNGKey(0)
    pkey, skey = jax.random.split(key)
    params = prepare_params(init_params(pkey))

    # Deterministic synthetic protein sequence of length 40 (3 windows).
    seq_len = 40
    aa_idx = jax.random.randint(skey, (seq_len,), 0, len(AA))
    seq = "".join(AA[int(i)] for i in aa_idx)

    enc = ProtEncoder(params)
    out = enc.forward([seq])
    out = jax.block_until_ready(out)

    assert out.shape == (seq_len, HIDDEN), out.shape
    assert bool(jnp.all(jnp.isfinite(out)))
    print("KERNEL_OK")
</pallas_src>

<mosaic_0001>
module attributes {stable_mosaic.version = 11 : i64} {
  func.func @encoder_kernel(%arg0: i32, %arg1: memref<1x32x128xf32, #tpu.memory_space<vmem>>, %arg2: memref<1x1x32xf32, #tpu.memory_space<vmem>>, %arg3: memref<2x1x128xf32, #tpu.memory_space<vmem>>, %arg4: memref<2x1x128xf32, #tpu.memory_space<vmem>>, %arg5: memref<2x128x384xbf16, #tpu.memory_space<vmem>>, %arg6: memref<2x1x384xf32, #tpu.memory_space<vmem>>, %arg7: memref<2x128x128xbf16, #tpu.memory_space<vmem>>, %arg8: memref<2x1x128xf32, #tpu.memory_space<vmem>>, %arg9: memref<2x1x128xf32, #tpu.memory_space<vmem>>, %arg10: memref<2x1x128xf32, #tpu.memory_space<vmem>>, %arg11: memref<2x128x256xbf16, #tpu.memory_space<vmem>>, %arg12: memref<2x1x256xf32, #tpu.memory_space<vmem>>, %arg13: memref<2x256x128xbf16, #tpu.memory_space<vmem>>, %arg14: memref<2x1x128xf32, #tpu.memory_space<vmem>>, %arg15: memref<1x128xf32, #tpu.memory_space<vmem>>, %arg16: memref<1x128xf32, #tpu.memory_space<vmem>>, %arg17: memref<1x32x128xf32, #tpu.memory_space<vmem>>) attributes {dimension_semantics = [#tpu.dimension_semantics<parallel>], iteration_bounds = array<i64: 3>, scalar_prefetch = 0 : i64, scratch_operands = 0 : i64, tpu.core_type = #tpu.core_type<tc>, window_params = [{transform_indices = @transform_0, window_bounds = array<i64: 1, 32, 128>}, {transform_indices = @transform_1, window_bounds = array<i64: 1, 1, 32>}, {pipeline_mode = #tpu.pipeline_mode<synchronous>, transform_indices = @transform_2, window_bounds = array<i64: 2, 1, 128>}, {pipeline_mode = #tpu.pipeline_mode<synchronous>, transform_indices = @transform_3, window_bounds = array<i64: 2, 1, 128>}, {pipeline_mode = #tpu.pipeline_mode<synchronous>, transform_indices = @transform_4, window_bounds = array<i64: 2, 128, 384>}, {pipeline_mode = #tpu.pipeline_mode<synchronous>, transform_indices = @transform_5, window_bounds = array<i64: 2, 1, 384>}, {pipeline_mode = #tpu.pipeline_mode<synchronous>, transform_indices = @transform_6, window_bounds = array<i64: 2, 128, 128>}, {pipeline_mode = #tpu.pipeline_mode<synchronous>, transform_indices = @transform_7, window_bounds = array<i64: 2, 1, 128>}, {pipeline_mode = #tpu.pipeline_mode<synchronous>, transform_indices = @transform_8, window_bounds = array<i64: 2, 1, 128>}, {pipeline_mode = #tpu.pipeline_mode<synchronous>, transform_indices = @transform_9, window_bounds = array<i64: 2, 1, 128>}, {pipeline_mode = #tpu.pipeline_mode<synchronous>, transform_indices = @transform_10, window_bounds = array<i64: 2, 128, 256>}, {pipeline_mode = #tpu.pipeline_mode<synchronous>, transform_indices = @transform_11, window_bounds = array<i64: 2, 1, 256>}, {pipeline_mode = #tpu.pipeline_mode<synchronous>, transform_indices = @transform_12, window_bounds = array<i64: 2, 256, 128>}, {pipeline_mode = #tpu.pipeline_mode<synchronous>, transform_indices = @transform_13, window_bounds = array<i64: 2, 1, 128>}, {pipeline_mode = #tpu.pipeline_mode<synchronous>, transform_indices = @transform_14, window_bounds = array<i64: 1, 128>}, {pipeline_mode = #tpu.pipeline_mode<synchronous>, transform_indices = @transform_15, window_bounds = array<i64: 1, 128>}, {transform_indices = @transform_16, window_bounds = array<i64: 1, 32, 128>}]} {
    %c0 = arith.constant 0 : index
    %c0_0 = arith.constant 0 : index
    %c0_1 = arith.constant 0 : index
    %0 = vector.load %arg1[%c0, %c0_0, %c0_1] : memref<1x32x128xf32, #tpu.memory_space<vmem>>, vector<1x32x128xf32>
    %1 = vector.shape_cast %0 : vector<1x32x128xf32> to vector<32x128xf32>
    %c0_2 = arith.constant 0 : index
    %c0_3 = arith.constant 0 : index
    %c0_4 = arith.constant 0 : index
    %2 = vector.load %arg2[%c0_2, %c0_3, %c0_4] : memref<1x1x32xf32, #tpu.memory_space<vmem>>, vector<1x1x32xf32>
    %3 = vector.shape_cast %2 : vector<1x1x32xf32> to vector<1x32xf32>
    %c0_5 = arith.constant 0 : index
    %c0_6 = arith.constant 0 : index
    %c0_7 = arith.constant 0 : index
    %4 = vector.load %arg3[%c0_5, %c0_6, %c0_7] : memref<2x1x128xf32, #tpu.memory_space<vmem>>, vector<1x1x128xf32>
    %5 = vector.shape_cast %4 : vector<1x1x128xf32> to vector<1x128xf32>
    %c0_8 = arith.constant 0 : index
    %c0_9 = arith.constant 0 : index
    %c0_10 = arith.constant 0 : index
    %6 = vector.load %arg4[%c0_8, %c0_9, %c0_10] : memref<2x1x128xf32, #tpu.memory_space<vmem>>, vector<1x1x128xf32>
    %7 = vector.shape_cast %6 : vector<1x1x128xf32> to vector<1x128xf32>
    %cst = arith.constant dense<0.000000e+00> : vector<32xf32>
    %8 = vector.multi_reduction <add>, %1, %cst [1] : vector<32x128xf32> to vector<32xf32>
    %9 = vector.shape_cast %8 : vector<32xf32> to vector<32x1xf32>
    %cst_11 = arith.constant 1.280000e+02 : f32
    %10 = vector.broadcast %cst_11 : f32 to vector<32x1xf32>
    %11 = arith.divf %9, %10 : vector<32x1xf32>
    %12 = vector.broadcast %11 : vector<32x1xf32> to vector<32x128xf32>
    %13 = arith.subf %1, %12 : vector<32x128xf32>
    %14 = arith.mulf %13, %13 : vector<32x128xf32>
    %cst_12 = arith.constant dense<0.000000e+00> : vector<32xf32>
    %15 = vector.multi_reduction <add>, %14, %cst_12 [1] : vector<32x128xf32> to vector<32xf32>
    %16 = vector.shape_cast %15 : vector<32xf32> to vector<32x1xf32>
    %cst_13 = arith.constant 1.280000e+02 : f32
    %17 = vector.broadcast %cst_13 : f32 to vector<32x1xf32>
    %18 = arith.divf %16, %17 : vector<32x1xf32>
    %19 = vector.broadcast %11 : vector<32x1xf32> to vector<32x128xf32>
    %20 = arith.subf %1, %19 : vector<32x128xf32>
    %cst_14 = arith.constant 9.99999974E-6 : f32
    %21 = vector.broadcast %cst_14 : f32 to vector<32x1xf32>
    %22 = arith.addf %18, %21 : vector<32x1xf32>
    %23 = math.rsqrt %22 : vector<32x1xf32>
    %24 = vector.broadcast %23 : vector<32x1xf32> to vector<32x128xf32>
    %25 = arith.mulf %20, %24 : vector<32x128xf32>
    %26 = vector.broadcast %5 : vector<1x128xf32> to vector<32x128xf32>
    %27 = arith.mulf %25, %26 : vector<32x128xf32>
    %28 = vector.broadcast %7 : vector<1x128xf32> to vector<32x128xf32>
    %29 = arith.addf %27, %28 : vector<32x128xf32>
    %30 = arith.truncf %29 : vector<32x128xf32> to vector<32x128xbf16>
    %c0_15 = arith.constant 0 : index
    %c0_16 = arith.constant 0 : index
    %c0_17 = arith.constant 0 : index
    %31 = vector.load %arg5[%c0_15, %c0_16, %c0_17] : memref<2x128x384xbf16, #tpu.memory_space<vmem>>, vector<1x128x384xbf16>
    %32 = vector.shape_cast %31 : vector<1x128x384xbf16> to vector<128x384xbf16>
    %cst_18 = arith.constant dense<0.000000e+00> : vector<32x384xf32>
    %33 = tpu.matmul %30, %32, %cst_18 {dimension_numbers = #tpu.dot_dimension_numbers<[1], [0], [0], [1], [0, 0, 1, 1], [], []>} : vector<32x128xbf16>, vector<128x384xbf16>, vector<32x384xf32> -> vector<32x384xf32>
    %c0_19 = arith.constant 0 : index
    %c0_20 = arith.constant 0 : index
    %c0_21 = arith.constant 0 : index
    %34 = vector.load %arg6[%c0_19, %c0_20, %c0_21] : memref<2x1x384xf32, #tpu.memory_space<vmem>>, vector<1x1x384xf32>
    %35 = vector.shape_cast %34 : vector<1x1x384xf32> to vector<1x384xf32>
    %36 = vector.broadcast %35 : vector<1x384xf32> to vector<32x384xf32>
    %37 = arith.addf %33, %36 : vector<32x384xf32>
    %38 = vector.extract_strided_slice %37 {offsets = [0, 0], sizes = [32, 128], strides = [1, 1]} : vector<32x384xf32> to vector<32x128xf32>
    %39 = arith.truncf %38 : vector<32x128xf32> to vector<32x128xbf16>
    %40 = vector.extract_strided_slice %37 {offsets = [0, 128], sizes = [32, 128], strides = [1, 1]} : vector<32x384xf32> to vector<32x128xf32>
    %41 = arith.truncf %40 : vector<32x128xf32> to vector<32x128xbf16>
    %42 = vector.extract_strided_slice %37 {offsets = [0, 256], sizes = [32, 128], strides = [1, 1]} : vector<32x384xf32> to vector<32x128xf32>
    %43 = arith.truncf %42 : vector<32x128xf32> to vector<32x128xbf16>
    %c0_22 = arith.constant 0 : index
    %c0_23 = arith.constant 0 : index
    %c0_24 = arith.constant 0 : index
    %44 = vector.load %arg7[%c0_22, %c0_23, %c0_24] : memref<2x128x128xbf16, #tpu.memory_space<vmem>>, vector<1x128x128xbf16>
    %45 = vector.shape_cast %44 : vector<1x128x128xbf16> to vector<128x128xbf16>
    %c0_25 = arith.constant 0 : index
    %c0_26 = arith.constant 0 : index
    %c0_27 = arith.constant 0 : index
    %46 = vector.load %arg8[%c0_25, %c0_26, %c0_27] : memref<2x1x128xf32, #tpu.memory_space<vmem>>, vector<1x1x128xf32>
    %47 = vector.shape_cast %46 : vector<1x1x128xf32> to vector<1x128xf32>
    %48 = vector.shape_cast %47 : vector<1x128xf32> to vector<1x128xf32>
    %49 = vector.broadcast %48 : vector<1x128xf32> to vector<32x128xf32>
    %50 = vector.extract_strided_slice %39 {offsets = [0, 0], sizes = [32, 32], strides = [1, 1]} : vector<32x128xbf16> to vector<32x32xbf16>
    %51 = vector.extract_strided_slice %41 {offsets = [0, 0], sizes = [32, 32], strides = [1, 1]} : vector<32x128xbf16> to vector<32x32xbf16>
    %52 = tpu.transpose %51, [1, 0] : vector<32x32xbf16> -> vector<32x32xbf16>
    %cst_28 = arith.constant dense<0.000000e+00> : vector<32x32xf32>
    %53 = tpu.matmul %50, %52, %cst_28 {dimension_numbers = #tpu.dot_dimension_numbers<[1], [0], [0], [1], [0, 0, 1, 1], [], []>} : vector<32x32xbf16>, vector<32x32xbf16>, vector<32x32xf32> -> vector<32x32xf32>
    %54 = vector.broadcast %3 : vector<1x32xf32> to vector<32x32xf32>
    %55 = arith.addf %53, %54 : vector<32x32xf32>
    %cst_29 = arith.constant dense<0xFF800000> : vector<32xf32>
    %56 = vector.multi_reduction <maximumf>, %55, %cst_29 [1] : vector<32x32xf32> to vector<32xf32>
    %57 = vector.shape_cast %56 : vector<32xf32> to vector<32x1xf32>
    %58 = vector.broadcast %57 : vector<32x1xf32> to vector<32x32xf32>
    %59 = arith.subf %55, %58 : vector<32x32xf32>
    %60 = math.exp %59 : vector<32x32xf32>
    %cst_30 = arith.constant dense<0.000000e+00> : vector<32xf32>
    %61 = vector.multi_reduction <add>, %60, %cst_30 [1] : vector<32x32xf32> to vector<32xf32>
    %62 = vector.shape_cast %61 : vector<32xf32> to vector<32x1xf32>
    %63 = tpu.reciprocal %62 {approx = true} : vector<32x1xf32> -> vector<32x1xf32>
    %64 = vector.broadcast %63 : vector<32x1xf32> to vector<32x32xf32>
    %65 = arith.mulf %60, %64 : vector<32x32xf32>
    %66 = arith.truncf %65 : vector<32x32xf32> to vector<32x32xbf16>
    %67 = vector.extract_strided_slice %43 {offsets = [0, 0], sizes = [32, 32], strides = [1, 1]} : vector<32x128xbf16> to vector<32x32xbf16>
    %cst_31 = arith.constant dense<0.000000e+00> : vector<32x32xf32>
    %68 = tpu.matmul %66, %67, %cst_31 {dimension_numbers = #tpu.dot_dimension_numbers<[1], [0], [0], [1], [0, 0, 1, 1], [], []>} : vector<32x32xbf16>, vector<32x32xbf16>, vector<32x32xf32> -> vector<32x32xf32>
    %69 = arith.truncf %68 : vector<32x32xf32> to vector<32x32xbf16>
    %70 = vector.extract_strided_slice %45 {offsets = [0, 0], sizes = [32, 128], strides = [1, 1]} : vector<128x128xbf16> to vector<32x128xbf16>
    %cst_32 = arith.constant dense<0.000000e+00> : vector<32x128xf32>
    %71 = tpu.matmul %69, %70, %cst_32 {dimension_numbers = #tpu.dot_dimension_numbers<[1], [0], [0], [1], [0, 0, 1, 1], [], []>} : vector<32x32xbf16>, vector<32x128xbf16>, vector<32x128xf32> -> vector<32x128xf32>
    %72 = arith.addf %49, %71 : vector<32x128xf32>
    %73 = vector.extract_strided_slice %39 {offsets = [0, 32], sizes = [32, 32], strides = [1, 1]} : vector<32x128xbf16> to vector<32x32xbf16>
    %74 = vector.extract_strided_slice %41 {offsets = [0, 32], sizes = [32, 32], strides = [1, 1]} : vector<32x128xbf16> to vector<32x32xbf16>
    %75 = tpu.transpose %74, [1, 0] : vector<32x32xbf16> -> vector<32x32xbf16>
    %cst_33 = arith.constant dense<0.000000e+00> : vector<32x32xf32>
    %76 = tpu.matmul %73, %75, %cst_33 {dimension_numbers = #tpu.dot_dimension_numbers<[1], [0], [0], [1], [0, 0, 1, 1], [], []>} : vector<32x32xbf16>, vector<32x32xbf16>, vector<32x32xf32> -> vector<32x32xf32>
    %77 = vector.broadcast %3 : vector<1x32xf32> to vector<32x32xf32>
    %78 = arith.addf %76, %77 : vector<32x32xf32>
    %cst_34 = arith.constant dense<0xFF800000> : vector<32xf32>
    %79 = vector.multi_reduction <maximumf>, %78, %cst_34 [1] : vector<32x32xf32> to vector<32xf32>
    %80 = vector.shape_cast %79 : vector<32xf32> to vector<32x1xf32>
    %81 = vector.broadcast %80 : vector<32x1xf32> to vector<32x32xf32>
    %82 = arith.subf %78, %81 : vector<32x32xf32>
    %83 = math.exp %82 : vector<32x32xf32>
    %cst_35 = arith.constant dense<0.000000e+00> : vector<32xf32>
    %84 = vector.multi_reduction <add>, %83, %cst_35 [1] : vector<32x32xf32> to vector<32xf32>
    %85 = vector.shape_cast %84 : vector<32xf32> to vector<32x1xf32>
    %86 = tpu.reciprocal %85 {approx = true} : vector<32x1xf32> -> vector<32x1xf32>
    %87 = vector.broadcast %86 : vector<32x1xf32> to vector<32x32xf32>
    %88 = arith.mulf %83, %87 : vector<32x32xf32>
    %89 = arith.truncf %88 : vector<32x32xf32> to vector<32x32xbf16>
    %90 = vector.extract_strided_slice %43 {offsets = [0, 32], sizes = [32, 32], strides = [1, 1]} : vector<32x128xbf16> to vector<32x32xbf16>
    %cst_36 = arith.constant dense<0.000000e+00> : vector<32x32xf32>
    %91 = tpu.matmul %89, %90, %cst_36 {dimension_numbers = #tpu.dot_dimension_numbers<[1], [0], [0], [1], [0, 0, 1, 1], [], []>} : vector<32x32xbf16>, vector<32x32xbf16>, vector<32x32xf32> -> vector<32x32xf32>
    %92 = arith.truncf %91 : vector<32x32xf32> to vector<32x32xbf16>
    %93 = vector.extract_strided_slice %45 {offsets = [32, 0], sizes = [32, 128], strides = [1, 1]} : vector<128x128xbf16> to vector<32x128xbf16>
    %cst_37 = arith.constant dense<0.000000e+00> : vector<32x128xf32>
    %94 = tpu.matmul %92, %93, %cst_37 {dimension_numbers = #tpu.dot_dimension_numbers<[1], [0], [0], [1], [0, 0, 1, 1], [], []>} : vector<32x32xbf16>, vector<32x128xbf16>, vector<32x128xf32> -> vector<32x128xf32>
    %95 = arith.addf %72, %94 : vector<32x128xf32>
    %96 = vector.extract_strided_slice %39 {offsets = [0, 64], sizes = [32, 32], strides = [1, 1]} : vector<32x128xbf16> to vector<32x32xbf16>
    %97 = vector.extract_strided_slice %41 {offsets = [0, 64], sizes = [32, 32], strides = [1, 1]} : vector<32x128xbf16> to vector<32x32xbf16>
    %98 = tpu.transpose %97, [1, 0] : vector<32x32xbf16> -> vector<32x32xbf16>
    %cst_38 = arith.constant dense<0.000000e+00> : vector<32x32xf32>
    %99 = tpu.matmul %96, %98, %cst_38 {dimension_numbers = #tpu.dot_dimension_numbers<[1], [0], [0], [1], [0, 0, 1, 1], [], []>} : vector<32x32xbf16>, vector<32x32xbf16>, vector<32x32xf32> -> vector<32x32xf32>
    %100 = vector.broadcast %3 : vector<1x32xf32> to vector<32x32xf32>
    %101 = arith.addf %99, %100 : vector<32x32xf32>
    %cst_39 = arith.constant dense<0xFF800000> : vector<32xf32>
    %102 = vector.multi_reduction <maximumf>, %101, %cst_39 [1] : vector<32x32xf32> to vector<32xf32>
    %103 = vector.shape_cast %102 : vector<32xf32> to vector<32x1xf32>
    %104 = vector.broadcast %103 : vector<32x1xf32> to vector<32x32xf32>
    %105 = arith.subf %101, %104 : vector<32x32xf32>
    %106 = math.exp %105 : vector<32x32xf32>
    %cst_40 = arith.constant dense<0.000000e+00> : vector<32xf32>
    %107 = vector.multi_reduction <add>, %106, %cst_40 [1] : vector<32x32xf32> to vector<32xf32>
    %108 = vector.shape_cast %107 : vector<32xf32> to vector<32x1xf32>
    %109 = tpu.reciprocal %108 {approx = true} : vector<32x1xf32> -> vector<32x1xf32>
    %110 = vector.broadcast %109 : vector<32x1xf32> to vector<32x32xf32>
    %111 = arith.mulf %106, %110 : vector<32x32xf32>
    %112 = arith.truncf %111 : vector<32x32xf32> to vector<32x32xbf16>
    %113 = vector.extract_strided_slice %43 {offsets = [0, 64], sizes = [32, 32], strides = [1, 1]} : vector<32x128xbf16> to vector<32x32xbf16>
    %cst_41 = arith.constant dense<0.000000e+00> : vector<32x32xf32>
    %114 = tpu.matmul %112, %113, %cst_41 {dimension_numbers = #tpu.dot_dimension_numbers<[1], [0], [0], [1], [0, 0, 1, 1], [], []>} : vector<32x32xbf16>, vector<32x32xbf16>, vector<32x32xf32> -> vector<32x32xf32>
    %115 = arith.truncf %114 : vector<32x32xf32> to vector<32x32xbf16>
    %116 = vector.extract_strided_slice %45 {offsets = [64, 0], sizes = [32, 128], strides = [1, 1]} : vector<128x128xbf16> to vector<32x128xbf16>
    %cst_42 = arith.constant dense<0.000000e+00> : vector<32x128xf32>
    %117 = tpu.matmul %115, %116, %cst_42 {dimension_numbers = #tpu.dot_dimension_numbers<[1], [0], [0], [1], [0, 0, 1, 1], [], []>} : vector<32x32xbf16>, vector<32x128xbf16>, vector<32x128xf32> -> vector<32x128xf32>
    %118 = arith.addf %95, %117 : vector<32x128xf32>
    %119 = vector.extract_strided_slice %39 {offsets = [0, 96], sizes = [32, 32], strides = [1, 1]} : vector<32x128xbf16> to vector<32x32xbf16>
    %120 = vector.extract_strided_slice %41 {offsets = [0, 96], sizes = [32, 32], strides = [1, 1]} : vector<32x128xbf16> to vector<32x32xbf16>
    %121 = tpu.transpose %120, [1, 0] : vector<32x32xbf16> -> vector<32x32xbf16>
    %cst_43 = arith.constant dense<0.000000e+00> : vector<32x32xf32>
    %122 = tpu.matmul %119, %121, %cst_43 {dimension_numbers = #tpu.dot_dimension_numbers<[1], [0], [0], [1], [0, 0, 1, 1], [], []>} : vector<32x32xbf16>, vector<32x32xbf16>, vector<32x32xf32> -> vector<32x32xf32>
    %123 = vector.broadcast %3 : vector<1x32xf32> to vector<32x32xf32>
    %124 = arith.addf %122, %123 : vector<32x32xf32>
    %cst_44 = arith.constant dense<0xFF800000> : vector<32xf32>
    %125 = vector.multi_reduction <maximumf>, %124, %cst_44 [1] : vector<32x32xf32> to vector<32xf32>
    %126 = vector.shape_cast %125 : vector<32xf32> to vector<32x1xf32>
    %127 = vector.broadcast %126 : vector<32x1xf32> to vector<32x32xf32>
    %128 = arith.subf %124, %127 : vector<32x32xf32>
    %129 = math.exp %128 : vector<32x32xf32>
    %cst_45 = arith.constant dense<0.000000e+00> : vector<32xf32>
    %130 = vector.multi_reduction <add>, %129, %cst_45 [1] : vector<32x32xf32> to vector<32xf32>
    %131 = vector.shape_cast %130 : vector<32xf32> to vector<32x1xf32>
    %132 = tpu.reciprocal %131 {approx = true} : vector<32x1xf32> -> vector<32x1xf32>
    %133 = vector.broadcast %132 : vector<32x1xf32> to vector<32x32xf32>
    %134 = arith.mulf %129, %133 : vector<32x32xf32>
    %135 = arith.truncf %134 : vector<32x32xf32> to vector<32x32xbf16>
    %136 = vector.extract_strided_slice %43 {offsets = [0, 96], sizes = [32, 32], strides = [1, 1]} : vector<32x128xbf16> to vector<32x32xbf16>
    %cst_46 = arith.constant dense<0.000000e+00> : vector<32x32xf32>
    %137 = tpu.matmul %135, %136, %cst_46 {dimension_numbers = #tpu.dot_dimension_numbers<[1], [0], [0], [1], [0, 0, 1, 1], [], []>} : vector<32x32xbf16>, vector<32x32xbf16>, vector<32x32xf32> -> vector<32x32xf32>
    %138 = arith.truncf %137 : vector<32x32xf32> to vector<32x32xbf16>
    %139 = vector.extract_strided_slice %45 {offsets = [96, 0], sizes = [32, 128], strides = [1, 1]} : vector<128x128xbf16> to vector<32x128xbf16>
    %cst_47 = arith.constant dense<0.000000e+00> : vector<32x128xf32>
    %140 = tpu.matmul %138, %139, %cst_47 {dimension_numbers = #tpu.dot_dimension_numbers<[1], [0], [0], [1], [0, 0, 1, 1], [], []>} : vector<32x32xbf16>, vector<32x128xbf16>, vector<32x128xf32> -> vector<32x128xf32>
    %141 = arith.addf %118, %140 : vector<32x128xf32>
    %142 = arith.addf %1, %141 : vector<32x128xf32>
    %c0_48 = arith.constant 0 : index
    %c0_49 = arith.constant 0 : index
    %c0_50 = arith.constant 0 : index
    %143 = vector.load %arg9[%c0_48, %c0_49, %c0_50] : memref<2x1x128xf32, #tpu.memory_space<vmem>>, vector<1x1x128xf32>
    %144 = vector.shape_cast %143 : vector<1x1x128xf32> to vector<1x128xf32>
    %c0_51 = arith.constant 0 : index
    %c0_52 = arith.constant 0 : index
    %c0_53 = arith.constant 0 : index
    %145 = vector.load %arg10[%c0_51, %c0_52, %c0_53] : memref<2x1x128xf32, #tpu.memory_space<vmem>>, vector<1x1x128xf32>
    %146 = vector.shape_cast %145 : vector<1x1x128xf32> to vector<1x128xf32>
    %cst_54 = arith.constant dense<0.000000e+00> : vector<32xf32>
    %147 = vector.multi_reduction <add>, %142, %cst_54 [1] : vector<32x128xf32> to vector<32xf32>
    %148 = vector.shape_cast %147 : vector<32xf32> to vector<32x1xf32>
    %cst_55 = arith.constant 1.280000e+02 : f32
    %149 = vector.broadcast %cst_55 : f32 to vector<32x1xf32>
    %150 = arith.divf %148, %149 : vector<32x1xf32>
    %151 = vector.broadcast %150 : vector<32x1xf32> to vector<32x128xf32>
    %152 = arith.subf %142, %151 : vector<32x128xf32>
    %153 = arith.mulf %152, %152 : vector<32x128xf32>
    %cst_56 = arith.constant dense<0.000000e+00> : vector<32xf32>
    %154 = vector.multi_reduction <add>, %153, %cst_56 [1] : vector<32x128xf32> to vector<32xf32>
    %155 = vector.shape_cast %154 : vector<32xf32> to vector<32x1xf32>
    %cst_57 = arith.constant 1.280000e+02 : f32
    %156 = vector.broadcast %cst_57 : f32 to vector<32x1xf32>
    %157 = arith.divf %155, %156 : vector<32x1xf32>
    %158 = vector.broadcast %150 : vector<32x1xf32> to vector<32x128xf32>
    %159 = arith.subf %142, %158 : vector<32x128xf32>
    %cst_58 = arith.constant 9.99999974E-6 : f32
    %160 = vector.broadcast %cst_58 : f32 to vector<32x1xf32>
    %161 = arith.addf %157, %160 : vector<32x1xf32>
    %162 = math.rsqrt %161 : vector<32x1xf32>
    %163 = vector.broadcast %162 : vector<32x1xf32> to vector<32x128xf32>
    %164 = arith.mulf %159, %163 : vector<32x128xf32>
    %165 = vector.broadcast %144 : vector<1x128xf32> to vector<32x128xf32>
    %166 = arith.mulf %164, %165 : vector<32x128xf32>
    %167 = vector.broadcast %146 : vector<1x128xf32> to vector<32x128xf32>
    %168 = arith.addf %166, %167 : vector<32x128xf32>
    %169 = arith.truncf %168 : vector<32x128xf32> to vector<32x128xbf16>
    %c0_59 = arith.constant 0 : index
    %c0_60 = arith.constant 0 : index
    %c0_61 = arith.constant 0 : index
    %170 = vector.load %arg11[%c0_59, %c0_60, %c0_61] : memref<2x128x256xbf16, #tpu.memory_space<vmem>>, vector<1x128x256xbf16>
    %171 = vector.shape_cast %170 : vector<1x128x256xbf16> to vector<128x256xbf16>
    %cst_62 = arith.constant dense<0.000000e+00> : vector<32x256xf32>
    %172 = tpu.matmul %169, %171, %cst_62 {dimension_numbers = #tpu.dot_dimension_numbers<[1], [0], [0], [1], [0, 0, 1, 1], [], []>} : vector<32x128xbf16>, vector<128x256xbf16>, vector<32x256xf32> -> vector<32x256xf32>
    %c0_63 = arith.constant 0 : index
    %c0_64 = arith.constant 0 : index
    %c0_65 = arith.constant 0 : index
    %173 = vector.load %arg12[%c0_63, %c0_64, %c0_65] : memref<2x1x256xf32, #tpu.memory_space<vmem>>, vector<1x1x256xf32>
    %174 = vector.shape_cast %173 : vector<1x1x256xf32> to vector<1x256xf32>
    %175 = vector.broadcast %174 : vector<1x256xf32> to vector<32x256xf32>
    %176 = arith.addf %172, %175 : vector<32x256xf32>
    %177 = arith.mulf %176, %176 : vector<32x256xf32>
    %178 = arith.mulf %176, %177 : vector<32x256xf32>
    %cst_66 = arith.constant 4.471500e-02 : f32
    %179 = vector.broadcast %cst_66 : f32 to vector<32x256xf32>
    %180 = arith.mulf %179, %178 : vector<32x256xf32>
    %181 = arith.addf %176, %180 : vector<32x256xf32>
    %cst_67 = arith.constant 0.797884583 : f32
    %182 = vector.broadcast %cst_67 : f32 to vector<32x256xf32>
    %183 = arith.mulf %182, %181 : vector<32x256xf32>
    %184 = math.tanh %183 : vector<32x256xf32>
    %cst_68 = arith.constant 1.000000e+00 : f32
    %185 = vector.broadcast %cst_68 : f32 to vector<32x256xf32>
    %186 = arith.addf %185, %184 : vector<32x256xf32>
    %cst_69 = arith.constant 5.000000e-01 : f32
    %187 = vector.broadcast %cst_69 : f32 to vector<32x256xf32>
    %188 = arith.mulf %187, %186 : vector<32x256xf32>
    %189 = arith.mulf %176, %188 : vector<32x256xf32>
    %190 = arith.truncf %189 : vector<32x256xf32> to vector<32x256xbf16>
    %c0_70 = arith.constant 0 : index
    %c0_71 = arith.constant 0 : index
    %c0_72 = arith.constant 0 : index
    %191 = vector.load %arg13[%c0_70, %c0_71, %c0_72] : memref<2x256x128xbf16, #tpu.memory_space<vmem>>, vector<1x256x128xbf16>
    %192 = vector.shape_cast %191 : vector<1x256x128xbf16> to vector<256x128xbf16>
    %cst_73 = arith.constant dense<0.000000e+00> : vector<32x128xf32>
    %193 = tpu.matmul %190, %192, %cst_73 {dimension_numbers = #tpu.dot_dimension_numbers<[1], [0], [0], [1], [0, 0, 1, 1], [], []>} : vector<32x256xbf16>, vector<256x128xbf16>, vector<32x128xf32> -> vector<32x128xf32>
    %c0_74 = arith.constant 0 : index
    %c0_75 = arith.constant 0 : index
    %c0_76 = arith.constant 0 : index
    %194 = vector.load %arg14[%c0_74, %c0_75, %c0_76] : memref<2x1x128xf32, #tpu.memory_space<vmem>>, vector<1x1x128xf32>
    %195 = vector.shape_cast %194 : vector<1x1x128xf32> to vector<1x128xf32>
    %196 = vector.broadcast %195 : vector<1x128xf32> to vector<32x128xf32>
    %197 = arith.addf %193, %196 : vector<32x128xf32>
    %198 = arith.addf %142, %197 : vector<32x128xf32>
    %c1 = arith.constant 1 : index
    %c0_77 = arith.constant 0 : index
    %c0_78 = arith.constant 0 : index
    %199 = vector.load %arg3[%c1, %c0_77, %c0_78] : memref<2x1x128xf32, #tpu.memory_space<vmem>>, vector<1x1x128xf32>
    %200 = vector.shape_cast %199 : vector<1x1x128xf32> to vector<1x128xf32>
    %c1_79 = arith.constant 1 : index
    %c0_80 = arith.constant 0 : index
    %c0_81 = arith.constant 0 : index
    %201 = vector.load %arg4[%c1_79, %c0_80, %c0_81] : memref<2x1x128xf32, #tpu.memory_space<vmem>>, vector<1x1x128xf32>
    %202 = vector.shape_cast %201 : vector<1x1x128xf32> to vector<1x128xf32>
    %cst_82 = arith.constant dense<0.000000e+00> : vector<32xf32>
    %203 = vector.multi_reduction <add>, %198, %cst_82 [1] : vector<32x128xf32> to vector<32xf32>
    %204 = vector.shape_cast %203 : vector<32xf32> to vector<32x1xf32>
    %cst_83 = arith.constant 1.280000e+02 : f32
    %205 = vector.broadcast %cst_83 : f32 to vector<32x1xf32>
    %206 = arith.divf %204, %205 : vector<32x1xf32>
    %207 = vector.broadcast %206 : vector<32x1xf32> to vector<32x128xf32>
    %208 = arith.subf %198, %207 : vector<32x128xf32>
    %209 = arith.mulf %208, %208 : vector<32x128xf32>
    %cst_84 = arith.constant dense<0.000000e+00> : vector<32xf32>
    %210 = vector.multi_reduction <add>, %209, %cst_84 [1] : vector<32x128xf32> to vector<32xf32>
    %211 = vector.shape_cast %210 : vector<32xf32> to vector<32x1xf32>
    %cst_85 = arith.constant 1.280000e+02 : f32
    %212 = vector.broadcast %cst_85 : f32 to vector<32x1xf32>
    %213 = arith.divf %211, %212 : vector<32x1xf32>
    %214 = vector.broadcast %206 : vector<32x1xf32> to vector<32x128xf32>
    %215 = arith.subf %198, %214 : vector<32x128xf32>
    %cst_86 = arith.constant 9.99999974E-6 : f32
    %216 = vector.broadcast %cst_86 : f32 to vector<32x1xf32>
    %217 = arith.addf %213, %216 : vector<32x1xf32>
    %218 = math.rsqrt %217 : vector<32x1xf32>
    %219 = vector.broadcast %218 : vector<32x1xf32> to vector<32x128xf32>
    %220 = arith.mulf %215, %219 : vector<32x128xf32>
    %221 = vector.broadcast %200 : vector<1x128xf32> to vector<32x128xf32>
    %222 = arith.mulf %220, %221 : vector<32x128xf32>
    %223 = vector.broadcast %202 : vector<1x128xf32> to vector<32x128xf32>
    %224 = arith.addf %222, %223 : vector<32x128xf32>
    %225 = arith.truncf %224 : vector<32x128xf32> to vector<32x128xbf16>
    %c1_87 = arith.constant 1 : index
    %c0_88 = arith.constant 0 : index
    %c0_89 = arith.constant 0 : index
    %226 = vector.load %arg5[%c1_87, %c0_88, %c0_89] : memref<2x128x384xbf16, #tpu.memory_space<vmem>>, vector<1x128x384xbf16>
    %227 = vector.shape_cast %226 : vector<1x128x384xbf16> to vector<128x384xbf16>
    %cst_90 = arith.constant dense<0.000000e+00> : vector<32x384xf32>
    %228 = tpu.matmul %225, %227, %cst_90 {dimension_numbers = #tpu.dot_dimension_numbers<[1], [0], [0], [1], [0, 0, 1, 1], [], []>} : vector<32x128xbf16>, vector<128x384xbf16>, vector<32x384xf32> -> vector<32x384xf32>
    %c1_91 = arith.constant 1 : index
    %c0_92 = arith.constant 0 : index
    %c0_93 = arith.constant 0 : index
    %229 = vector.load %arg6[%c1_91, %c0_92, %c0_93] : memref<2x1x384xf32, #tpu.memory_space<vmem>>, vector<1x1x384xf32>
    %230 = vector.shape_cast %229 : vector<1x1x384xf32> to vector<1x384xf32>
    %231 = vector.broadcast %230 : vector<1x384xf32> to vector<32x384xf32>
    %232 = arith.addf %228, %231 : vector<32x384xf32>
    %233 = vector.extract_strided_slice %232 {offsets = [0, 0], sizes = [32, 128], strides = [1, 1]} : vector<32x384xf32> to vector<32x128xf32>
    %234 = arith.truncf %233 : vector<32x128xf32> to vector<32x128xbf16>
    %235 = vector.extract_strided_slice %232 {offsets = [0, 128], sizes = [32, 128], strides = [1, 1]} : vector<32x384xf32> to vector<32x128xf32>
    %236 = arith.truncf %235 : vector<32x128xf32> to vector<32x128xbf16>
    %237 = vector.extract_strided_slice %232 {offsets = [0, 256], sizes = [32, 128], strides = [1, 1]} : vector<32x384xf32> to vector<32x128xf32>
    %238 = arith.truncf %237 : vector<32x128xf32> to vector<32x128xbf16>
    %c1_94 = arith.constant 1 : index
    %c0_95 = arith.constant 0 : index
    %c0_96 = arith.constant 0 : index
    %239 = vector.load %arg7[%c1_94, %c0_95, %c0_96] : memref<2x128x128xbf16, #tpu.memory_space<vmem>>, vector<1x128x128xbf16>
    %240 = vector.shape_cast %239 : vector<1x128x128xbf16> to vector<128x128xbf16>
    %c1_97 = arith.constant 1 : index
    %c0_98 = arith.constant 0 : index
    %c0_99 = arith.constant 0 : index
    %241 = vector.load %arg8[%c1_97, %c0_98, %c0_99] : memref<2x1x128xf32, #tpu.memory_space<vmem>>, vector<1x1x128xf32>
    %242 = vector.shape_cast %241 : vector<1x1x128xf32> to vector<1x128xf32>
    %243 = vector.shape_cast %242 : vector<1x128xf32> to vector<1x128xf32>
    %244 = vector.broadcast %243 : vector<1x128xf32> to vector<32x128xf32>
    %245 = vector.extract_strided_slice %234 {offsets = [0, 0], sizes = [32, 32], strides = [1, 1]} : vector<32x128xbf16> to vector<32x32xbf16>
    %246 = vector.extract_strided_slice %236 {offsets = [0, 0], sizes = [32, 32], strides = [1, 1]} : vector<32x128xbf16> to vector<32x32xbf16>
    %247 = tpu.transpose %246, [1, 0] : vector<32x32xbf16> -> vector<32x32xbf16>
    %cst_100 = arith.constant dense<0.000000e+00> : vector<32x32xf32>
    %248 = tpu.matmul %245, %247, %cst_100 {dimension_numbers = #tpu.dot_dimension_numbers<[1], [0], [0], [1], [0, 0, 1, 1], [], []>} : vector<32x32xbf16>, vector<32x32xbf16>, vector<32x32xf32> -> vector<32x32xf32>
    %249 = vector.broadcast %3 : vector<1x32xf32> to vector<32x32xf32>
    %250 = arith.addf %248, %249 : vector<32x32xf32>
    %cst_101 = arith.constant dense<0xFF800000> : vector<32xf32>
    %251 = vector.multi_reduction <maximumf>, %250, %cst_101 [1] : vector<32x32xf32> to vector<32xf32>
    %252 = vector.shape_cast %251 : vector<32xf32> to vector<32x1xf32>
    %253 = vector.broadcast %252 : vector<32x1xf32> to vector<32x32xf32>
    %254 = arith.subf %250, %253 : vector<32x32xf32>
    %255 = math.exp %254 : vector<32x32xf32>
    %cst_102 = arith.constant dense<0.000000e+00> : vector<32xf32>
    %256 = vector.multi_reduction <add>, %255, %cst_102 [1] : vector<32x32xf32> to vector<32xf32>
    %257 = vector.shape_cast %256 : vector<32xf32> to vector<32x1xf32>
    %258 = tpu.reciprocal %257 {approx = true} : vector<32x1xf32> -> vector<32x1xf32>
    %259 = vector.broadcast %258 : vector<32x1xf32> to vector<32x32xf32>
    %260 = arith.mulf %255, %259 : vector<32x32xf32>
    %261 = arith.truncf %260 : vector<32x32xf32> to vector<32x32xbf16>
    %262 = vector.extract_strided_slice %238 {offsets = [0, 0], sizes = [32, 32], strides = [1, 1]} : vector<32x128xbf16> to vector<32x32xbf16>
    %cst_103 = arith.constant dense<0.000000e+00> : vector<32x32xf32>
    %263 = tpu.matmul %261, %262, %cst_103 {dimension_numbers = #tpu.dot_dimension_numbers<[1], [0], [0], [1], [0, 0, 1, 1], [], []>} : vector<32x32xbf16>, vector<32x32xbf16>, vector<32x32xf32> -> vector<32x32xf32>
    %264 = arith.truncf %263 : vector<32x32xf32> to vector<32x32xbf16>
    %265 = vector.extract_strided_slice %240 {offsets = [0, 0], sizes = [32, 128], strides = [1, 1]} : vector<128x128xbf16> to vector<32x128xbf16>
    %cst_104 = arith.constant dense<0.000000e+00> : vector<32x128xf32>
    %266 = tpu.matmul %264, %265, %cst_104 {dimension_numbers = #tpu.dot_dimension_numbers<[1], [0], [0], [1], [0, 0, 1, 1], [], []>} : vector<32x32xbf16>, vector<32x128xbf16>, vector<32x128xf32> -> vector<32x128xf32>
    %267 = arith.addf %244, %266 : vector<32x128xf32>
    %268 = vector.extract_strided_slice %234 {offsets = [0, 32], sizes = [32, 32], strides = [1, 1]} : vector<32x128xbf16> to vector<32x32xbf16>
    %269 = vector.extract_strided_slice %236 {offsets = [0, 32], sizes = [32, 32], strides = [1, 1]} : vector<32x128xbf16> to vector<32x32xbf16>
    %270 = tpu.transpose %269, [1, 0] : vector<32x32xbf16> -> vector<32x32xbf16>
    %cst_105 = arith.constant dense<0.000000e+00> : vector<32x32xf32>
    %271 = tpu.matmul %268, %270, %cst_105 {dimension_numbers = #tpu.dot_dimension_numbers<[1], [0], [0], [1], [0, 0, 1, 1], [], []>} : vector<32x32xbf16>, vector<32x32xbf16>, vector<32x32xf32> -> vector<32x32xf32>
    %272 = vector.broadcast %3 : vector<1x32xf32> to vector<32x32xf32>
    %273 = arith.addf %271, %272 : vector<32x32xf32>
    %cst_106 = arith.constant dense<0xFF800000> : vector<32xf32>
    %274 = vector.multi_reduction <maximumf>, %273, %cst_106 [1] : vector<32x32xf32> to vector<32xf32>
    %275 = vector.shape_cast %274 : vector<32xf32> to vector<32x1xf32>
    %276 = vector.broadcast %275 : vector<32x1xf32> to vector<32x32xf32>
    %277 = arith.subf %273, %276 : vector<32x32xf32>
    %278 = math.exp %277 : vector<32x32xf32>
    %cst_107 = arith.constant dense<0.000000e+00> : vector<32xf32>
    %279 = vector.multi_reduction <add>, %278, %cst_107 [1] : vector<32x32xf32> to vector<32xf32>
    %280 = vector.shape_cast %279 : vector<32xf32> to vector<32x1xf32>
    %281 = tpu.reciprocal %280 {approx = true} : vector<32x1xf32> -> vector<32x1xf32>
    %282 = vector.broadcast %281 : vector<32x1xf32> to vector<32x32xf32>
    %283 = arith.mulf %278, %282 : vector<32x32xf32>
    %284 = arith.truncf %283 : vector<32x32xf32> to vector<32x32xbf16>
    %285 = vector.extract_strided_slice %238 {offsets = [0, 32], sizes = [32, 32], strides = [1, 1]} : vector<32x128xbf16> to vector<32x32xbf16>
    %cst_108 = arith.constant dense<0.000000e+00> : vector<32x32xf32>
    %286 = tpu.matmul %284, %285, %cst_108 {dimension_numbers = #tpu.dot_dimension_numbers<[1], [0], [0], [1], [0, 0, 1, 1], [], []>} : vector<32x32xbf16>, vector<32x32xbf16>, vector<32x32xf32> -> vector<32x32xf32>
    %287 = arith.truncf %286 : vector<32x32xf32> to vector<32x32xbf16>
    %288 = vector.extract_strided_slice %240 {offsets = [32, 0], sizes = [32, 128], strides = [1, 1]} : vector<128x128xbf16> to vector<32x128xbf16>
    %cst_109 = arith.constant dense<0.000000e+00> : vector<32x128xf32>
    %289 = tpu.matmul %287, %288, %cst_109 {dimension_numbers = #tpu.dot_dimension_numbers<[1], [0], [0], [1], [0, 0, 1, 1], [], []>} : vector<32x32xbf16>, vector<32x128xbf16>, vector<32x128xf32> -> vector<32x128xf32>
    %290 = arith.addf %267, %289 : vector<32x128xf32>
    %291 = vector.extract_strided_slice %234 {offsets = [0, 64], sizes = [32, 32], strides = [1, 1]} : vector<32x128xbf16> to vector<32x32xbf16>
    %292 = vector.extract_strided_slice %236 {offsets = [0, 64], sizes = [32, 32], strides = [1, 1]} : vector<32x128xbf16> to vector<32x32xbf16>
    %293 = tpu.transpose %292, [1, 0] : vector<32x32xbf16> -> vector<32x32xbf16>
    %cst_110 = arith.constant dense<0.000000e+00> : vector<32x32xf32>
    %294 = tpu.matmul %291, %293, %cst_110 {dimension_numbers = #tpu.dot_dimension_numbers<[1], [0], [0], [1], [0, 0, 1, 1], [], []>} : vector<32x32xbf16>, vector<32x32xbf16>, vector<32x32xf32> -> vector<32x32xf32>
    %295 = vector.broadcast %3 : vector<1x32xf32> to vector<32x32xf32>
    %296 = arith.addf %294, %295 : vector<32x32xf32>
    %cst_111 = arith.constant dense<0xFF800000> : vector<32xf32>
    %297 = vector.multi_reduction <maximumf>, %296, %cst_111 [1] : vector<32x32xf32> to vector<32xf32>
    %298 = vector.shape_cast %297 : vector<32xf32> to vector<32x1xf32>
    %299 = vector.broadcast %298 : vector<32x1xf32> to vector<32x32xf32>
    %300 = arith.subf %296, %299 : vector<32x32xf32>
    %301 = math.exp %300 : vector<32x32xf32>
    %cst_112 = arith.constant dense<0.000000e+00> : vector<32xf32>
    %302 = vector.multi_reduction <add>, %301, %cst_112 [1] : vector<32x32xf32> to vector<32xf32>
    %303 = vector.shape_cast %302 : vector<32xf32> to vector<32x1xf32>
    %304 = tpu.reciprocal %303 {approx = true} : vector<32x1xf32> -> vector<32x1xf32>
    %305 = vector.broadcast %304 : vector<32x1xf32> to vector<32x32xf32>
    %306 = arith.mulf %301, %305 : vector<32x32xf32>
    %307 = arith.truncf %306 : vector<32x32xf32> to vector<32x32xbf16>
    %308 = vector.extract_strided_slice %238 {offsets = [0, 64], sizes = [32, 32], strides = [1, 1]} : vector<32x128xbf16> to vector<32x32xbf16>
    %cst_113 = arith.constant dense<0.000000e+00> : vector<32x32xf32>
    %309 = tpu.matmul %307, %308, %cst_113 {dimension_numbers = #tpu.dot_dimension_numbers<[1], [0], [0], [1], [0, 0, 1, 1], [], []>} : vector<32x32xbf16>, vector<32x32xbf16>, vector<32x32xf32> -> vector<32x32xf32>
    %310 = arith.truncf %309 : vector<32x32xf32> to vector<32x32xbf16>
    %311 = vector.extract_strided_slice %240 {offsets = [64, 0], sizes = [32, 128], strides = [1, 1]} : vector<128x128xbf16> to vector<32x128xbf16>
    %cst_114 = arith.constant dense<0.000000e+00> : vector<32x128xf32>
    %312 = tpu.matmul %310, %311, %cst_114 {dimension_numbers = #tpu.dot_dimension_numbers<[1], [0], [0], [1], [0, 0, 1, 1], [], []>} : vector<32x32xbf16>, vector<32x128xbf16>, vector<32x128xf32> -> vector<32x128xf32>
    %313 = arith.addf %290, %312 : vector<32x128xf32>
    %314 = vector.extract_strided_slice %234 {offsets = [0, 96], sizes = [32, 32], strides = [1, 1]} : vector<32x128xbf16> to vector<32x32xbf16>
    %315 = vector.extract_strided_slice %236 {offsets = [0, 96], sizes = [32, 32], strides = [1, 1]} : vector<32x128xbf16> to vector<32x32xbf16>
    %316 = tpu.transpose %315, [1, 0] : vector<32x32xbf16> -> vector<32x32xbf16>
    %cst_115 = arith.constant dense<0.000000e+00> : vector<32x32xf32>
    %317 = tpu.matmul %314, %316, %cst_115 {dimension_numbers = #tpu.dot_dimension_numbers<[1], [0], [0], [1], [0, 0, 1, 1], [], []>} : vector<32x32xbf16>, vector<32x32xbf16>, vector<32x32xf32> -> vector<32x32xf32>
    %318 = vector.broadcast %3 : vector<1x32xf32> to vector<32x32xf32>
    %319 = arith.addf %317, %318 : vector<32x32xf32>
    %cst_116 = arith.constant dense<0xFF800000> : vector<32xf32>
    %320 = vector.multi_reduction <maximumf>, %319, %cst_116 [1] : vector<32x32xf32> to vector<32xf32>
    %321 = vector.shape_cast %320 : vector<32xf32> to vector<32x1xf32>
    %322 = vector.broadcast %321 : vector<32x1xf32> to vector<32x32xf32>
    %323 = arith.subf %319, %322 : vector<32x32xf32>
    %324 = math.exp %323 : vector<32x32xf32>
    %cst_117 = arith.constant dense<0.000000e+00> : vector<32xf32>
    %325 = vector.multi_reduction <add>, %324, %cst_117 [1] : vector<32x32xf32> to vector<32xf32>
    %326 = vector.shape_cast %325 : vector<32xf32> to vector<32x1xf32>
    %327 = tpu.reciprocal %326 {approx = true} : vector<32x1xf32> -> vector<32x1xf32>
    %328 = vector.broadcast %327 : vector<32x1xf32> to vector<32x32xf32>
    %329 = arith.mulf %324, %328 : vector<32x32xf32>
    %330 = arith.truncf %329 : vector<32x32xf32> to vector<32x32xbf16>
    %331 = vector.extract_strided_slice %238 {offsets = [0, 96], sizes = [32, 32], strides = [1, 1]} : vector<32x128xbf16> to vector<32x32xbf16>
    %cst_118 = arith.constant dense<0.000000e+00> : vector<32x32xf32>
    %332 = tpu.matmul %330, %331, %cst_118 {dimension_numbers = #tpu.dot_dimension_numbers<[1], [0], [0], [1], [0, 0, 1, 1], [], []>} : vector<32x32xbf16>, vector<32x32xbf16>, vector<32x32xf32> -> vector<32x32xf32>
    %333 = arith.truncf %332 : vector<32x32xf32> to vector<32x32xbf16>
    %334 = vector.extract_strided_slice %240 {offsets = [96, 0], sizes = [32, 128], strides = [1, 1]} : vector<128x128xbf16> to vector<32x128xbf16>
    %cst_119 = arith.constant dense<0.000000e+00> : vector<32x128xf32>
    %335 = tpu.matmul %333, %334, %cst_119 {dimension_numbers = #tpu.dot_dimension_numbers<[1], [0], [0], [1], [0, 0, 1, 1], [], []>} : vector<32x32xbf16>, vector<32x128xbf16>, vector<32x128xf32> -> vector<32x128xf32>
    %336 = arith.addf %313, %335 : vector<32x128xf32>
    %337 = arith.addf %198, %336 : vector<32x128xf32>
    %c1_120 = arith.constant 1 : index
    %c0_121 = arith.constant 0 : index
    %c0_122 = arith.constant 0 : index
    %338 = vector.load %arg9[%c1_120, %c0_121, %c0_122] : memref<2x1x128xf32, #tpu.memory_space<vmem>>, vector<1x1x128xf32>
    %339 = vector.shape_cast %338 : vector<1x1x128xf32> to vector<1x128xf32>
    %c1_123 = arith.constant 1 : index
    %c0_124 = arith.constant 0 : index
    %c0_125 = arith.constant 0 : index
    %340 = vector.load %arg10[%c1_123, %c0_124, %c0_125] : memref<2x1x128xf32, #tpu.memory_space<vmem>>, vector<1x1x128xf32>
    %341 = vector.shape_cast %340 : vector<1x1x128xf32> to vector<1x128xf32>
    %cst_126 = arith.constant dense<0.000000e+00> : vector<32xf32>
    %342 = vector.multi_reduction <add>, %337, %cst_126 [1] : vector<32x128xf32> to vector<32xf32>
    %343 = vector.shape_cast %342 : vector<32xf32> to vector<32x1xf32>
    %cst_127 = arith.constant 1.280000e+02 : f32
    %344 = vector.broadcast %cst_127 : f32 to vector<32x1xf32>
    %345 = arith.divf %343, %344 : vector<32x1xf32>
    %346 = vector.broadcast %345 : vector<32x1xf32> to vector<32x128xf32>
    %347 = arith.subf %337, %346 : vector<32x128xf32>
    %348 = arith.mulf %347, %347 : vector<32x128xf32>
    %cst_128 = arith.constant dense<0.000000e+00> : vector<32xf32>
    %349 = vector.multi_reduction <add>, %348, %cst_128 [1] : vector<32x128xf32> to vector<32xf32>
    %350 = vector.shape_cast %349 : vector<32xf32> to vector<32x1xf32>
    %cst_129 = arith.constant 1.280000e+02 : f32
    %351 = vector.broadcast %cst_129 : f32 to vector<32x1xf32>
    %352 = arith.divf %350, %351 : vector<32x1xf32>
    %353 = vector.broadcast %345 : vector<32x1xf32> to vector<32x128xf32>
    %354 = arith.subf %337, %353 : vector<32x128xf32>
    %cst_130 = arith.constant 9.99999974E-6 : f32
    %355 = vector.broadcast %cst_130 : f32 to vector<32x1xf32>
    %356 = arith.addf %352, %355 : vector<32x1xf32>
    %357 = math.rsqrt %356 : vector<32x1xf32>
    %358 = vector.broadcast %357 : vector<32x1xf32> to vector<32x128xf32>
    %359 = arith.mulf %354, %358 : vector<32x128xf32>
    %360 = vector.broadcast %339 : vector<1x128xf32> to vector<32x128xf32>
    %361 = arith.mulf %359, %360 : vector<32x128xf32>
    %362 = vector.broadcast %341 : vector<1x128xf32> to vector<32x128xf32>
    %363 = arith.addf %361, %362 : vector<32x128xf32>
    %364 = arith.truncf %363 : vector<32x128xf32> to vector<32x128xbf16>
    %c1_131 = arith.constant 1 : index
    %c0_132 = arith.constant 0 : index
    %c0_133 = arith.constant 0 : index
    %365 = vector.load %arg11[%c1_131, %c0_132, %c0_133] : memref<2x128x256xbf16, #tpu.memory_space<vmem>>, vector<1x128x256xbf16>
    %366 = vector.shape_cast %365 : vector<1x128x256xbf16> to vector<128x256xbf16>
    %cst_134 = arith.constant dense<0.000000e+00> : vector<32x256xf32>
    %367 = tpu.matmul %364, %366, %cst_134 {dimension_numbers = #tpu.dot_dimension_numbers<[1], [0], [0], [1], [0, 0, 1, 1], [], []>} : vector<32x128xbf16>, vector<128x256xbf16>, vector<32x256xf32> -> vector<32x256xf32>
    %c1_135 = arith.constant 1 : index
    %c0_136 = arith.constant 0 : index
    %c0_137 = arith.constant 0 : index
    %368 = vector.load %arg12[%c1_135, %c0_136, %c0_137] : memref<2x1x256xf32, #tpu.memory_space<vmem>>, vector<1x1x256xf32>
    %369 = vector.shape_cast %368 : vector<1x1x256xf32> to vector<1x256xf32>
    %370 = vector.broadcast %369 : vector<1x256xf32> to vector<32x256xf32>
    %371 = arith.addf %367, %370 : vector<32x256xf32>
    %372 = arith.mulf %371, %371 : vector<32x256xf32>
    %373 = arith.mulf %371, %372 : vector<32x256xf32>
    %cst_138 = arith.constant 4.471500e-02 : f32
    %374 = vector.broadcast %cst_138 : f32 to vector<32x256xf32>
    %375 = arith.mulf %374, %373 : vector<32x256xf32>
    %376 = arith.addf %371, %375 : vector<32x256xf32>
    %cst_139 = arith.constant 0.797884583 : f32
    %377 = vector.broadcast %cst_139 : f32 to vector<32x256xf32>
    %378 = arith.mulf %377, %376 : vector<32x256xf32>
    %379 = math.tanh %378 : vector<32x256xf32>
    %cst_140 = arith.constant 1.000000e+00 : f32
    %380 = vector.broadcast %cst_140 : f32 to vector<32x256xf32>
    %381 = arith.addf %380, %379 : vector<32x256xf32>
    %cst_141 = arith.constant 5.000000e-01 : f32
    %382 = vector.broadcast %cst_141 : f32 to vector<32x256xf32>
    %383 = arith.mulf %382, %381 : vector<32x256xf32>
    %384 = arith.mulf %371, %383 : vector<32x256xf32>
    %385 = arith.truncf %384 : vector<32x256xf32> to vector<32x256xbf16>
    %c1_142 = arith.constant 1 : index
    %c0_143 = arith.constant 0 : index
    %c0_144 = arith.constant 0 : index
    %386 = vector.load %arg13[%c1_142, %c0_143, %c0_144] : memref<2x256x128xbf16, #tpu.memory_space<vmem>>, vector<1x256x128xbf16>
    %387 = vector.shape_cast %386 : vector<1x256x128xbf16> to vector<256x128xbf16>
    %cst_145 = arith.constant dense<0.000000e+00> : vector<32x128xf32>
    %388 = tpu.matmul %385, %387, %cst_145 {dimension_numbers = #tpu.dot_dimension_numbers<[1], [0], [0], [1], [0, 0, 1, 1], [], []>} : vector<32x256xbf16>, vector<256x128xbf16>, vector<32x128xf32> -> vector<32x128xf32>
    %c1_146 = arith.constant 1 : index
    %c0_147 = arith.constant 0 : index
    %c0_148 = arith.constant 0 : index
    %389 = vector.load %arg14[%c1_146, %c0_147, %c0_148] : memref<2x1x128xf32, #tpu.memory_space<vmem>>, vector<1x1x128xf32>
    %390 = vector.shape_cast %389 : vector<1x1x128xf32> to vector<1x128xf32>
    %391 = vector.broadcast %390 : vector<1x128xf32> to vector<32x128xf32>
    %392 = arith.addf %388, %391 : vector<32x128xf32>
    %393 = arith.addf %337, %392 : vector<32x128xf32>
    %c0_149 = arith.constant 0 : index
    %c0_150 = arith.constant 0 : index
    %394 = vector.load %arg15[%c0_149, %c0_150] : memref<1x128xf32, #tpu.memory_space<vmem>>, vector<1x128xf32>
    %c0_151 = arith.constant 0 : index
    %c0_152 = arith.constant 0 : index
    %395 = vector.load %arg16[%c0_151, %c0_152] : memref<1x128xf32, #tpu.memory_space<vmem>>, vector<1x128xf32>
    %cst_153 = arith.constant dense<0.000000e+00> : vector<32xf32>
    %396 = vector.multi_reduction <add>, %393, %cst_153 [1] : vector<32x128xf32> to vector<32xf32>
    %397 = vector.shape_cast %396 : vector<32xf32> to vector<32x1xf32>
    %cst_154 = arith.constant 1.280000e+02 : f32
    %398 = vector.broadcast %cst_154 : f32 to vector<32x1xf32>
    %399 = arith.divf %397, %398 : vector<32x1xf32>
    %400 = vector.broadcast %399 : vector<32x1xf32> to vector<32x128xf32>
    %401 = arith.subf %393, %400 : vector<32x128xf32>
    %402 = arith.mulf %401, %401 : vector<32x128xf32>
    %cst_155 = arith.constant dense<0.000000e+00> : vector<32xf32>
    %403 = vector.multi_reduction <add>, %402, %cst_155 [1] : vector<32x128xf32> to vector<32xf32>
    %404 = vector.shape_cast %403 : vector<32xf32> to vector<32x1xf32>
    %cst_156 = arith.constant 1.280000e+02 : f32
    %405 = vector.broadcast %cst_156 : f32 to vector<32x1xf32>
    %406 = arith.divf %404, %405 : vector<32x1xf32>
    %407 = vector.broadcast %399 : vector<32x1xf32> to vector<32x128xf32>
    %408 = arith.subf %393, %407 : vector<32x128xf32>
    %cst_157 = arith.constant 9.99999974E-6 : f32
    %409 = vector.broadcast %cst_157 : f32 to vector<32x1xf32>
    %410 = arith.addf %406, %409 : vector<32x1xf32>
    %411 = math.rsqrt %410 : vector<32x1xf32>
    %412 = vector.broadcast %411 : vector<32x1xf32> to vector<32x128xf32>
    %413 = arith.mulf %408, %412 : vector<32x128xf32>
    %414 = vector.broadcast %394 : vector<1x128xf32> to vector<32x128xf32>
    %415 = arith.mulf %413, %414 : vector<32x128xf32>
    %416 = vector.broadcast %395 : vector<1x128xf32> to vector<32x128xf32>
    %417 = arith.addf %415, %416 : vector<32x128xf32>
    %c0_158 = arith.constant 0 : index
    %c0_159 = arith.constant 0 : index
    %c0_160 = arith.constant 0 : index
    %418 = vector.load %arg17[%c0_158, %c0_159, %c0_160] : memref<1x32x128xf32, #tpu.memory_space<vmem>>, vector<1x32x128xf32>
    %419 = vector.shape_cast %418 : vector<1x32x128xf32> to vector<32x128xf32>
    %420 = vector.shape_cast %417 : vector<32x128xf32> to vector<1x32x128xf32>
    tpu.vector_store %arg17[%c0_158, %c0_159, %c0_160], %420 {strides = array<i32>} : memref<1x32x128xf32, #tpu.memory_space<vmem>>, vector<1x32x128xf32>,
    return
  }
  func.func @transform_0(%arg0: i32) -> (i32, i32, i32) {
    %c0_i32 = arith.constant 0 : i32
    %c0_i32_0 = arith.constant 0 : i32
    %c0_i32_1 = arith.constant 0 : i32
    return %arg0, %c0_i32, %c0_i32_0 : i32, i32, i32
  }
  func.func @transform_1(%arg0: i32) -> (i32, i32, i32) {
    %c0_i32 = arith.constant 0 : i32
    %c0_i32_0 = arith.constant 0 : i32
    %c0_i32_1 = arith.constant 0 : i32
    return %arg0, %c0_i32, %c0_i32_0 : i32, i32, i32
  }
  func.func @transform_2(%arg0: i32) -> (i32, i32, i32) {
    %c0_i32 = arith.constant 0 : i32
    %c0_i32_0 = arith.constant 0 : i32
    %c0_i32_1 = arith.constant 0 : i32
    %c0_i32_2 = arith.constant 0 : i32
    return %c0_i32, %c0_i32_0, %c0_i32_1 : i32, i32, i32
  }
  func.func @transform_3(%arg0: i32) -> (i32, i32, i32) {
    %c0_i32 = arith.constant 0 : i32
    %c0_i32_0 = arith.constant 0 : i32
    %c0_i32_1 = arith.constant 0 : i32
    %c0_i32_2 = arith.constant 0 : i32
    return %c0_i32, %c0_i32_0, %c0_i32_1 : i32, i32, i32
  }
  func.func @transform_4(%arg0: i32) -> (i32, i32, i32) {
    %c0_i32 = arith.constant 0 : i32
    %c0_i32_0 = arith.constant 0 : i32
    %c0_i32_1 = arith.constant 0 : i32
    %c0_i32_2 = arith.constant 0 : i32
    return %c0_i32, %c0_i32_0, %c0_i32_1 : i32, i32, i32
  }
  func.func @transform_5(%arg0: i32) -> (i32, i32, i32) {
    %c0_i32 = arith.constant 0 : i32
    %c0_i32_0 = arith.constant 0 : i32
    %c0_i32_1 = arith.constant 0 : i32
    %c0_i32_2 = arith.constant 0 : i32
    return %c0_i32, %c0_i32_0, %c0_i32_1 : i32, i32, i32
  }
  func.func @transform_6(%arg0: i32) -> (i32, i32, i32) {
    %c0_i32 = arith.constant 0 : i32
    %c0_i32_0 = arith.constant 0 : i32
    %c0_i32_1 = arith.constant 0 : i32
    %c0_i32_2 = arith.constant 0 : i32
    return %c0_i32, %c0_i32_0, %c0_i32_1 : i32, i32, i32
  }
  func.func @transform_7(%arg0: i32) -> (i32, i32, i32) {
    %c0_i32 = arith.constant 0 : i32
    %c0_i32_0 = arith.constant 0 : i32
    %c0_i32_1 = arith.constant 0 : i32
    %c0_i32_2 = arith.constant 0 : i32
    return %c0_i32, %c0_i32_0, %c0_i32_1 : i32, i32, i32
  }
  func.func @transform_8(%arg0: i32) -> (i32, i32, i32) {
    %c0_i32 = arith.constant 0 : i32
    %c0_i32_0 = arith.constant 0 : i32
    %c0_i32_1 = arith.constant 0 : i32
    %c0_i32_2 = arith.constant 0 : i32
    return %c0_i32, %c0_i32_0, %c0_i32_1 : i32, i32, i32
  }
  func.func @transform_9(%arg0: i32) -> (i32, i32, i32) {
    %c0_i32 = arith.constant 0 : i32
    %c0_i32_0 = arith.constant 0 : i32
    %c0_i32_1 = arith.constant 0 : i32
    %c0_i32_2 = arith.constant 0 : i32
    return %c0_i32, %c0_i32_0, %c0_i32_1 : i32, i32, i32
  }
  func.func @transform_10(%arg0: i32) -> (i32, i32, i32) {
    %c0_i32 = arith.constant 0 : i32
    %c0_i32_0 = arith.constant 0 : i32
    %c0_i32_1 = arith.constant 0 : i32
    %c0_i32_2 = arith.constant 0 : i32
    return %c0_i32, %c0_i32_0, %c0_i32_1 : i32, i32, i32
  }
  func.func @transform_11(%arg0: i32) -> (i32, i32, i32) {
    %c0_i32 = arith.constant 0 : i32
    %c0_i32_0 = arith.constant 0 : i32
    %c0_i32_1 = arith.constant 0 : i32
    %c0_i32_2 = arith.constant 0 : i32
    return %c0_i32, %c0_i32_0, %c0_i32_1 : i32, i32, i32
  }
  func.func @transform_12(%arg0: i32) -> (i32, i32, i32) {
    %c0_i32 = arith.constant 0 : i32
    %c0_i32_0 = arith.constant 0 : i32
    %c0_i32_1 = arith.constant 0 : i32
    %c0_i32_2 = arith.constant 0 : i32
    return %c0_i32, %c0_i32_0, %c0_i32_1 : i32, i32, i32
  }
  func.func @transform_13(%arg0: i32) -> (i32, i32, i32) {
    %c0_i32 = arith.constant 0 : i32
    %c0_i32_0 = arith.constant 0 : i32
    %c0_i32_1 = arith.constant 0 : i32
    %c0_i32_2 = arith.constant 0 : i32
    return %c0_i32, %c0_i32_0, %c0_i32_1 : i32, i32, i32
  }
  func.func @transform_14(%arg0: i32) -> (i32, i32) {
    %c0_i32 = arith.constant 0 : i32
    %c0_i32_0 = arith.constant 0 : i32
    %c0_i32_1 = arith.constant 0 : i32
    return %c0_i32, %c0_i32_0 : i32, i32
  }
  func.func @transform_15(%arg0: i32) -> (i32, i32) {
    %c0_i32 = arith.constant 0 : i32
    %c0_i32_0 = arith.constant 0 : i32
    %c0_i32_1 = arith.constant 0 : i32
    return %c0_i32, %c0_i32_0 : i32, i32
  }
  func.func @transform_16(%arg0: i32) -> (i32, i32, i32) {
    %c0_i32 = arith.constant 0 : i32
    %c0_i32_0 = arith.constant 0 : i32
    %c0_i32_1 = arith.constant 0 : i32
    return %arg0, %c0_i32, %c0_i32_0 : i32, i32, i32
  }
}

</mosaic_0001>

<bundles_post_ra>
// kernel: encode_windows.1
= control target key start
LH: loop header
LB: loop body
LE: loop exit
PB: predicated region body
PF: predicated region fallthrough
CT: control target
= control target key end

     0   :  { %s6353_s0 = inlined_call_operand.vmem [shape: f32[3,32,128], index: 0, kind: input, shape index: {}]   ;;  %s6354_s1 = inlined_call_operand.vmem [shape: f32[3,1,32], index: 1, kind: input, shape index: {}]   ;;  %s6355_s2 = inlined_call_operand.vmem [shape: f32[2,1,128], index: 2, kind: input, shape index: {}]   ;;  %s6356_s3 = inlined_call_operand.vmem [shape: f32[2,1,128], index: 3, kind: input, shape index: {}]   ;;  %s6357_s4 = inlined_call_operand.vmem [shape: bf16[2,128,384], index: 4, kind: input, shape index: {}]   ;;  %s6358_s5 = inlined_call_operand.vmem [shape: f32[2,1,384], index: 5, kind: input, shape index: {}]   ;;  %s6359_s6 = inlined_call_operand.vmem [shape: bf16[2,128,128], index: 6, kind: input, shape index: {}]   ;;  %s6360_s7 = inlined_call_operand.vmem [shape: f32[2,1,128], index: 7, kind: input, shape index: {}]   ;;  %s6361_s8 = inlined_call_operand.vmem [shape: f32[2,1,128], index: 8, kind: input, shape index: {}]   ;;  %s6362_s9 = inlined_call_operand.vmem [shape: f32[2,1,128], index: 9, kind: input, shape index: {}]   ;;  %s6363_s10 = inlined_call_operand.vmem [shape: bf16[2,128,256], index: 10, kind: input, shape index: {}]   ;;  %s6364_s11 = inlined_call_operand.vmem [shape: f32[2,1,256], index: 11, kind: input, shape index: {}]   ;;  %s6365_s12 = inlined_call_operand.vmem [shape: bf16[2,256,128], index: 12, kind: input, shape index: {}]   ;;  %s6366_s13 = inlined_call_operand.vmem [shape: f32[2,1,128], index: 13, kind: input, shape index: {}]   ;;  %s6367_s14 = inlined_call_operand.vmem [shape: f32[1,128], index: 14, kind: input, shape index: {}]   ;;  %s6368_s15 = inlined_call_operand.vmem [shape: f32[1,128], index: 15, kind: input, shape index: {}]   ;;  %s6369_s16 = inlined_call_operand.hbm [shape: f32[3,32,128], index: 16, kind: output, shape index: {}]  }
   0x1   :  { %6380 = sst [smem:[#allocation11_spill]] %s6353_s0 }
   0x2   :  { %6381 = sst [smem:[#allocation12_spill]] %s6354_s1 }
   0x3   :  { %6382 = sst [smem:[#allocation13_spill]] %s6355_s2 }
   0x4   :  { %21 = vsyncpa [#allocation3], 0 }
   0x5   :  { %23 = vsyncpa [#allocation3 + $0x1], 0  ;;  %s4982_s21 = smov 0   ;;  %s4984_s22 = smov 0  }
   0x6   :  { %s4986_s23 = smov 0   ;;  %s4988_s24 = smov 0  }
   0x7 LB: > { %6383 = sst [smem:[#allocation5_spill]] %s4877_s21  ;;  %s5003_s25 = sadd.s32 4294967295, %s4889_s24   ;;  %s4889_s24 = sphi %s4988_s24, %s6399_s24   ;;  %s4885_s23 = sphi %s4986_s23, %s6401_s23   ;;  %s4881_s22 = sphi %s4984_s22, %s6403_s22   ;;  %s4877_s21 = sphi %s4982_s21, %s6402_s21  }
   0x8   : > { %6384 = sst [smem:[#allocation6_spill]] %s4885_s23  ;;  %s3752_s26 = sadd.s32 4294967294, %s4889_s24  }
   0x9   : > { %6385 = sst [smem:[#allocation7_spill]] %s4889_s24  ;;  %s5007_s27 = sadd.s32 1, %s4889_s24  }
   0xa   : > { %6386 = sst [smem:[#allocation8_spill]] %s5007_s27  ;;  %s382_s28 = sadd.s32 1, %s4885_s23 }
   0xb   : > { %s379_s29 = ssub.s32 %s4889_s24, %s5007_s27  ;;  %p392_p0 = scmp.ne.s32.totalorder %s4885_s23, %s4881_s22 }
   0xc   : > { %p380_p1 = scmp.eq.s32.totalorder %s379_s29, 0  ;;  %p393_p2 = scmp.eq.s32.totalorder %s5003_s25, 2 }
   0xd   : > { %p398_p3 = scmp.ne.s32.totalorder %s4881_s22, %s4877_s21  ;;  %p399_p4 = scmp.eq.s32.totalorder %s3752_s26, 2 }
   0xe   : > { %s5018_s30 = scalar_select %p380_p1, %s4885_s23, %s382_s28  }
   0xf   : > { %p5020_p5 = por %p393_p2, %p392_p0  ;;  %p5024_p6 = por %p399_p4, %p398_p3 }
  0x10   : > { %6387 = sst [smem:[#allocation9_spill]] %s5018_s30  ;;  %p3755_p7 = scmp.ge.s32.totalorder %s4889_s24, 1 }
  0x11   : > { %s6389_s17 = scalar_select %p5024_p6, 1, 0 }
  0x12   : > { %p473_p8 = scmp.lt.s32.totalorder %s4889_s24, 4 }
  0x13   : > { %6390 = sst [smem:[#allocation10_spill]] %s6389_s17 }
  0x14   : > { %p474_p9 = pnand %p3755_p7, %p473_p8 }
  0x15   : > { %p526_p10 = scmp.lt.s32.totalorder (!%p474_p9), %s5003_s25, 2  ;;  %s6391_s1 = sld [smem:[#allocation12_spill]] (!%p474_p9) }
  0x16   : > { %477 = sbr.rel (%p474_p9) target bundleno = 5617 (0x15f1), region = 84  ;;  %s6392_s23 = sld [smem:[#allocation11_spill]] (!%p474_p9) }
  0x17   : > { %s6393_s2 = sld [smem:[#allocation13_spill]] (!%p474_p9)  ;;  %s6378_s17 = smov (!%p474_p9), 64  }
  0x18   : > { %s6376_s26 = smov (!%p474_p9), 32   ;;  %s6395_s24 = smov (!%p474_p9), 32  }
  0x1b   : > { %s527_s18 = scalar_select %p526_p10, %s5003_s25, 2  ;;  %v4891_v4 = vmov 128.0   ;;  %v3845_v27 = vld [vmem:[%s6357_s4 + $0xa8] sm:$0xf]  ;;  %v4451_v28 = vld [vmem:[%s6357_s4 + $0xb0] sm:$0xf0] }
  0x1c   : > { %4620 = vrcp.f32 %v4891_v4  ;;  %v4450_v29 = vld [vmem:[%s6357_s4 + $0xac] sm:$0xf]  ;;  %v3846_v30 = vor.u32 %v4451_v28, %v3845_v27  ;;  %v3847_v31 = vld [vmem:[%s6357_s4 + $0xb4] sm:$0xf0]  ;;  %v3853_v32 = vld [vmem:[%s6357_s4 + $0xb0] sm:$0xf] }
  0x1d   : > { %s4428_s19 = sshll.u32 %s527_s18, 5  ;;  %s5035_s28 = scalar_lea.vmem %s6391_s1, %s527_s18  ;;  %v4452_v33 = vld [vmem:[%s6357_s4 + $0xb8] sm:$0xf0]  ;;  %v3850_v34 = vor.u32 %v4450_v29, %v3847_v31  ;;  %v3833_v36 = vld [vmem:[%s6357_s4 + $0x90] sm:$0xf]  ;;  %vm925_vm13 = vcmask 261120  }
  0x1e   : > { %s5040_s27 = scalar_lea.vmem %s6392_s23, %s4428_s19  ;;  %v3854_v35 = vor.u32 %v4452_v33, %v3853_v32  ;;  %813 = vmatpush.bf16.msra.mxu0 %v3846_v30  ;;  %v4448_v37 = vld [vmem:[%s6357_s4 + $0x98] sm:$0xf0]  ;;  %v4447_v38 = vld [vmem:[%s6357_s4 + $0x94] sm:$0xf]  ;;  %v3835_v40 = vld [vmem:[%s6357_s4 + $0x9c] sm:$0xf0] }
  0x1f   : > { %v537_v0 = vld [vmem:[%s5040_s27 + $0x10] sm:$0xff]  ;;  %v535_v1 = vld [vmem:[%s5040_s27] sm:$0xff]  ;;  %v538_v2 = vld [vmem:[%s5040_s27 + $0x18] sm:$0xff]  ;;  %832 = vmatpush.bf16.msra.mxu1 %v3850_v34  ;;  %v3834_v39 = vor.u32 %v4448_v37, %v3833_v36  ;;  %v3838_v43 = vor.u32 %v4447_v38, %v3835_v40  ;;  %s4892_s19 = smov 96   ;;  %s523_s18 = sand.u32 1, %s4881_s22  }
  0x20   : > { %546 = vadd.xlane.f32.xlu1 %v537_v0  ;;  %542 = vadd.xlane.f32.xlu0 %v535_v1  ;;  %v536_v3 = vld [vmem:[%s5040_s27 + $0x8] sm:$0xff]  ;;  %v3841_v41 = vld [vmem:[%s6357_s4 + $0x98] sm:$0xf]  ;;  %v4449_v42 = vld [vmem:[%s6357_s4 + $0xa0] sm:$0xf0]  ;;  %s3756_s21 = sshll.u32 %s523_s18, 5 }
  0x21   : > { %851 = vmatpush.bf16.msra.mxu2 %v3854_v35  ;;  %v3842_v44 = vor.u32 %v4449_v42, %v3841_v41  ;;  %v3821_v45 = vld [vmem:[%s6357_s4 + $0x78] sm:$0xf]  ;;  %v4445_v46 = vld [vmem:[%s6357_s4 + $0x80] sm:$0xf0]  ;;  %v4444_v47 = vld [vmem:[%s6357_s4 + $0x7c] sm:$0xf] }
  0x22   : > { %v4621_v5 = vpop.eup %4620  ;;  %814 = vmatpush.bf16.msra.mxu0 %v3834_v39  ;;  %v3822_v48 = vor.u32 %v4445_v46, %v3821_v45  ;;  %v3823_v49 = vld [vmem:[%s6357_s4 + $0x84] sm:$0xf0]  ;;  %v3829_v50 = vld [vmem:[%s6357_s4 + $0x80] sm:$0xf]  ;;  %v4446_v51 = vld [vmem:[%s6357_s4 + $0x88] sm:$0xf0] }
  0x23   : > { %v551_v6 = vmul.f32 128.0, %v4621_v5  ;;  %vm555_vm0 = vweird.f32 %v4621_v5  ;;  %833 = vmatpush.bf16.msra.mxu1 %v3838_v43  ;;  %v3826_v52 = vor.u32 %v4444_v47, %v3823_v49  ;;  %v3830_v53 = vor.u32 %v4446_v51, %v3829_v50  ;;  %v3809_v54 = vld [vmem:[%s6357_s4 + $0x60] sm:$0xf]  ;;  %v4442_v55 = vld [vmem:[%s6357_s4 + $0x68] sm:$0xf0] }
  0x24   : > { %v4441_v56 = vld [vmem:[%s6357_s4 + $0x64] sm:$0xf]  ;;  %v3810_v57 = vor.u32 %v4442_v55, %v3809_v54  ;;  %v3811_v58 = vld [vmem:[%s6357_s4 + $0x6c] sm:$0xf0]  ;;  %v3817_v59 = vld [vmem:[%s6357_s4 + $0x68] sm:$0xf] }
  0x25   : > { %v552_v7 = vsub.f32 1.0, %v551_v6  ;;  %852 = vmatpush.bf16.msra.mxu2 %v3842_v44  ;;  %v4443_v60 = vld [vmem:[%s6357_s4 + $0x70] sm:$0xf0]  ;;  %v3814_v61 = vor.u32 %v4441_v56, %v3811_v58  ;;  %v3797_v63 = vld [vmem:[%s6357_s4 + $0x48] sm:$0xf] }
  0x26   : > { %815 = vmatpush.bf16.msra.mxu0 %v3822_v48  ;;  %v3818_v62 = vor.u32 %v4443_v60, %v3817_v59  ;;  %v3805_v4 = vld [vmem:[%s6357_s4 + $0x50] sm:$0xf]  ;;  %v3781_v27 = vld [vmem:[%s6357_s4 + $0x20] sm:$0xf]  ;;  %v4434_v28 = vld [vmem:[%s6357_s4 + $0x28] sm:$0xf0] }
  0x27   : > { %v553_v8 = vmul.f32 %v4621_v5, %v552_v7  ;;  %834 = vmatpush.bf16.msra.mxu1 %v3826_v52  ;;  %v3782_v31 = vor.u32 %v4434_v28, %v3781_v27  ;;  %v3761_v32 = vld [vmem:[%s6357_s4] sm:$0xf]  ;;  %v4430_v33 = vld [vmem:[%s6357_s4 + $0x8] sm:$0xf0]  ;;  %v4429_v34 = vld [vmem:[%s6357_s4 + $0x4] sm:$0xf] }
  0x28   : > { %548 = vadd.xlane.f32.xlu1 %v538_v2  ;;  %544 = vadd.xlane.f32.xlu0 %v536_v3  ;;  %v3762_v37 = vor.u32 %v4430_v33, %v3761_v32  ;;  %v3763_v38 = vld [vmem:[%s6357_s4 + $0xc] sm:$0xf0]  ;;  %v3769_v39 = vld [vmem:[%s6357_s4 + $0x8] sm:$0xf]  ;;  %v4431_v40 = vld [vmem:[%s6357_s4 + $0x10] sm:$0xf0] }
  0x29   : > { %v554_v9 = vadd.f32 %v4621_v5, %v553_v8  ;;  %853 = vmatpush.bf16.msra.mxu2 %v3830_v53  ;;  %v3785_v8 = vld [vmem:[%s6357_s4 + $0x30] sm:$0xf]  ;;  %v3766_v41 = vor.u32 %v4429_v34, %v3763_v38  ;;  %v3770_v42 = vor.u32 %v4431_v40, %v3769_v39  ;;  %v677_v39 = vld [vmem:[%s6358_s5] sm:$0x7] }
  0x2a   : > { %816 = vmatpush.bf16.msra.mxu0 %v3810_v57 }
  0x2b   : > { %v5046_v10 = vsel %vm555_vm0, %v4621_v5, %v554_v9  ;;  %835 = vmatpush.bf16.msra.mxu1 %v3814_v61  ;;  %v4440_v5 = vld [vmem:[%s6357_s4 + $0x58] sm:$0xf0] }
  0x2c   : > { %v3806_v7 = vor.u32 %v4440_v5, %v3805_v4  ;;  %v4436_v9 = vld [vmem:[%s6357_s4 + $0x38] sm:$0xf0] }
  0x2d   : > { %854 = vmatpush.bf16.msra.mxu2 %v3818_v62 }
  0x31   : > { %855 = vmatpush.bf16.msra.mxu2 %v3806_v7 }
  0x93   : > { %v547_v11 = vpop.xlane.xlu1 %546  ;;  %v543_v12 = vpop.xlane.xlu0 %542 }
  0x94   : > { %v559_v13 = vmul.f32 %v5046_v10, %v547_v11  ;;  %v557_v14 = vmul.f32 %v5046_v10, %v543_v12  ;;  %v4435_v11 = vld [vmem:[%s6357_s4 + $0x34] sm:$0xf]  ;;  %v3786_v12 = vor.u32 %v4436_v9, %v3785_v8  ;;  %v4606_v8 = vld [vmem:[%s6393_s2] ss:$0 sm:$0xff] }
  0x96   : > { %v5050_v15 = vsub.f32 %v537_v0, %v559_v13  ;;  %v5052_v16 = vsub.f32 %v535_v1, %v557_v14  ;;  %v4439_v0 = vld [vmem:[%s6357_s4 + $0x50] sm:$0xf0]  ;;  %v4438_v1 = vld [vmem:[%s6357_s4 + $0x4c] sm:$0xf]  ;;  %v3787_v13 = vld [vmem:[%s6357_s4 + $0x3c] sm:$0xf0] }
  0x97   : > { %v3793_v14 = vld [vmem:[%s6357_s4 + $0x38] sm:$0xf] }
  0x98   : > { %v567_v17 = vmul.f32 %v5050_v15, %v5050_v15  ;;  %v565_v18 = vmul.f32 %v5052_v16, %v5052_v16 }
  0x9a   : > { %573 = vadd.xlane.f32.xlu0 %v567_v17  ;;  %569 = vadd.xlane.f32.xlu2 %v565_v18  ;;  %v4437_v17 = vld [vmem:[%s6357_s4 + $0x40] sm:$0xf0]  ;;  %v3790_v18 = vor.u32 %v4435_v11, %v3787_v13 }
  0x9b   : > { %v549_v19 = vpop.xlane.xlu1 %548  ;;  %v545_v20 = vpop.xlane.xlu0 %544 }
  0x9c   : > { %v560_v21 = vmul.f32 %v5046_v10, %v549_v19  ;;  %v558_v22 = vmul.f32 %v5046_v10, %v545_v20  ;;  %v3794_v19 = vor.u32 %v4437_v17, %v3793_v14  ;;  %v3773_v20 = vld [vmem:[%s6357_s4 + $0x18] sm:$0xf] }
  0x9e   : > { %v5060_v23 = vsub.f32 %v538_v2, %v560_v21  ;;  %v5062_v24 = vsub.f32 %v536_v3, %v558_v22  ;;  %v3798_v2 = vor.u32 %v4439_v0, %v3797_v63  ;;  %v3799_v3 = vld [vmem:[%s6357_s4 + $0x54] sm:$0xf0]  ;;  %856 = vmatpush.bf16.msra.mxu2 %v3794_v19  ;;  %v4433_v21 = vld [vmem:[%s6357_s4 + $0x20] sm:$0xf0]  ;;  %v4432_v22 = vld [vmem:[%s6357_s4 + $0x1c] sm:$0xf] }
  0x9f   : > { %v3802_v6 = vor.u32 %v4438_v1, %v3799_v3 }
  0xa0   : > { %v568_v25 = vmul.f32 %v5060_v23, %v5060_v23  ;;  %v566_v26 = vmul.f32 %v5062_v24, %v5062_v24  ;;  %817 = vmatpush.bf16.msra.mxu0 %v3798_v2 }
  0xa1   : > { %836 = vmatpush.bf16.msra.mxu1 %v3802_v6 }
  0xa2   : > { %575 = vadd.xlane.f32.xlu1 %v568_v25  ;;  %571 = vadd.xlane.f32.xlu2 %v566_v26  ;;  %v3774_v25 = vor.u32 %v4433_v21, %v3773_v20  ;;  %v3775_v26 = vld [vmem:[%s6357_s4 + $0x24] sm:$0xf0] }
  0xa3   : > { %v3778_v30 = vor.u32 %v4432_v22, %v3775_v26  ;;  %857 = vmatpush.bf16.msra.mxu2 %v3782_v31 }
  0xa4   : > { %818 = vmatpush.bf16.msra.mxu0 %v3786_v12 }
  0xa5   : > { %837 = vmatpush.bf16.msra.mxu1 %v3790_v18  ;;  %v4607_v18 = vld [vmem:[%s6356_s3] ss:$0 sm:$0xff] }
  0xa7   : > { %858 = vmatpush.bf16.msra.mxu2 %v3770_v42 }
  0xa8   : > { %819 = vmatpush.bf16.msra.mxu0 %v3774_v25 }
  0xa9   : > { %838 = vmatpush.bf16.msra.mxu1 %v3778_v30 }
  0xac   : > { %820 = vmatpush.bf16.msra.mxu0 %v3762_v37 }
  0xad   : > { %839 = vmatpush.bf16.msra.mxu1 %v3766_v41  ;;  %v680_v41 = vperm.slane %v677_v39, 1 }
 0x10d   : > { %v570_v29 = vpop.xlane.xlu2 %569  ;;  %v574_v36 = vpop.xlane.xlu0 %573 }
 0x10e   : > { %v577_v35 = vmul.f32 %v570_v29, %v5046_v10  ;;  %v579_v44 = vmul.f32 %v574_v36, %v5046_v10 }
 0x110   : > { %v581_v43 = vadd.f32 1e-05, %v577_v35  ;;  %v583_v45 = vadd.f32 1e-05, %v579_v44 }
 0x112   : > { %4622 = vrsqrt.f32 %v581_v43  ;;  %vm591_vm2 = vweird.f32 %v581_v43  ;;  %vm611_vm9 = vweird.f32 %v583_v45 }
 0x113   : > { %4624 = vrsqrt.f32 %v583_v45 }
 0x115   : > { %v576_v46 = vpop.xlane.xlu1 %575  ;;  %v572_v47 = vpop.xlane.xlu2 %571 }
 0x116   : > { %v580_v48 = vmul.f32 %v576_v46, %v5046_v10  ;;  %v578_v49 = vmul.f32 %v572_v47, %v5046_v10 }
 0x118   : > { %v4623_v50 = vpop.eup %4622  ;;  %v584_v51 = vadd.f32 1e-05, %v580_v48  ;;  %v582_v52 = vadd.f32 1e-05, %v578_v49 }
 0x119   : > { %v586_v53 = vmul.f32 %v4623_v50, %v581_v43  ;;  %v4625_v56 = vpop.eup %4624  ;;  %vm592_vm1 = vweird.f32 %v4623_v50 }
 0x11a   : > { %4626 = vrsqrt.f32 %v584_v51  ;;  %v606_v62 = vmul.f32 %v4625_v56, %v583_v45  ;;  %vm593_vm3 = vmor %vm591_vm2, %vm592_vm1  ;;  %vm601_vm5 = vweird.f32 %v582_v52  ;;  %vm621_vm7 = vweird.f32 %v584_v51 }
 0x11b   : > { %v587_v54 = vmul.f32 %v4623_v50, %v586_v53  ;;  %4628 = vrsqrt.f32 %v582_v52  ;;  %vm612_vm10 = vweird.f32 %v4625_v56 }
 0x11c   : > { %v607_v3 = vmul.f32 %v4625_v56, %v606_v62  ;;  %vm613_vm12 = vmor %vm611_vm9, %vm612_vm10 }
 0x11d   : > { %v588_v55 = vmul.f32 0.5, %v587_v54 }
 0x11e   : > { %v608_v9 = vmul.f32 0.5, %v607_v3 }
 0x11f   : > { %v589_v57 = vsub.f32 1.5, %v588_v55 }
 0x120   : > { %v4627_v58 = vpop.eup %4626  ;;  %v609_v19 = vsub.f32 1.5, %v608_v9 }
 0x121   : > { %v4629_v59 = vpop.eup %4628  ;;  %v616_v60 = vmul.f32 %v4627_v58, %v584_v51  ;;  %v590_v61 = vmul.f32 %v4623_v50, %v589_v57  ;;  %vm622_vm8 = vweird.f32 %v4627_v58 }
 0x122   : > { %v596_v63 = vmul.f32 %v4629_v59, %v582_v52  ;;  %vm602_vm4 = vweird.f32 %v4629_v59  ;;  %vm623_vm11 = vmor %vm621_vm7, %vm622_vm8  ;;  %v610_v25 = vmul.f32 %v4625_v56, %v609_v19 }
 0x123   : > { %v617_v0 = vmul.f32 %v4627_v58, %v616_v60  ;;  %v594_v2 = vsel %vm593_vm3, %v4623_v50, %v590_v61  ;;  %vm603_vm6 = vmor %vm601_vm5, %vm602_vm4  ;;  %v681_v50 = vperm.slane %v677_v39, 2 }
 0x124   : > { %v597_v1 = vmul.f32 %v4629_v59, %v596_v63  ;;  %v625_v7 = vmul.f32 %v594_v2, %v5052_v16 }
 0x125   : > { %v618_v5 = vmul.f32 0.5, %v617_v0 }
 0x126   : > { %v598_v4 = vmul.f32 0.5, %v597_v1  ;;  %v632_v17 = vmul.f32 %v4606_v8, %v625_v7 }
 0x127   : > { %v619_v12 = vsub.f32 1.5, %v618_v5 }
 0x128   : > { %v599_v6 = vsub.f32 1.5, %v598_v4  ;;  %v639_v21 = vadd.f32 %v4607_v18, %v632_v17 }
 0x129   : > { %v620_v20 = vmul.f32 %v4627_v58, %v619_v12 }
 0x12a   : > { %v600_v11 = vmul.f32 %v4629_v59, %v599_v6 }
 0x12b   : > { %v624_v27 = vsel %vm623_vm11, %v4627_v58, %v620_v20 }
 0x12c   : > { %v604_v13 = vsel %vm603_vm6, %v4629_v59, %v600_v11  ;;  %v628_v28 = vmul.f32 %v624_v27, %v5060_v23  ;;  %v679_v59 = vperm.slane %v677_v39, 0 }
 0x12d   : > { %v626_v14 = vmul.f32 %v604_v13, %v5062_v24  ;;  %v614_v24 = vsel %vm613_vm12, %v4625_v56, %v610_v25 }
 0x12e   : > { %v627_v29 = vmul.f32 %v614_v24, %v5050_v15  ;;  %v635_v30 = vmul.f32 %v4606_v8, %v628_v28 }
 0x12f   : > { %v633_v16 = vmul.f32 %v4606_v8, %v626_v14 }
 0x130   : > { %v634_v31 = vmul.f32 %v4606_v8, %v627_v29  ;;  %v642_v32 = vadd.f32 %v4607_v18, %v635_v30 }
 0x131   : > { %v640_v22 = vadd.f32 %v4607_v18, %v633_v16 }
 0x132   : > { %v641_v33 = vadd.f32 %v4607_v18, %v634_v31 }
 0x133   : > { %v643_v26 = vpack.c.bf16 %v640_v22, %v639_v21 }
 0x134   : > { %v644_v34 = vpack.c.bf16 %v642_v32, %v641_v33  ;;  %v5252_v32 = vld [vmem:[%s5035_s28] ss:$0 sm:$0xff] }
 0x135   : > { %821 = vmatmul.bf16.vlgmr.msra.gmra.mxu0 %v643_v26  ;;  %840 = vmatmul.bf16.vlgmr.msra.gmra.mxu1 %v643_v26 }
 0x136   : > { %859 = vmatmul.bf16.vlgmr.msra.gmra.mxu2 %v643_v26 }
 0x145   : > { %826 = vmatmul.bf16.gmra.mxu0 %v644_v34  ;;  %845 = vmatmul.bf16.gmra.mxu1 %v644_v34 }
 0x146   : > { %864 = vmatmul.bf16.gmra.mxu2 %v644_v34 }
 0x1b2   : > { %v841_v35 = vpop.f32.mrf.mxu1  ;;  %v822_v23 = vpop.f32.mrf.mxu0 }
 0x1b3   : > { %v842_v47 = vadd.f32 %v841_v35, %v680_v41  ;;  %v823_v4 = vadd.f32 %v822_v23, %v679_v59 }
 0x1b5   : > { %v874_v54 = vpack.c.bf16 %v842_v47, %v842_v47  ;;  %v870_v13 = vpack.c.bf16 %v823_v4, %v823_v4 }
 0x1b7   : > { %v919_v0 = vunpack.c.l.b16 %v874_v54  ;;  %v909_v20 = vunpack.c.l.b16 %v870_v13 }
 0x1b9   : > { %v860_v36 = vpop.f32.mrf.mxu2 }
 0x1ba   : > { %v843_v37 = vpop.f32.mrf.mxu1  ;;  %v824_v49 = vpop.f32.mrf.mxu0  ;;  %v861_v1 = vadd.f32 %v860_v36, %v681_v50 }
 0x1bb   : > { %v844_v44 = vadd.f32 %v843_v37, %v680_v41  ;;  %v825_v2 = vadd.f32 %v824_v49, %v679_v59 }
 0x1bc   : > { %v878_v9 = vpack.c.bf16 %v861_v1, %v861_v1  ;;  %v4453_v1 = vld [vmem:[%s6359_s6] sm:$0xff] }
 0x1bd   : > { %v875_v51 = vpack.c.bf16 %v844_v44, %v844_v44  ;;  %v871_v11 = vpack.c.bf16 %v825_v2, %v825_v2 }
 0x1be   : > { %v1007_v19 = vunpack.c.l.b16 %v878_v9 }
 0x1bf   : > { %v920_v60 = vunpack.c.l.b16 %v875_v51  ;;  %v910_v16 = vunpack.c.l.b16 %v871_v11 }
 0x1c1   : > { %v862_v38 = vpop.f32.mrf.mxu2  ;;  %v5233_v5 = vpack.c.b16 %v920_v60, %v919_v0  ;;  %v5242_v22 = vpack.c.b16 %v910_v16, %v909_v20  ;;  %v4454_v0 = vld [vmem:[%s6359_s6 + $0x8] sm:$0xff] }
 0x1c2   : > { %v846_v40 = vpop.f32.mrf.mxu1  ;;  %v863_v61 = vadd.f32 %v862_v38, %v681_v50  ;;  %v827_v8 = vpop.f32.mrf.mxu0  ;;  %4558 = vmatpush.bf16.msrb.mxu1 %v4454_v0  ;;  %1066 = vmatpush.bf16.msrb.mxu0 %v4454_v0 }
 0x1c3   : > { %v847_v15 = vadd.f32 %v846_v40, %v680_v41  ;;  %v933_v18 = vsel %vm925_vm13, %v5233_v5, 0  ;;  %v828_v27 = vadd.f32 %v827_v8, %v679_v59 }
 0x1c4   : > { %v879_v6 = vpack.c.bf16 %v863_v61, %v863_v61 }
 0x1c5   : > { %v876_v45 = vpack.c.bf16 %v847_v15, %v847_v15  ;;  %v872_v28 = vpack.c.bf16 %v828_v27, %v828_v27 }
 0x1c6   : > { %v1008_v14 = vunpack.c.l.b16 %v879_v6  ;;  %4559 = vmatpush.bf16.msrb.mxu1 %v4453_v1  ;;  %1067 = vmatpush.bf16.msrb.mxu0 %v4453_v1 }
 0x1c7   : > { %v921_v52 = vunpack.c.l.b16 %v876_v45  ;;  %v911_v30 = vunpack.c.l.b16 %v872_v28 }
 0x1c8   : > { %v5240_v21 = vpack.c.b16 %v1008_v14, %v1007_v19 }
 0x1c9   : > { %v865_v42 = vpop.f32.mrf.mxu2 }
 0x1ca   : > { %v848_v43 = vpop.f32.mrf.mxu1  ;;  %v866_v55 = vadd.f32 %v865_v42, %v681_v50  ;;  %v829_v25 = vpop.f32.mrf.mxu0 }
 0x1cb   : > { %v849_v46 = vadd.f32 %v848_v43, %v680_v41  ;;  %v830_v26 = vadd.f32 %v829_v25, %v679_v59 }
 0x1cc   : > { %v880_v3 = vpack.c.bf16 %v866_v55, %v866_v55 }
 0x1cd   : > { %v877_v48 = vpack.c.bf16 %v849_v46, %v849_v46  ;;  %v873_v24 = vpack.c.bf16 %v830_v26, %v830_v26 }
 0x1ce   : > { %v1009_v12 = vunpack.c.l.b16 %v880_v3 }
 0x1cf   : > { %v922_v53 = vunpack.c.l.b16 %v877_v48  ;;  %v912_v29 = vunpack.c.l.b16 %v873_v24 }
 0x1d1   : > { %v5229_v56 = vpack.c.b16 %v922_v53, %v921_v52  ;;  %v867_v57 = vpop.f32.mrf.mxu2  ;;  %v5247_v31 = vpack.c.b16 %v912_v29, %v911_v30 }
 0x1d2   : > { %v868_v58 = vadd.f32 %v867_v57, %v681_v50 }
 0x1d3   : > { %v936_v62 = vsel %vm925_vm13, %v5229_v56, 0 }
 0x1d4   : > { %v881_v63 = vpack.c.bf16 %v868_v58, %v868_v58  ;;  %944 = vmatpush.bf16.xpose.msra.mxu3 %v936_v62 }
 0x1d6   : > { %v1010_v7 = vunpack.c.l.b16 %v881_v63 }
 0x1d8   : > { %v5235_v17 = vpack.c.b16 %v1010_v7, %v1009_v12 }
 0x1dc   : > { %945 = vmatpush.bf16.xpose.msra.mxu3 %v933_v18 }
 0x1e3   : > { %3855 = vmatmul.msk.bf16.vlgmr.msra.gmra.mxu3 %vm925_vm13, %v5242_v22 }
 0x1e4   : > { %1027 = vmatpush.bf16.msrb.mxu3 %v5235_v17 }
 0x1e8   : > { %1028 = vmatpush.bf16.msrb.mxu3 %v5240_v21 }
 0x1f3   : > { %3856 = vmatmul.msk.bf16.gmra.mxu3 %vm925_vm13, %v5247_v31 }
 0x266   : > { %v947_v33 = vpop.f32.mrf.mxu3 }
 0x267   : > { %v948_v34 = vadd.f32 %v5252_v32, %v947_v33 }
 0x269   : > { %v957_v35 = vsel %vm925_vm13, %v948_v34, -inf }
 0x26a   : > { %958 = vmax.xlane.f32.xlu2 %v957_v35 }
 0x26e   : > { %v949_v36 = vpop.f32.mrf.mxu3 }
 0x26f   : > { %v950_v37 = vadd.f32 %v5252_v32, %v949_v36 }
 0x271   : > { %v960_v38 = vsel %vm925_vm13, %v950_v37, -inf }
 0x272   : > { %961 = vmax.xlane.f32.xlu0 %v960_v38 }
 0x276   : > { %v952_v39 = vpop.f32.mrf.mxu3 }
 0x277   : > { %v953_v40 = vadd.f32 %v5252_v32, %v952_v39 }
 0x279   : > { %v963_v23 = vsel %vm925_vm13, %v953_v40, -inf }
 0x27a   : > { %964 = vmax.xlane.f32.xlu1 %v963_v23 }
 0x27e   : > { %v954_v41 = vpop.f32.mrf.mxu3 }
 0x27f   : > { %v955_v15 = vadd.f32 %v5252_v32, %v954_v41 }
 0x281   : > { %v966_v42 = vsel %vm925_vm13, %v955_v15, -inf }
 0x282   : > { %967 = vmax.xlane.f32.xlu2 %v966_v42 }
 0x2dd   : > { %v959_v43 = vpop.xlane.xlu2 %958 }
 0x2de   : > { %v969_v44 = vsub.f32 %v948_v34, %v959_v43 }
 0x2e0   : > { %v973_v45 = vmul.f32 1.442695, %v969_v44 }
 0x2e2   : > { %4630 = vpow2.f32 %v973_v45 }
 0x2e5   : > { %v962_v46 = vpop.xlane.xlu0 %961 }
 0x2e6   : > { %v970_v47 = vsub.f32 %v950_v37, %v962_v46 }
 0x2e8   : > { %v4631_v48 = vpop.eup %4630  ;;  %v975_v49 = vmul.f32 1.442695, %v970_v47 }
 0x2e9   : > { %v981_v50 = vsel %vm925_vm13, %v4631_v48, 0.0 }
 0x2ea   : > { %4632 = vpow2.f32 %v975_v49  ;;  %982 = vadd.xlane.f32.xlu0 %v981_v50 }
 0x2ed   : > { %v965_v51 = vpop.xlane.xlu1 %964 }
 0x2ee   : > { %v971_v52 = vsub.f32 %v953_v40, %v965_v51 }
 0x2f0   : > { %v4633_v53 = vpop.eup %4632  ;;  %v977_v54 = vmul.f32 1.442695, %v971_v52 }
 0x2f1   : > { %v984_v55 = vsel %vm925_vm13, %v4633_v53, 0.0 }
 0x2f2   : > { %4634 = vpow2.f32 %v977_v54  ;;  %985 = vadd.xlane.f32.xlu1 %v984_v55 }
 0x2f5   : > { %v968_v57 = vpop.xlane.xlu2 %967 }
 0x2f6   : > { %v972_v58 = vsub.f32 %v955_v15, %v968_v57 }
 0x2f8   : > { %v4635_v59 = vpop.eup %4634  ;;  %v979_v60 = vmul.f32 1.442695, %v972_v58 }
 0x2f9   : > { %v987_v61 = vsel %vm925_vm13, %v4635_v59, 0.0 }
 0x2fa   : > { %4636 = vpow2.f32 %v979_v60  ;;  %988 = vadd.xlane.f32.xlu2 %v987_v61 }
 0x300   : > { %v4637_v62 = vpop.eup %4636 }
 0x301   : > { %v990_v63 = vsel %vm925_vm13, %v4637_v62, 0.0 }
 0x302   : > { %991 = vadd.xlane.f32.xlu0 %v990_v63 }
 0x30b   : > { %1089 = vrot.lane.b32.xlu1 %v5229_v56, %s4892_s19 }
 0x312   : > { %1087 = vrot.lane.b32.xlu2 %v5233_v5, %s4892_s19 }
 0x316   : > { %1083 = vrot.lane.b32.xlu0 %v5242_v22, %s4892_s19 }
 0x31a   : > { %1085 = vrot.lane.b32.xlu2 %v5247_v31, %s4892_s19 }
 0x35d   : > { %v983_v2 = vpop.xlane.xlu0 %982 }
 0x35e   : > { %4638 = vrcp.f32 %v983_v2 }
 0x364   : > { %v4639_v4 = vpop.eup %4638 }
 0x365   : > { %v986_v3 = vpop.xlane.xlu1 %985  ;;  %v997_v7 = vmul.f32 %v4639_v4, %v4631_v48 }
 0x366   : > { %4640 = vrcp.f32 %v986_v3 }
 0x36c   : > { %v4641_v6 = vpop.eup %4640 }
 0x36d   : > { %v998_v8 = vmul.f32 %v4641_v6, %v4633_v53  ;;  %v989_v11 = vpop.xlane.xlu2 %988 }
 0x36e   : > { %4642 = vrcp.f32 %v989_v11 }
 0x36f   : > { %v1001_v9 = vpack.c.bf16 %v998_v8, %v997_v7  ;;  %v4456_v8 = vld [vmem:[%s6359_s6 + $0x18] sm:$0xff] }
 0x370   : > { %1225 = vmatpush.bf16.msra.mxu3 %v4456_v8 }
 0x371   : > { %3857 = vmatmul.msk.bf16.vlgmr.msrb.gmra.mxu3 %vm925_vm13, %v1001_v9  ;;  %v4455_v9 = vld [vmem:[%s6359_s6 + $0x10] sm:$0xff] }
 0x374   : > { %v4643_v13 = vpop.eup %4642  ;;  %1226 = vmatpush.bf16.msra.mxu3 %v4455_v9 }
 0x375   : > { %v992_v12 = vpop.xlane.xlu0 %991  ;;  %v999_v19 = vmul.f32 %v4643_v13, %v4635_v59  ;;  %v1088_v26 = vpop.permute.xlu2 %1087 }
 0x376   : > { %4644 = vrcp.f32 %v992_v12  ;;  %v1098_v27 = vsel %vm925_vm13, %v1088_v26, 0 }
 0x37c   : > { %v4645_v14 = vpop.eup %4644 }
 0x37d   : > { %v1090_v18 = vpop.permute.xlu1 %1089  ;;  %v1000_v16 = vmul.f32 %v4645_v14, %v4637_v62  ;;  %v1086_v36 = vpop.permute.xlu2 %1085 }
 0x37e   : > { %v1101_v20 = vsel %vm925_vm13, %v1090_v18, 0 }
 0x37f   : > { %1109 = vmatpush.bf16.xpose.msra.mxu1 %v1101_v20  ;;  %v1002_v25 = vpack.c.bf16 %v1000_v16, %v999_v19 }
 0x381   : > { %3858 = vmatmul.msk.bf16.gmra.mxu3 %vm925_vm13, %v1002_v25 }
 0x387   : > { %1110 = vmatpush.bf16.xpose.msra.mxu1 %v1098_v27 }
 0x388   : > { %v1084_v35 = vpop.permute.xlu0 %1083 }
 0x3f4   : > { %v1030_v24 = vpop.f32.mrf.mxu3 }
 0x3fc   : > { %v1032_v28 = vpop.f32.mrf.mxu3 }
 0x3fd   : > { %v1040_v29 = vpack.c.bf16 %v1032_v28, %v1030_v24 }
 0x3ff   : > { %3867 = vmatmul.msk.bf16.vlgmr.msrb.gmra.mxu0 %vm925_vm13, %v1040_v29 }
 0x404   : > { %v1035_v30 = vpop.f32.mrf.mxu3 }
 0x40c   : > { %v1037_v33 = vpop.f32.mrf.mxu3 }
 0x40d   : > { %v1041_v34 = vpack.c.bf16 %v1037_v33, %v1035_v30 }
 0x40f   : > { %3868 = vmatmul.msk.bf16.vlgmr.msrb.gmra.mxu1 %vm925_vm13, %v1041_v34 }
 0x41f   : > { %3869 = vmatmul.msk.bf16.vlgmr.msra.gmra.mxu1 %vm925_vm13, %v1084_v35 }
 0x42f   : > { %3870 = vmatmul.msk.bf16.gmra.mxu1 %vm925_vm13, %v1086_v36 }
 0x48c   : > { %v5288_v37 = vpop.f32.mrf.mxu1 }
 0x494   : > { %v5290_v38 = vpop.f32.mrf.mxu1 }
 0x49c   : > { %v1112_v39 = vpop.f32.mrf.mxu1 }
 0x49d   : > { %v1113_v40 = vadd.f32 %v5252_v32, %v1112_v39 }
 0x49f   : > { %v1122_v23 = vsel %vm925_vm13, %v1113_v40, -inf }
 0x4a0   : > { %1123 = vmax.xlane.f32.xlu1 %v1122_v23 }
 0x4a4   : > { %v1114_v41 = vpop.f32.mrf.mxu1 }
 0x4a5   : > { %v1115_v15 = vadd.f32 %v5252_v32, %v1114_v41  ;;  %v1069_v41 = vpop.f32.mrf.mxu0 }
 0x4a7   : > { %v1125_v42 = vsel %vm925_vm13, %v1115_v15, -inf }
 0x4a8   : > { %1126 = vmax.xlane.f32.xlu0 %v1125_v42 }
 0x4ac   : > { %v1117_v43 = vpop.f32.mrf.mxu1 }
 0x4ad   : > { %v1118_v44 = vadd.f32 %v5252_v32, %v1117_v43  ;;  %v5339_v43 = vpop.f32.mrf.mxu0 }
 0x4af   : > { %v1128_v45 = vsel %vm925_vm13, %v1118_v44, -inf }
 0x4b0   : > { %1129 = vmax.xlane.f32.xlu2 %v1128_v45 }
 0x4b4   : > { %v1119_v46 = vpop.f32.mrf.mxu1 }
 0x4b5   : > { %v1120_v47 = vadd.f32 %v5252_v32, %v1119_v46 }
 0x4b7   : > { %v1131_v48 = vsel %vm925_vm13, %v1120_v47, -inf }
 0x4b8   : > { %1132 = vmax.xlane.f32.xlu1 %v1131_v48 }
 0x4d1   : > { %1170 = vrot.lane.b32.xlu1 %v5235_v17, %s4892_s19 }
 0x4d9   : > { %1246 = vrot.lane.b32.xlu1 %v5233_v5, %s6378_s17 }
 0x4e1   : > { %1242 = vrot.lane.b32.xlu1 %v5242_v22, %s6378_s17 }
 0x4e9   : > { %1244 = vrot.lane.b32.xlu1 %v5247_v31, %s6378_s17 }
 0x513   : > { %v1124_v49 = vpop.xlane.xlu1 %1123 }
 0x514   : > { %v1134_v50 = vsub.f32 %v1113_v40, %v1124_v49 }
 0x516   : > { %v1138_v51 = vmul.f32 1.442695, %v1134_v50 }
 0x518   : > { %4646 = vpow2.f32 %v1138_v51 }
 0x51b   : > { %v1127_v52 = vpop.xlane.xlu0 %1126 }
 0x51c   : > { %v1135_v53 = vsub.f32 %v1115_v15, %v1127_v52 }
 0x51e   : > { %v4647_v54 = vpop.eup %4646  ;;  %v1140_v55 = vmul.f32 1.442695, %v1135_v53 }
 0x51f   : > { %v1146_v57 = vsel %vm925_vm13, %v4647_v54, 0.0 }
 0x520   : > { %4648 = vpow2.f32 %v1140_v55  ;;  %1147 = vadd.xlane.f32.xlu0 %v1146_v57 }
 0x523   : > { %v1130_v58 = vpop.xlane.xlu2 %1129 }
 0x524   : > { %v1136_v59 = vsub.f32 %v1118_v44, %v1130_v58 }
 0x526   : > { %v4649_v60 = vpop.eup %4648  ;;  %v1142_v61 = vmul.f32 1.442695, %v1136_v59 }
 0x527   : > { %v1149_v62 = vsel %vm925_vm13, %v4649_v60, 0.0 }
 0x528   : > { %4650 = vpow2.f32 %v1142_v61  ;;  %1150 = vadd.xlane.f32.xlu2 %v1149_v62  ;;  %v5358_v62 = vld [vmem:[%s6360_s7] ss:$0 sm:$0xff] }
 0x52b   : > { %v1133_v63 = vpop.xlane.xlu1 %1132 }
 0x52c   : > { %v1137_v0 = vsub.f32 %v1120_v47, %v1133_v63 }
 0x52e   : > { %v4651_v1 = vpop.eup %4650  ;;  %v1144_v2 = vmul.f32 1.442695, %v1137_v0 }
 0x52f   : > { %v1152_v3 = vsel %vm925_vm13, %v4651_v1, 0.0 }
 0x530   : > { %4652 = vpow2.f32 %v1144_v2  ;;  %1153 = vadd.xlane.f32.xlu2 %v1152_v3 }
 0x534   : > { %1168 = vrot.lane.b32.xlu0 %v5240_v21, %s4892_s19 }
 0x536   : > { %v4653_v4 = vpop.eup %4652 }
 0x537   : > { %v1155_v6 = vsel %vm925_vm13, %v4653_v4, 0.0 }
 0x538   : > { %1156 = vadd.xlane.f32.xlu2 %v1155_v6 }
 0x53c   : > { %1407 = vrot.lane.b32.xlu0 %v5229_v56, %s6376_s26 }
 0x543   : > { %v1171_v7 = vpop.permute.xlu1 %1170 }
 0x544   : > { %1405 = vrot.lane.b32.xlu0 %v5233_v5, %s6376_s26  ;;  %1186 = vmatpush.bf16.msrb.mxu2 %v1171_v7 }
 0x54b   : > { %v1247_v35 = vpop.permute.xlu1 %1246 }
 0x54c   : > { %1401 = vrot.lane.b32.xlu0 %v5242_v22, %s6376_s26  ;;  %v1257_v36 = vsel %vm925_vm13, %v1247_v35, 0 }
 0x550   : > { %1248 = vrot.lane.b32.xlu2 %v5229_v56, %s6378_s17 }
 0x553   : > { %v1243_v39 = vpop.permute.xlu1 %1242 }
 0x558   : > { %1403 = vrot.lane.b32.xlu2 %v5247_v31, %s6376_s26 }
 0x55b   : > { %v1245_v40 = vpop.permute.xlu1 %1244 }
 0x593   : > { %v1148_v5 = vpop.xlane.xlu0 %1147 }
 0x59b   : > { %v1151_v11 = vpop.xlane.xlu2 %1150 }
 0x59c   : > { %4654 = vrcp.f32 %v1151_v11 }
 0x59d   : > { %4656 = vrcp.f32 %v1148_v5 }
 0x5a2   : > { %v4655_v22 = vpop.eup %4654 }
 0x5a3   : > { %v4657_v12 = vpop.eup %4656  ;;  %v1154_v56 = vpop.xlane.xlu2 %1153  ;;  %v1163_v13 = vmul.f32 %v4655_v22, %v4649_v60  ;;  %v1081_v22 = vadd.f32 %v5358_v62, %v5288_v37 }
 0x5a4   : > { %v1162_v14 = vmul.f32 %v4657_v12, %v4647_v54 }
 0x5a6   : > { %v1169_v31 = vpop.permute.xlu0 %1168  ;;  %v1166_v18 = vpack.c.bf16 %v1163_v13, %v1162_v14 }
 0x5a7   : > { %1187 = vmatpush.bf16.msrb.mxu2 %v1169_v31 }
 0x5aa   : > { %3871 = vmatmul.msk.bf16.vlgmr.msrb.gmra.mxu2 %vm925_vm13, %v1166_v18 }
 0x5ab   : > { %v1157_v19 = vpop.xlane.xlu2 %1156 }
 0x5ac   : > { %4658 = vrcp.f32 %v1157_v19 }
 0x5ad   : > { %4660 = vrcp.f32 %v1154_v56 }
 0x5ae   : > { %v1408_v16 = vpop.permute.xlu0 %1407 }
 0x5af   : > { %v1419_v20 = vsel %vm925_vm13, %v1408_v16, 0 }
 0x5b0   : > { %1427 = vmatpush.bf16.xpose.msrb.mxu3 %v1419_v20 }
 0x5b2   : > { %v4659_v25 = vpop.eup %4658 }
 0x5b3   : > { %v4661_v26 = vpop.eup %4660  ;;  %v1249_v27 = vpop.permute.xlu2 %1248  ;;  %v1165_v28 = vmul.f32 %v4659_v25, %v4653_v4 }
 0x5b4   : > { %v1260_v24 = vsel %vm925_vm13, %v1249_v27, 0  ;;  %v1164_v30 = vmul.f32 %v4661_v26, %v4651_v1  ;;  %v1079_v1 = vadd.f32 %v5358_v62, %v1069_v41 }
 0x5b5   : > { %1268 = vmatpush.bf16.xpose.msra.mxu0 %v1260_v24 }
 0x5b6   : > { %v1406_v29 = vpop.permute.xlu0 %1405  ;;  %v1167_v34 = vpack.c.bf16 %v1165_v28, %v1164_v30 }
 0x5b7   : > { %v1416_v33 = vsel %vm925_vm13, %v1406_v29, 0 }
 0x5b8   : > { %1428 = vmatpush.bf16.xpose.msrb.mxu3 %v1416_v33 }
 0x5ba   : > { %3872 = vmatmul.msk.bf16.gmra.mxu2 %vm925_vm13, %v1167_v34 }
 0x5bb   : > { %v1404_v61 = vpop.permute.xlu2 %1403 }
 0x5bd   : > { %1269 = vmatpush.bf16.xpose.msra.mxu0 %v1257_v36 }
 0x5be   : > { %v1402_v57 = vpop.permute.xlu0 %1401 }
 0x5c4   : > { %3883 = vmatmul.msk.bf16.vlgmr.msra.gmra.mxu0 %vm925_vm13, %v1243_v39 }
 0x5d4   : > { %3884 = vmatmul.msk.bf16.gmra.mxu0 %vm925_vm13, %v1245_v40 }
 0x62d   : > { %v1189_v23 = vpop.f32.mrf.mxu2 }
 0x635   : > { %v1191_v15 = vpop.f32.mrf.mxu2 }
 0x636   : > { %v1199_v42 = vpack.c.bf16 %v1191_v15, %v1189_v23 }
 0x638   : > { %3881 = vmatmul.msk.bf16.vlgmr.msra.gmra.mxu3 %vm925_vm13, %v1199_v42 }
 0x63d   : > { %v1194_v44 = vpop.f32.mrf.mxu2 }
 0x641   : > { %v1271_v45 = vpop.f32.mrf.mxu0 }
 0x642   : > { %v1272_v46 = vadd.f32 %v5252_v32, %v1271_v45 }
 0x644   : > { %v1281_v47 = vsel %vm925_vm13, %v1272_v46, -inf }
 0x645   : > { %v1196_v48 = vpop.f32.mrf.mxu2  ;;  %1282 = vmax.xlane.f32.xlu0 %v1281_v47 }
 0x646   : > { %v1200_v49 = vpack.c.bf16 %v1196_v48, %v1194_v44 }
 0x648   : > { %3882 = vmatmul.msk.bf16.gmra.mxu3 %vm925_vm13, %v1200_v49 }
 0x649   : > { %v1273_v50 = vpop.f32.mrf.mxu0 }
 0x64a   : > { %v1274_v51 = vadd.f32 %v5252_v32, %v1273_v50 }
 0x64c   : > { %v1284_v52 = vsel %vm925_vm13, %v1274_v51, -inf }
 0x64d   : > { %1285 = vmax.xlane.f32.xlu1 %v1284_v52 }
 0x651   : > { %v1276_v53 = vpop.f32.mrf.mxu0 }
 0x652   : > { %v1277_v54 = vadd.f32 %v5252_v32, %v1276_v53 }
 0x654   : > { %v1287_v55 = vsel %vm925_vm13, %v1277_v54, -inf }
 0x655   : > { %1288 = vmax.xlane.f32.xlu1 %v1287_v55 }
 0x658   : > { %3897 = vmatmul.msk.bf16.vlgmr.msrb.gmra.mxu3 %vm925_vm13, %v1402_v57 }
 0x659   : > { %v1278_v58 = vpop.f32.mrf.mxu0 }
 0x65a   : > { %v5350_v59 = vadd.f32 %v5252_v32, %v1278_v58 }
 0x65c   : > { %v1290_v60 = vsel %vm925_vm13, %v5350_v59, -inf }
 0x65d   : > { %1291 = vmax.xlane.f32.xlu2 %v1290_v60 }
 0x668   : > { %3898 = vmatmul.msk.bf16.gmra.mxu3 %vm925_vm13, %v1404_v61 }
 0x6b8   : > { %v1283_v63 = vpop.xlane.xlu0 %1282 }
 0x6b9   : > { %v1293_v0 = vsub.f32 %v1272_v46, %v1283_v63 }
 0x6bb   : > { %v1297_v2 = vmul.f32 1.442695, %v1293_v0  ;;  %v1228_v3 = vpop.f32.mrf.mxu3 }
 0x6bc   : > { %v5361_v4 = vadd.f32 %v1228_v3, %v1079_v1 }
 0x6bd   : > { %4662 = vpow2.f32 %v1297_v2 }
 0x6c0   : > { %v1286_v6 = vpop.xlane.xlu1 %1285 }
 0x6c1   : > { %v1294_v7 = vsub.f32 %v1274_v51, %v1286_v6 }
 0x6c3   : > { %v5363_v8 = vpop.eup %4662  ;;  %v1299_v9 = vmul.f32 1.442695, %v1294_v7  ;;  %v5365_v5 = vpop.f32.mrf.mxu3 }
 0x6c4   : > { %v1305_v11 = vsel %vm925_vm13, %v5363_v8, 0.0 }
 0x6c5   : > { %4664 = vpow2.f32 %v1299_v9  ;;  %1306 = vadd.xlane.f32.xlu2 %v1305_v11 }
 0x6c8   : > { %v1289_v33 = vpop.xlane.xlu1 %1288 }
 0x6c9   : > { %v1295_v34 = vsub.f32 %v1277_v54, %v1289_v33  ;;  %v4457_v33 = vld [vmem:[%s6359_s6 + $0x20] sm:$0xff] }
 0x6cb   : > { %v5371_v12 = vpop.eup %4664  ;;  %v1233_v56 = vpop.f32.mrf.mxu3  ;;  %v1301_v35 = vmul.f32 1.442695, %v1295_v34 }
 0x6cc   : > { %v5373_v13 = vadd.f32 %v1233_v56, %v1081_v22  ;;  %v1308_v14 = vsel %vm925_vm13, %v5371_v12, 0.0 }
 0x6cd   : > { %1309 = vadd.xlane.f32.xlu0 %v1308_v14  ;;  %4666 = vpow2.f32 %v1301_v35 }
 0x6d0   : > { %v1292_v39 = vpop.xlane.xlu2 %1291 }
 0x6d1   : > { %v1296_v46 = vsub.f32 %v5350_v59, %v1292_v39 }
 0x6d3   : > { %v5377_v31 = vpop.f32.mrf.mxu3  ;;  %v5396_v36 = vpop.eup %4666  ;;  %v1303_v49 = vmul.f32 1.442695, %v1296_v46 }
 0x6db   : > { %v1430_v18 = vpop.f32.mrf.mxu3 }
 0x6dc   : > { %v1431_v19 = vadd.f32 %v5252_v32, %v1430_v18 }
 0x6de   : > { %v1440_v16 = vsel %vm925_vm13, %v1431_v19, -inf }
 0x6df   : > { %1441 = vmax.xlane.f32.xlu2 %v1440_v16 }
 0x6e3   : > { %v1432_v20 = vpop.f32.mrf.mxu3 }
 0x6e4   : > { %v1433_v37 = vadd.f32 %v5252_v32, %v1432_v20 }
 0x6e6   : > { %v1443_v25 = vsel %vm925_vm13, %v1433_v37, -inf }
 0x6e7   : > { %1444 = vmax.xlane.f32.xlu0 %v1443_v25 }
 0x6eb   : > { %v1435_v26 = vpop.f32.mrf.mxu3 }
 0x6ec   : > { %v5384_v27 = vadd.f32 %v5252_v32, %v1435_v26 }
 0x6ee   : > { %v1446_v24 = vsel %vm925_vm13, %v5384_v27, -inf }
 0x6ef   : > { %1447 = vmax.xlane.f32.xlu0 %v1446_v24 }
 0x6f3   : > { %v1437_v28 = vpop.f32.mrf.mxu3 }
 0x6f4   : > { %v1438_v29 = vadd.f32 %v5252_v32, %v1437_v28  ;;  %v1311_v32 = vsel %vm925_vm13, %v5396_v36, 0.0 }
 0x6f6   : > { %v1449_v30 = vsel %vm925_vm13, %v1438_v29, -inf }
 0x6f7   : > { %1327 = vrot.lane.b32.xlu2 %v5240_v21, %s6378_s17  ;;  %1450 = vmax.xlane.f32.xlu1 %v1449_v30 }
 0x703   : > { %1488 = vrot.lane.b32.xlu0 %v5235_v17, %s6376_s26 }
 0x710   : > { %1329 = vrot.lane.b32.xlu1 %v5235_v17, %s6378_s17 }
 0x738   : > { %v1307_v40 = vpop.xlane.xlu2 %1306 }
 0x73a   : > { %1312 = vadd.xlane.f32.xlu1 %v1311_v32 }
 0x740   : > { %v1310_v23 = vpop.xlane.xlu0 %1309 }
 0x752   : > { %v1442_v41 = vpop.xlane.xlu2 %1441 }
 0x753   : > { %v1452_v15 = vsub.f32 %v1431_v19, %v1442_v41 }
 0x755   : > { %v1456_v42 = vmul.f32 1.442695, %v1452_v15 }
 0x757   : > { %4668 = vpow2.f32 %v1456_v42 }
 0x75a   : > { %v1445_v44 = vpop.xlane.xlu0 %1444  ;;  %v1328_v6 = vpop.permute.xlu2 %1327 }
 0x75b   : > { %v1453_v45 = vsub.f32 %v1433_v37, %v1445_v44  ;;  %v4460_v44 = vld [vmem:[%s6359_s6 + $0x38] sm:$0xff] }
 0x75d   : > { %v4669_v17 = vpop.eup %4668  ;;  %v1458_v47 = vmul.f32 1.442695, %v1453_v45  ;;  %v4459_v45 = vld [vmem:[%s6359_s6 + $0x30] sm:$0xff] }
 0x75e   : > { %v1464_v48 = vsel %vm925_vm13, %v4669_v17, 0.0 }
 0x75f   : > { %4670 = vpow2.f32 %v1458_v47  ;;  %1465 = vadd.xlane.f32.xlu2 %v1464_v48 }
 0x760   : > { %4672 = vpow2.f32 %v1303_v49 }
 0x762   : > { %v1448_v55 = vpop.xlane.xlu0 %1447 }
 0x763   : > { %v1454_v9 = vsub.f32 %v5384_v27, %v1448_v55  ;;  %v4458_v27 = vld [vmem:[%s6359_s6 + $0x28] sm:$0xff] }
 0x764   : > { %1384 = vmatpush.bf16.msra.mxu2 %v4458_v27 }
 0x765   : > { %v4671_v50 = vpop.eup %4670  ;;  %v1460_v11 = vmul.f32 1.442695, %v1454_v9 }
 0x766   : > { %v1467_v51 = vsel %vm925_vm13, %v4671_v50, 0.0  ;;  %v4673_v53 = vpop.eup %4672 }
 0x767   : > { %1468 = vadd.xlane.f32.xlu0 %v1467_v51  ;;  %v1314_v58 = vsel %vm925_vm13, %v4673_v53, 0.0 }
 0x768   : > { %1385 = vmatpush.bf16.msra.mxu2 %v4457_v33 }
 0x76a   : > { %v1451_v52 = vpop.xlane.xlu1 %1450 }
 0x76b   : > { %v1455_v54 = vsub.f32 %v1438_v29, %v1451_v52 }
 0x76d   : > { %v1462_v57 = vmul.f32 1.442695, %v1455_v54 }
 0x76f   : > { %4674 = vpow2.f32 %v1462_v57  ;;  %1315 = vadd.xlane.f32.xlu0 %v1314_v58 }
 0x770   : > { %4676 = vrcp.f32 %v1310_v23 }
 0x771   : > { %4678 = vrcp.f32 %v1307_v40 }
 0x772   : > { %4680 = vpow2.f32 %v1460_v11 }
 0x775   : > { %v4675_v59 = vpop.eup %4674  ;;  %v1489_v60 = vpop.permute.xlu0 %1488 }
 0x776   : > { %1504 = vmatpush.bf16.msrb.mxu0 %v1489_v60  ;;  %v1473_v61 = vsel %vm925_vm13, %v4675_v59, 0.0  ;;  %v4677_v63 = vpop.eup %4676  ;;  %v4822_v60 = vld [vmem:[%s5040_s27] sm:$0xff] }
 0x777   : > { %1486 = vrot.lane.b32.xlu2 %v5240_v21, %s6376_s26  ;;  %1474 = vadd.xlane.f32.xlu1 %v1473_v61  ;;  %v4679_v1 = vpop.eup %4678  ;;  %v1322_v2 = vmul.f32 %v4677_v63, %v5371_v12 }
 0x778   : > { %v1321_v3 = vmul.f32 %v4679_v1, %v5363_v8  ;;  %v4681_v21 = vpop.eup %4680 }
 0x779   : > { %v1470_v22 = vsel %vm925_vm13, %v4681_v21, 0.0 }
 0x77a   : > { %v1325_v7 = vpack.c.bf16 %v1322_v2, %v1321_v3 }
 0x782   : > { %v1330_v0 = vpop.permute.xlu1 %1329 }
 0x783   : > { %1345 = vmatpush.bf16.msrb.mxu1 %v1330_v0 }
 0x787   : > { %1346 = vmatpush.bf16.msrb.mxu1 %v1328_v6  ;;  %v4823_v6 = vld [vmem:[%s5040_s27 + $0x8] sm:$0xff] }
 0x78a   : > { %3885 = vmatmul.msk.bf16.vlgmr.msrb.gmra.mxu1 %vm925_vm13, %v1325_v7 }
 0x78b   : > { %1543 = vmatpush.bf16.msra.mxu1 %v4460_v44  ;;  %v4473_v44 = vld [vmem:[%s6363_s10 + $0x64] sm:$0xf] }
 0x78f   : > { %1544 = vmatpush.bf16.msra.mxu1 %v4459_v45 }
 0x7a0   : > { %1471 = vadd.xlane.f32.xlu2 %v1470_v22 }
 0x7ad   : > { %v1313_v8 = vpop.xlane.xlu1 %1312 }
 0x7d2   : > { %v1466_v56 = vpop.xlane.xlu2 %1465 }
 0x7d3   : > { %4682 = vrcp.f32 %v1466_v56 }
 0x7d9   : > { %v4683_v12 = vpop.eup %4682 }
 0x7da   : > { %v1487_v14 = vpop.permute.xlu2 %1486  ;;  %v1469_v18 = vpop.xlane.xlu0 %1468  ;;  %v1480_v16 = vmul.f32 %v4683_v12, %v4669_v17 }
 0x7db   : > { %4684 = vrcp.f32 %v1469_v18  ;;  %1505 = vmatpush.bf16.msrb.mxu0 %v1487_v14 }
 0x7dc   : > { %4686 = vrcp.f32 %v1313_v8 }
 0x7e1   : > { %v4685_v19 = vpop.eup %4684 }
 0x7e2   : > { %v1481_v20 = vmul.f32 %v4685_v19, %v4671_v50  ;;  %v1316_v37 = vpop.xlane.xlu0 %1315  ;;  %v4687_v26 = vpop.eup %4686  ;;  %v4825_v19 = vld [vmem:[%s5040_s27 + $0x18] sm:$0xff] }
 0x7e3   : > { %4688 = vrcp.f32 %v1316_v37  ;;  %v1323_v28 = vmul.f32 %v4687_v26, %v5396_v36 }
 0x7e4   : > { %v1484_v25 = vpack.c.bf16 %v1481_v20, %v1480_v16 }
 0x7e6   : > { %3899 = vmatmul.msk.bf16.vlgmr.msrb.gmra.mxu0 %vm925_vm13, %v1484_v25 }
 0x7e9   : > { %v4689_v24 = vpop.eup %4688 }
 0x7ea   : > { %v1324_v29 = vmul.f32 %v4689_v24, %v4673_v53  ;;  %v1475_v35 = vpop.xlane.xlu1 %1474 }
 0x7eb   : > { %4690 = vrcp.f32 %v1475_v35 }
 0x7ec   : > { %v1326_v30 = vpack.c.bf16 %v1324_v29, %v1323_v28 }
 0x7ee   : > { %3886 = vmatmul.msk.bf16.gmra.mxu1 %vm925_vm13, %v1326_v30 }
 0x7f1   : > { %v4691_v23 = vpop.eup %4690 }
 0x7f2   : > { %v1483_v15 = vmul.f32 %v4691_v23, %v4675_v59  ;;  %v1080_v59 = vadd.f32 %v5358_v62, %v5339_v43 }
 0x7f4   : > { %v1239_v0 = vadd.f32 %v5365_v5, %v1080_v59  ;;  %v4824_v5 = vld [vmem:[%s5040_s27 + $0x10] sm:$0xff] }
 0x807   : > { %v1348_v34 = vpop.f32.mrf.mxu1 }
 0x80f   : > { %v1350_v32 = vpop.f32.mrf.mxu1 }
 0x810   : > { %v1358_v39 = vpack.c.bf16 %v1350_v32, %v1348_v34  ;;  %v3969_v32 = vld [vmem:[%s6363_s10 + $0x70] sm:$0xf] }
 0x812   : > { %3895 = vmatmul.msk.bf16.vlgmr.msra.gmra.mxu2 %vm925_vm13, %v1358_v39  ;;  %v4476_v39 = vld [vmem:[%s6363_s10 + $0x74] sm:$0xf0] }
 0x813   : > { %v1472_v40 = vpop.xlane.xlu2 %1471  ;;  %v3970_v23 = vor.u32 %v4476_v39, %v3969_v32 }
 0x814   : > { %4692 = vrcp.f32 %v1472_v40  ;;  %v4475_v40 = vld [vmem:[%s6363_s10 + $0x74] sm:$0xf] }
 0x815   : > { %1764 = vmatpush.bf16.msrb.mxu2 %v3970_v23 }
 0x81a   : > { %v4693_v36 = vpop.eup %4692 }
 0x81b   : > { %v1482_v41 = vmul.f32 %v4693_v36, %v4681_v21  ;;  %v1082_v21 = vadd.f32 %v5358_v62, %v5290_v38  ;;  %v3971_v36 = vld [vmem:[%s6363_s10 + $0x78] sm:$0xf0] }
 0x81d   : > { %v1485_v42 = vpack.c.bf16 %v1483_v15, %v1482_v41  ;;  %v1241_v14 = vadd.f32 %v5377_v31, %v1082_v21  ;;  %v3974_v41 = vor.u32 %v4475_v40, %v3971_v36  ;;  %v3961_v15 = vld [vmem:[%s6363_s10 + $0x60] sm:$0xf] }
 0x81f   : > { %3900 = vmatmul.msk.bf16.gmra.mxu0 %vm925_vm13, %v1485_v42  ;;  %1783 = vmatpush.bf16.msra.mxu3 %v3974_v41  ;;  %v4474_v42 = vld [vmem:[%s6363_s10 + $0x64] sm:$0xf0] }
 0x820   : > { %v3962_v45 = vor.u32 %v4474_v42, %v3961_v15 }
 0x822   : > { %1765 = vmatpush.bf16.msrb.mxu2 %v3962_v45 }
 0x863   : > { %v1507_v17 = vpop.f32.mrf.mxu0 }
 0x86b   : > { %v1353_v46 = vpop.f32.mrf.mxu1  ;;  %v1509_v47 = vpop.f32.mrf.mxu0 }
 0x86c   : > { %v1517_v48 = vpack.c.bf16 %v1509_v47, %v1507_v17  ;;  %v3963_v17 = vld [vmem:[%s6363_s10 + $0x68] sm:$0xf0]  ;;  %v3953_v47 = vld [vmem:[%s6363_s10 + $0x50] sm:$0xf] }
 0x86e   : > { %3909 = vmatmul.msk.bf16.vlgmr.msra.gmra.mxu1 %vm925_vm13, %v1517_v48  ;;  %v4472_v48 = vld [vmem:[%s6363_s10 + $0x54] sm:$0xf0] }
 0x873   : > { %v1355_v49 = vpop.f32.mrf.mxu1 }
 0x874   : > { %v1359_v50 = vpack.c.bf16 %v1355_v49, %v1353_v46  ;;  %v3966_v46 = vor.u32 %v4473_v44, %v3963_v17  ;;  %v4471_v49 = vld [vmem:[%s6363_s10 + $0x54] sm:$0xf] }
 0x876   : > { %3896 = vmatmul.msk.bf16.gmra.mxu2 %vm925_vm13, %v1359_v50  ;;  %1784 = vmatpush.bf16.msra.mxu3 %v3966_v46  ;;  %v3954_v50 = vor.u32 %v4472_v48, %v3953_v47  ;;  %v4609_v47 = vld [vmem:[%s6361_s8] ss:$0 sm:$0xff] }
 0x878   : > { %1766 = vmatpush.bf16.msrb.mxu2 %v3954_v50 }
 0x895   : > { %v1387_v54 = vpop.f32.mrf.mxu2 }
 0x896   : > { %v1397_v55 = vadd.f32 %v1387_v54, %v5361_v4  ;;  %v4470_v54 = vld [vmem:[%s6363_s10 + $0x44] sm:$0xf0] }
 0x89c   : > { %v1512_v51 = vpop.f32.mrf.mxu0 }
 0x89d   : > { %v1389_v63 = vpop.f32.mrf.mxu2 }
 0x89e   : > { %v1398_v1 = vadd.f32 %v1389_v63, %v1239_v0  ;;  %v4468_v63 = vld [vmem:[%s6363_s10 + $0x34] sm:$0xf0]  ;;  %v4467_v0 = vld [vmem:[%s6363_s10 + $0x34] sm:$0xf] }
 0x8a4   : > { %v1514_v52 = vpop.f32.mrf.mxu0 }
 0x8a5   : > { %v1518_v53 = vpack.c.bf16 %v1514_v52, %v1512_v51  ;;  %v3955_v51 = vld [vmem:[%s6363_s10 + $0x58] sm:$0xf0] }
 0x8a6   : > { %v3958_v52 = vor.u32 %v4471_v49, %v3955_v51 }
 0x8a7   : > { %3910 = vmatmul.msk.bf16.gmra.mxu1 %vm925_vm13, %v1518_v53  ;;  %v3945_v53 = vld [vmem:[%s6363_s10 + $0x40] sm:$0xf] }
 0x8a8   : > { %1785 = vmatpush.bf16.msra.mxu3 %v3958_v52  ;;  %v4610_v52 = vld [vmem:[%s6362_s9] ss:$0 sm:$0xff] }
 0x8eb   : > { %v1546_v57 = vpop.f32.mrf.mxu1 }
 0x8ec   : > { %v1556_v58 = vadd.f32 %v1546_v57, %v1397_v55  ;;  %v4469_v55 = vld [vmem:[%s6363_s10 + $0x44] sm:$0xf]  ;;  %v3946_v57 = vor.u32 %v4470_v54, %v3945_v53 }
 0x8ee   : > { %v5436_v61 = vadd.f32 %v4822_v60, %v1556_v58  ;;  %v3947_v58 = vld [vmem:[%s6363_s10 + $0x48] sm:$0xf0]  ;;  %1767 = vmatpush.bf16.msrb.mxu2 %v3946_v57  ;;  %v3937_v60 = vld [vmem:[%s6363_s10 + $0x30] sm:$0xf] }
 0x8ef   : > { %v3950_v59 = vor.u32 %v4469_v55, %v3947_v58 }
 0x8f0   : > { %1566 = vadd.xlane.f32.xlu1 %v5436_v61 }
 0x8f1   : > { %1786 = vmatpush.bf16.msra.mxu3 %v3950_v59 }
 0x8f3   : > { %v1548_v2 = vpop.f32.mrf.mxu1 }
 0x8f4   : > { %v1557_v3 = vadd.f32 %v1548_v2, %v1398_v1  ;;  %v3938_v1 = vor.u32 %v4468_v63, %v3937_v60  ;;  %v3939_v2 = vld [vmem:[%s6363_s10 + $0x38] sm:$0xf0] }
 0x8f6   : > { %v5441_v4 = vadd.f32 %v4823_v6, %v1557_v3  ;;  %v3942_v3 = vor.u32 %v4467_v0, %v3939_v2  ;;  %1768 = vmatpush.bf16.msrb.mxu2 %v3938_v1  ;;  %v3929_v6 = vld [vmem:[%s6363_s10 + $0x20] sm:$0xf] }
 0x8f8   : > { %1568 = vadd.xlane.f32.xlu0 %v5441_v4  ;;  %1787 = vmatpush.bf16.msra.mxu3 %v3942_v3 }
 0x8f9   : > { %v1392_v7 = vpop.f32.mrf.mxu2 }
 0x8fa   : > { %v1399_v43 = vadd.f32 %v1392_v7, %v5373_v13  ;;  %v4466_v7 = vld [vmem:[%s6363_s10 + $0x24] sm:$0xf0] }
 0x901   : > { %v1394_v56 = vpop.f32.mrf.mxu2 }
 0x902   : > { %v1400_v18 = vadd.f32 %v1394_v56, %v1241_v14  ;;  %v4464_v56 = vld [vmem:[%s6363_s10 + $0x14] sm:$0xf0]  ;;  %v4463_v14 = vld [vmem:[%s6363_s10 + $0x14] sm:$0xf] }
 0x924   : > { %v1551_v9 = vpop.f32.mrf.mxu1 }
 0x925   : > { %v1558_v11 = vadd.f32 %v1551_v9, %v1399_v43  ;;  %v4465_v43 = vld [vmem:[%s6363_s10 + $0x24] sm:$0xf]  ;;  %v3930_v9 = vor.u32 %v4466_v7, %v3929_v6 }
 0x927   : > { %v5448_v22 = vadd.f32 %v4824_v5, %v1558_v11  ;;  %v3931_v11 = vld [vmem:[%s6363_s10 + $0x28] sm:$0xf0]  ;;  %1769 = vmatpush.bf16.msrb.mxu2 %v3930_v9  ;;  %v3921_v5 = vld [vmem:[%s6363_s10 + $0x10] sm:$0xf] }
 0x928   : > { %v3934_v21 = vor.u32 %v4465_v43, %v3931_v11 }
 0x929   : > { %1570 = vadd.xlane.f32.xlu1 %v5448_v22 }
 0x92a   : > { %1788 = vmatpush.bf16.msra.mxu3 %v3934_v21 }
 0x92c   : > { %v1553_v8 = vpop.f32.mrf.mxu1 }
 0x92d   : > { %v1559_v12 = vadd.f32 %v1553_v8, %v1400_v18  ;;  %v3922_v18 = vor.u32 %v4464_v56, %v3921_v5  ;;  %v3923_v8 = vld [vmem:[%s6363_s10 + $0x18] sm:$0xf0] }
 0x92f   : > { %v5453_v16 = vadd.f32 %v4825_v19, %v1559_v12  ;;  %v3913_v12 = vld [vmem:[%s6363_s10] sm:$0xf]  ;;  %v4462_v19 = vld [vmem:[%s6363_s10 + $0x4] sm:$0xf0]  ;;  %1770 = vmatpush.bf16.msrb.mxu2 %v3922_v18 }
 0x931   : > { %1572 = vadd.xlane.f32.xlu0 %v5453_v16 }
 0x963   : > { %v1567_v13 = vpop.xlane.xlu1 %1566 }
 0x964   : > { %v1574_v20 = vmul.f32 %v1567_v13, %v5046_v10 }
 0x966   : > { %v5458_v38 = vsub.f32 %v5436_v61, %v1574_v20  ;;  %v3926_v20 = vor.u32 %v4463_v14, %v3923_v8 }
 0x968   : > { %v1582_v62 = vmul.f32 %v5458_v38, %v5458_v38  ;;  %1789 = vmatpush.bf16.msra.mxu3 %v3926_v20 }
 0x96a   : > { %1586 = vadd.xlane.f32.xlu2 %v1582_v62  ;;  %v4461_v62 = vld [vmem:[%s6363_s10 + $0x4] sm:$0xf] }
 0x96b   : > { %v1569_v31 = vpop.xlane.xlu0 %1568 }
 0x96c   : > { %v1575_v37 = vmul.f32 %v1569_v31, %v5046_v10  ;;  %v3915_v31 = vld [vmem:[%s6363_s10 + $0x8] sm:$0xf0] }
 0x96e   : > { %v5464_v25 = vsub.f32 %v5441_v4, %v1575_v37 }
 0x970   : > { %v1583_v26 = vmul.f32 %v5464_v25, %v5464_v25 }
 0x972   : > { %1588 = vadd.xlane.f32.xlu1 %v1583_v26  ;;  %v3914_v26 = vor.u32 %v4462_v19, %v3913_v12 }
 0x974   : > { %1771 = vmatpush.bf16.msrb.mxu2 %v3914_v26  ;;  %v4491_v26 = vld [vmem:[%s6365_s12 + $0x70] sm:$0xff] }
 0x99c   : > { %v1571_v27 = vpop.xlane.xlu1 %1570 }
 0x99d   : > { %v1576_v24 = vmul.f32 %v1571_v27, %v5046_v10  ;;  %v3918_v27 = vor.u32 %v4461_v62, %v3915_v31 }
 0x99f   : > { %v5470_v28 = vsub.f32 %v5448_v22, %v1576_v24  ;;  %1790 = vmatpush.bf16.msra.mxu3 %v3918_v27  ;;  %v4482_v27 = vld [vmem:[%s6365_s12 + $0x28] sm:$0xff] }
 0x9a1   : > { %v1584_v29 = vmul.f32 %v5470_v28, %v5470_v28 }
 0x9a3   : > { %1590 = vadd.xlane.f32.xlu0 %v1584_v29 }
 0x9a4   : > { %v1573_v30 = vpop.xlane.xlu0 %1572 }
 0x9a5   : > { %v1577_v33 = vmul.f32 %v1573_v30, %v5046_v10 }
 0x9a7   : > { %v5476_v34 = vsub.f32 %v5453_v16, %v1577_v33 }
 0x9a9   : > { %v1585_v35 = vmul.f32 %v5476_v34, %v5476_v34 }
 0x9ab   : > { %1592 = vadd.xlane.f32.xlu2 %v1585_v35 }
 0x9dd   : > { %v1587_v13 = vpop.xlane.xlu2 %1586 }
 0x9de   : > { %v1594_v37 = vmul.f32 %v1587_v13, %v5046_v10 }
 0x9e0   : > { %v1598_v24 = vadd.f32 1e-05, %v1594_v37  ;;  %v4484_v37 = vld [vmem:[%s6365_s12 + $0x38] sm:$0xff] }
 0x9e1   : > { %2010 = vmatpush.bf16.msra.mxu0 %v4484_v37 }
 0x9e2   : > { %4694 = vrsqrt.f32 %v1598_v24  ;;  %vm1608_vm15 = vweird.f32 %v1598_v24 }
 0x9e5   : > { %v1589_v29 = vpop.xlane.xlu1 %1588 }
 0x9e6   : > { %v1595_v30 = vmul.f32 %v1589_v29, %v5046_v10  ;;  %v4481_v29 = vld [vmem:[%s6365_s12 + $0x20] sm:$0xff] }
 0x9e8   : > { %v4695_v33 = vpop.eup %4694  ;;  %v1599_v35 = vadd.f32 1e-05, %v1595_v30  ;;  %v4489_v30 = vld [vmem:[%s6365_s12 + $0x60] sm:$0xff] }
 0x9e9   : > { %v1603_v32 = vmul.f32 %v4695_v33, %v1598_v24  ;;  %vm1609_vm14 = vweird.f32 %v4695_v33  ;;  %v4490_v24 = vld [vmem:[%s6365_s12 + $0x68] sm:$0xff] }
 0x9ea   : > { %4696 = vrsqrt.f32 %v1599_v35  ;;  %vm1610_vm0 = vmor %vm1608_vm15, %vm1609_vm14  ;;  %vm1618_vm2 = vweird.f32 %v1599_v35 }
 0x9eb   : > { %v1604_v39 = vmul.f32 %v4695_v33, %v1603_v32  ;;  %v4479_v32 = vld [vmem:[%s6365_s12 + $0x10] sm:$0xff] }
 0x9ed   : > { %v1605_v40 = vmul.f32 0.5, %v1604_v39  ;;  %v4487_v39 = vld [vmem:[%s6365_s12 + $0x50] sm:$0xff] }
 0x9ef   : > { %v1606_v23 = vsub.f32 1.5, %v1605_v40  ;;  %v1678_v40 = vld [vmem:[%s6364_s11] sm:$0x3] }
 0x9f0   : > { %v4697_v36 = vpop.eup %4696 }
 0x9f1   : > { %v1607_v41 = vmul.f32 %v4695_v33, %v1606_v23  ;;  %v1613_v15 = vmul.f32 %v4697_v36, %v1599_v35  ;;  %vm1619_vm1 = vweird.f32 %v4697_v36  ;;  %v4488_v35 = vld [vmem:[%s6365_s12 + $0x58] sm:$0xff]  ;;  %v4478_v23 = vld [vmem:[%s6365_s12 + $0x8] sm:$0xff] }
 0x9f2   : > { %vm1620_vm3 = vmor %vm1618_vm2, %vm1619_vm1 }
 0x9f3   : > { %v1614_v42 = vmul.f32 %v4697_v36, %v1613_v15  ;;  %v1611_v44 = vsel %vm1610_vm0, %v4695_v33, %v1607_v41  ;;  %v4480_v33 = vld [vmem:[%s6365_s12 + $0x18] sm:$0xff]  ;;  %v5635_v41 = vperm.slane %v1678_v40, 0  ;;  %v5637_v15 = vperm.slane %v1678_v40, 1 }
 0x9f4   : > { %v1642_v46 = vmul.f32 %v1611_v44, %v5458_v38 }
 0x9f5   : > { %v1615_v45 = vmul.f32 0.5, %v1614_v42 }
 0x9f6   : > { %v1649_v51 = vmul.f32 %v4609_v47, %v1642_v46 }
 0x9f7   : > { %v1616_v17 = vsub.f32 1.5, %v1615_v45  ;;  %v4477_v45 = vld [vmem:[%s6365_s12] sm:$0xff] }
 0x9f8   : > { %v1656_v54 = vadd.f32 %v4610_v52, %v1649_v51 }
 0x9f9   : > { %v1617_v48 = vmul.f32 %v4697_v36, %v1616_v17  ;;  %v4485_v17 = vld [vmem:[%s6365_s12 + $0x40] sm:$0xff] }
 0x9fb   : > { %v1621_v49 = vsel %vm1620_vm3, %v4697_v36, %v1617_v48  ;;  %v4486_v36 = vld [vmem:[%s6365_s12 + $0x48] sm:$0xff] }
 0x9fc   : > { %v1643_v50 = vmul.f32 %v1621_v49, %v5464_v25 }
 0x9fe   : > { %v1650_v53 = vmul.f32 %v4609_v47, %v1643_v50 }
 0xa00   : > { %v1657_v55 = vadd.f32 %v4610_v52, %v1650_v53 }
 0xa02   : > { %v1660_v57 = vpack.c.bf16 %v1657_v55, %v1656_v54 }
 0xa04   : > { %1772 = vmatmul.bf16.vlgmr.msrb.gmra.mxu2 %v1660_v57  ;;  %1791 = vmatmul.bf16.vlgmr.msra.gmra.mxu3 %v1660_v57 }
 0xa16   : > { %v1591_v38 = vpop.xlane.xlu0 %1590 }
 0xa17   : > { %v1596_v58 = vmul.f32 %v1591_v38, %v5046_v10 }
 0xa19   : > { %v1600_v59 = vadd.f32 1e-05, %v1596_v58 }
 0xa1b   : > { %4698 = vrsqrt.f32 %v1600_v59  ;;  %vm1628_vm5 = vweird.f32 %v1600_v59 }
 0xa1e   : > { %v1593_v60 = vpop.xlane.xlu2 %1592 }
 0xa1f   : > { %v1597_v63 = vmul.f32 %v1593_v60, %v5046_v10 }
 0xa21   : > { %v4699_v25 = vpop.eup %4698  ;;  %v1601_v0 = vadd.f32 1e-05, %v1597_v63 }
 0xa22   : > { %v1623_v1 = vmul.f32 %v4699_v25, %v1600_v59  ;;  %vm1629_vm4 = vweird.f32 %v4699_v25 }
 0xa23   : > { %4700 = vrsqrt.f32 %v1601_v0  ;;  %vm1630_vm6 = vmor %vm1628_vm5, %vm1629_vm4  ;;  %vm1638_vm8 = vweird.f32 %v1601_v0 }
 0xa24   : > { %v1624_v2 = vmul.f32 %v4699_v25, %v1623_v1 }
 0xa26   : > { %v1625_v3 = vmul.f32 0.5, %v1624_v2 }
 0xa28   : > { %v1626_v6 = vsub.f32 1.5, %v1625_v3 }
 0xa29   : > { %v4701_v7 = vpop.eup %4700 }
 0xa2a   : > { %v1627_v43 = vmul.f32 %v4699_v25, %v1626_v6  ;;  %v1633_v9 = vmul.f32 %v4701_v7, %v1601_v0  ;;  %vm1639_vm7 = vweird.f32 %v4701_v7 }
 0xa2b   : > { %vm1640_vm9 = vmor %vm1638_vm8, %vm1639_vm7 }
 0xa2c   : > { %v1634_v11 = vmul.f32 %v4701_v7, %v1633_v9  ;;  %v1631_v5 = vsel %vm1630_vm6, %v4699_v25, %v1627_v43 }
 0xa2d   : > { %v1644_v14 = vmul.f32 %v1631_v5, %v5470_v28  ;;  %v4492_v28 = vld [vmem:[%s6365_s12 + $0x78] sm:$0xff] }
 0xa2e   : > { %v1635_v21 = vmul.f32 0.5, %v1634_v11  ;;  %2029 = vmatpush.bf16.msrb.mxu1 %v4492_v28 }
 0xa2f   : > { %v1651_v19 = vmul.f32 %v4609_v47, %v1644_v14 }
 0xa30   : > { %v1636_v56 = vsub.f32 1.5, %v1635_v21 }
 0xa31   : > { %v1658_v20 = vadd.f32 %v4610_v52, %v1651_v19 }
 0xa32   : > { %v1637_v18 = vmul.f32 %v4701_v7, %v1636_v56  ;;  %2030 = vmatpush.bf16.msrb.mxu1 %v4491_v26 }
 0xa34   : > { %v1641_v8 = vsel %vm1640_vm9, %v4701_v7, %v1637_v18 }
 0xa35   : > { %v1645_v12 = vmul.f32 %v1641_v8, %v5476_v34  ;;  %v4483_v34 = vld [vmem:[%s6365_s12 + $0x30] sm:$0xff] }
 0xa36   : > { %2011 = vmatpush.bf16.msra.mxu0 %v4483_v34  ;;  %2031 = vmatpush.bf16.msrb.mxu1 %v4490_v24 }
 0xa37   : > { %v1652_v13 = vmul.f32 %v4609_v47, %v1645_v12 }
 0xa39   : > { %v1659_v62 = vadd.f32 %v4610_v52, %v1652_v13 }
 0xa3a   : > { %2012 = vmatpush.bf16.msra.mxu0 %v4482_v27  ;;  %2032 = vmatpush.bf16.msrb.mxu1 %v4489_v30 }
 0xa3b   : > { %v1661_v31 = vpack.c.bf16 %v1659_v62, %v1658_v20 }
 0xa3d   : > { %1777 = vmatmul.bf16.gmra.mxu2 %v1661_v31  ;;  %1796 = vmatmul.bf16.gmra.mxu3 %v1661_v31 }
 0xa3e   : > { %2013 = vmatpush.bf16.msra.mxu0 %v4481_v29  ;;  %2033 = vmatpush.bf16.msrb.mxu1 %v4488_v35 }
 0xa42   : > { %2014 = vmatpush.bf16.msra.mxu0 %v4480_v33  ;;  %2034 = vmatpush.bf16.msrb.mxu1 %v4487_v39 }
 0xa46   : > { %2015 = vmatpush.bf16.msra.mxu0 %v4479_v32  ;;  %2035 = vmatpush.bf16.msrb.mxu1 %v4486_v36 }
 0xa4a   : > { %2016 = vmatpush.bf16.msra.mxu0 %v4478_v23  ;;  %2036 = vmatpush.bf16.msrb.mxu1 %v4485_v17 }
 0xa4e   : > { %2017 = vmatpush.bf16.msra.mxu0 %v4477_v45 }
 0xa87   : > { %v1773_v42 = vpop.f32.mrf.mxu2  ;;  %v1792_v44 = vpop.f32.mrf.mxu3 }
 0xa88   : > { %v1774_v46 = vadd.f32 %v1773_v42, %v5635_v41  ;;  %v1793_v47 = vadd.f32 %v1792_v44, %v5637_v15 }
 0xa8a   : > { %v1802_v48 = vmul.f32 %v1774_v46, %v1774_v46  ;;  %v1803_v49 = vmul.f32 %v1793_v47, %v1793_v47 }
 0xa8c   : > { %v1810_v50 = vmul.f32 %v1802_v48, %v1774_v46  ;;  %v1811_v51 = vmul.f32 %v1803_v49, %v1793_v47 }
 0xa8e   : > { %v1818_v52 = vmul.f32 0.044715, %v1810_v50  ;;  %v1819_v53 = vmul.f32 0.044715, %v1811_v51 }
 0xa8f   : > { %v1775_v54 = vpop.f32.mrf.mxu2  ;;  %v1794_v55 = vpop.f32.mrf.mxu3 }
 0xa90   : > { %v1826_v57 = vadd.f32 %v1818_v52, %v1774_v46  ;;  %v1827_v38 = vadd.f32 %v1819_v53, %v1793_v47  ;;  %v1776_v58 = vadd.f32 %v1775_v54, %v5635_v41  ;;  %v1795_v59 = vadd.f32 %v1794_v55, %v5637_v15 }
 0xa92   : > { %v1834_v60 = vmul.f32 0.7978846, %v1826_v57  ;;  %v1804_v63 = vmul.f32 %v1776_v58, %v1776_v58  ;;  %v1805_v25 = vmul.f32 %v1795_v59, %v1795_v59  ;;  %v1835_v0 = vmul.f32 0.7978846, %v1827_v38 }
 0xa94   : > { %v1812_v1 = vmul.f32 %v1804_v63, %v1776_v58  ;;  %v1813_v2 = vmul.f32 %v1805_v25, %v1795_v59  ;;  %4702 = vtanh.f32 %v1834_v60 }
 0xa95   : > { %4704 = vtanh.f32 %v1835_v0 }
 0xa96   : > { %v1820_v3 = vmul.f32 0.044715, %v1812_v1  ;;  %v1821_v6 = vmul.f32 0.044715, %v1813_v2 }
 0xa98   : > { %v1828_v7 = vadd.f32 %v1820_v3, %v1776_v58  ;;  %v1829_v43 = vadd.f32 %v1821_v6, %v1795_v59 }
 0xa9a   : > { %v1836_v9 = vmul.f32 0.7978846, %v1828_v7  ;;  %v1837_v11 = vmul.f32 0.7978846, %v1829_v43  ;;  %v4703_v21 = vpop.eup %4702 }
 0xa9b   : > { %v4705_v5 = vpop.eup %4704  ;;  %v1850_v56 = vadd.f32 1.0, %v4703_v21 }
 0xa9c   : > { %4706 = vtanh.f32 %v1836_v9  ;;  %v1851_v14 = vadd.f32 1.0, %v4705_v5 }
 0xa9d   : > { %4708 = vtanh.f32 %v1837_v11  ;;  %v1858_v12 = vmul.f32 0.5, %v1850_v56 }
 0xa9e   : > { %v1859_v13 = vmul.f32 0.5, %v1851_v14 }
 0xa9f   : > { %v1866_v37 = vmul.f32 %v1858_v12, %v1774_v46 }
 0xaa0   : > { %v1867_v34 = vmul.f32 %v1859_v13, %v1793_v47 }
 0xaa2   : > { %v4707_v18 = vpop.eup %4706 }
 0xaa3   : > { %v4709_v8 = vpop.eup %4708  ;;  %v1852_v19 = vadd.f32 1.0, %v4707_v18 }
 0xaa4   : > { %v1853_v20 = vadd.f32 1.0, %v4709_v8  ;;  %v4611_v8 = vld [vmem:[%s6366_s13] ss:$0 sm:$0xff] }
 0xaa5   : > { %v1860_v62 = vmul.f32 0.5, %v1852_v19 }
 0xaa6   : > { %v1861_v31 = vmul.f32 0.5, %v1853_v20 }
 0xaa7   : > { %v1868_v28 = vmul.f32 %v1860_v62, %v1776_v58 }
 0xaa8   : > { %v1869_v26 = vmul.f32 %v1861_v31, %v1795_v59 }
 0xaa9   : > { %v1874_v27 = vpack.c.bf16 %v1868_v28, %v1866_v37 }
 0xaaa   : > { %v1875_v24 = vpack.c.bf16 %v1869_v26, %v1867_v34 }
 0xaab   : > { %2018 = vmatmul.bf16.vlgmr.msra.gmra.mxu0 %v1874_v27 }
 0xaac   : > { %2037 = vmatmul.bf16.vlgmr.msrb.gmra.mxu1 %v1875_v24 }
 0xac0   : > { %v1778_v29 = vpop.f32.mrf.mxu2  ;;  %v1797_v30 = vpop.f32.mrf.mxu3 }
 0xac1   : > { %v1779_v33 = vadd.f32 %v1778_v29, %v5635_v41  ;;  %v1798_v35 = vadd.f32 %v1797_v30, %v5637_v15 }
 0xac3   : > { %v1806_v32 = vmul.f32 %v1779_v33, %v1779_v33  ;;  %v1807_v39 = vmul.f32 %v1798_v35, %v1798_v35 }
 0xac5   : > { %v1814_v40 = vmul.f32 %v1806_v32, %v1779_v33  ;;  %v1815_v23 = vmul.f32 %v1807_v39, %v1798_v35 }
 0xac7   : > { %v1822_v36 = vmul.f32 0.044715, %v1814_v40  ;;  %v1823_v42 = vmul.f32 0.044715, %v1815_v23 }
 0xac8   : > { %v1780_v44 = vpop.f32.mrf.mxu2  ;;  %v1799_v45 = vpop.f32.mrf.mxu3 }
 0xac9   : > { %v1830_v17 = vadd.f32 %v1822_v36, %v1779_v33  ;;  %v1831_v46 = vadd.f32 %v1823_v42, %v1798_v35  ;;  %v1781_v47 = vadd.f32 %v1780_v44, %v5635_v41  ;;  %v1800_v48 = vadd.f32 %v1799_v45, %v5637_v15 }
 0xacb   : > { %v1808_v49 = vmul.f32 %v1781_v47, %v1781_v47  ;;  %v1809_v50 = vmul.f32 %v1800_v48, %v1800_v48  ;;  %v1838_v51 = vmul.f32 0.7978846, %v1830_v17  ;;  %v1839_v52 = vmul.f32 0.7978846, %v1831_v46 }
 0xacd   : > { %v1816_v53 = vmul.f32 %v1808_v49, %v1781_v47  ;;  %v1817_v54 = vmul.f32 %v1809_v50, %v1800_v48  ;;  %4710 = vtanh.f32 %v1838_v51 }
 0xace   : > { %4712 = vtanh.f32 %v1839_v52 }
 0xacf   : > { %v1824_v55 = vmul.f32 0.044715, %v1816_v53  ;;  %v1825_v57 = vmul.f32 0.044715, %v1817_v54  ;;  %v4160_v53 = vld [vmem:[%s6357_s4 + $0x168] sm:$0xf] }
 0xad0   : > { %v4515_v54 = vld [vmem:[%s6357_s4 + $0x170] sm:$0xf0] }
 0xad1   : > { %v1832_v38 = vadd.f32 %v1824_v55, %v1781_v47  ;;  %v1833_v58 = vadd.f32 %v1825_v57, %v1800_v48  ;;  %v4514_v55 = vld [vmem:[%s6357_s4 + $0x16c] sm:$0xf]  ;;  %v4161_v57 = vor.u32 %v4515_v54, %v4160_v53  ;;  %v4497_v53 = vld [vmem:[%s6357_s4 + $0xe0] sm:$0xf0]  ;;  %v4496_v54 = vld [vmem:[%s6357_s4 + $0xdc] sm:$0xf] }
 0xad3   : > { %v1840_v59 = vmul.f32 0.7978846, %v1832_v38  ;;  %v1841_v60 = vmul.f32 0.7978846, %v1833_v58  ;;  %v4711_v63 = vpop.eup %4710  ;;  %v4162_v38 = vld [vmem:[%s6357_s4 + $0x174] sm:$0xf0]  ;;  %2322 = vmatpush.bf16.msra.mxu2 %v4161_v57 }
 0xad4   : > { %v4713_v25 = vpop.eup %4712  ;;  %v1854_v41 = vadd.f32 1.0, %v4711_v63  ;;  %v4168_v58 = vld [vmem:[%s6357_s4 + $0x170] sm:$0xf]  ;;  %v4090_v57 = vld [vmem:[%s6357_s4 + $0xe4] sm:$0xf0] }
 0xad5   : > { %4714 = vtanh.f32 %v1840_v59  ;;  %v1855_v15 = vadd.f32 1.0, %v4713_v25  ;;  %v4516_v59 = vld [vmem:[%s6357_s4 + $0x178] sm:$0xf0]  ;;  %v4148_v25 = vld [vmem:[%s6357_s4 + $0x150] sm:$0xf] }
 0xad6   : > { %4716 = vtanh.f32 %v1841_v60  ;;  %v1862_v3 = vmul.f32 0.5, %v1854_v41  ;;  %v4165_v60 = vor.u32 %v4514_v55, %v4162_v38  ;;  %v4169_v63 = vor.u32 %v4516_v59, %v4168_v58  ;;  %v4512_v41 = vld [vmem:[%s6357_s4 + $0x158] sm:$0xf0]  ;;  %v4096_v38 = vld [vmem:[%s6357_s4 + $0xe0] sm:$0xf] }
 0xad7   : > { %v1863_v7 = vmul.f32 0.5, %v1855_v15  ;;  %v4511_v15 = vld [vmem:[%s6357_s4 + $0x154] sm:$0xf]  ;;  %v4498_v58 = vld [vmem:[%s6357_s4 + $0xe8] sm:$0xf0] }
 0xad8   : > { %v1870_v11 = vmul.f32 %v1862_v3, %v1779_v33  ;;  %2341 = vmatpush.bf16.msrb.mxu3 %v4165_v60  ;;  %2360 = vmatpush.bf16.msrb.mxu0 %v4169_v63  ;;  %v4513_v3 = vld [vmem:[%s6357_s4 + $0x160] sm:$0xf0]  ;;  %v4093_v60 = vor.u32 %v4496_v54, %v4090_v57  ;;  %v4097_v63 = vor.u32 %v4498_v58, %v4096_v38 }
 0xad9   : > { %v1871_v5 = vmul.f32 %v1863_v7, %v1798_v35 }
 0xadb   : > { %v4715_v0 = vpop.eup %4714 }
 0xadc   : > { %v4717_v1 = vpop.eup %4716  ;;  %v1856_v2 = vadd.f32 1.0, %v4715_v0  ;;  %v4149_v0 = vor.u32 %v4512_v41, %v4148_v25  ;;  %v4076_v25 = vld [vmem:[%s6357_s4 + $0xc0] sm:$0xf]  ;;  %v4494_v41 = vld [vmem:[%s6357_s4 + $0xc8] sm:$0xf0] }
 0xadd   : > { %v1857_v6 = vadd.f32 1.0, %v4717_v1  ;;  %v4150_v1 = vld [vmem:[%s6357_s4 + $0x15c] sm:$0xf0] }
 0xade   : > { %v1864_v43 = vmul.f32 0.5, %v1856_v2  ;;  %v4156_v2 = vld [vmem:[%s6357_s4 + $0x158] sm:$0xf]  ;;  %2323 = vmatpush.bf16.msra.mxu2 %v4149_v0 }
 0xadf   : > { %v1865_v9 = vmul.f32 0.5, %v1857_v6  ;;  %v4153_v6 = vor.u32 %v4511_v15, %v4150_v1  ;;  %v4157_v7 = vor.u32 %v4513_v3, %v4156_v2  ;;  %v4493_v15 = vld [vmem:[%s6357_s4 + $0xc4] sm:$0xf]  ;;  %v4077_v1 = vor.u32 %v4494_v41, %v4076_v25  ;;  %v4078_v2 = vld [vmem:[%s6357_s4 + $0xcc] sm:$0xf0] }
 0xae0   : > { %v1872_v21 = vmul.f32 %v1864_v43, %v1781_v47  ;;  %v4136_v43 = vld [vmem:[%s6357_s4 + $0x138] sm:$0xf]  ;;  %v4084_v3 = vld [vmem:[%s6357_s4 + $0xc8] sm:$0xf] }
 0xae1   : > { %v1873_v56 = vmul.f32 %v1865_v9, %v1800_v48  ;;  %2342 = vmatpush.bf16.msrb.mxu3 %v4153_v6  ;;  %2361 = vmatpush.bf16.msrb.mxu0 %v4157_v7  ;;  %v4509_v9 = vld [vmem:[%s6357_s4 + $0x140] sm:$0xf0]  ;;  %v4495_v6 = vld [vmem:[%s6357_s4 + $0xd0] sm:$0xf0]  ;;  %v4081_v7 = vor.u32 %v4493_v15, %v4078_v2 }
 0xae2   : > { %v1876_v14 = vpack.c.bf16 %v1872_v21, %v1870_v11  ;;  %v4508_v11 = vld [vmem:[%s6357_s4 + $0x13c] sm:$0xf]  ;;  %v4137_v21 = vor.u32 %v4509_v9, %v4136_v43  ;;  %v4085_v43 = vor.u32 %v4495_v6, %v4084_v3  ;;  %v4073_v6 = vld [vmem:[%s6358_s5 + $0x3] sm:$0x7] }
 0xae3   : > { %v1877_v18 = vpack.c.bf16 %v1873_v56, %v1871_v5  ;;  %v4138_v5 = vld [vmem:[%s6357_s4 + $0x144] sm:$0xf0]  ;;  %v4144_v56 = vld [vmem:[%s6357_s4 + $0x140] sm:$0xf] }
 0xae4   : > { %2023 = vmatmul.bf16.gmra.mxu0 %v1876_v14  ;;  %v4510_v14 = vld [vmem:[%s6357_s4 + $0x148] sm:$0xf0]  ;;  %2324 = vmatpush.bf16.msra.mxu2 %v4137_v21 }
 0xae5   : > { %2042 = vmatmul.bf16.gmra.mxu1 %v1877_v18  ;;  %v4141_v18 = vor.u32 %v4508_v11, %v4138_v5 }
 0xae7   : > { %2343 = vmatpush.bf16.msrb.mxu3 %v4141_v18 }
 0xb28   : > { %v2019_v12 = vpop.f32.mrf.mxu0 }
 0xb29   : > { %v2020_v19 = vadd.f32 %v4611_v8, %v2019_v12  ;;  %v2038_v13 = vpop.f32.mrf.mxu1  ;;  %v4124_v12 = vld [vmem:[%s6357_s4 + $0x120] sm:$0xf] }
 0xb2b   : > { %v2039_v20 = vadd.f32 %v2038_v13, %v2020_v19  ;;  %v4506_v19 = vld [vmem:[%s6357_s4 + $0x128] sm:$0xf0]  ;;  %v4505_v13 = vld [vmem:[%s6357_s4 + $0x124] sm:$0xf] }
 0xb2d   : > { %v5657_v62 = vadd.f32 %v2039_v20, %v5436_v61  ;;  %v4125_v20 = vor.u32 %v4506_v19, %v4124_v12 }
 0xb2f   : > { %2056 = vadd.xlane.f32.xlu1 %v5657_v62  ;;  %2325 = vmatpush.bf16.msra.mxu2 %v4125_v20 }
 0xb30   : > { %v2021_v31 = vpop.f32.mrf.mxu0 }
 0xb31   : > { %v2022_v37 = vadd.f32 %v4611_v8, %v2021_v31  ;;  %v2040_v28 = vpop.f32.mrf.mxu1  ;;  %v4126_v31 = vld [vmem:[%s6357_s4 + $0x12c] sm:$0xf0] }
 0xb33   : > { %v2041_v34 = vadd.f32 %v2040_v28, %v2022_v37  ;;  %v4132_v37 = vld [vmem:[%s6357_s4 + $0x128] sm:$0xf]  ;;  %v4507_v28 = vld [vmem:[%s6357_s4 + $0x130] sm:$0xf0] }
 0xb35   : > { %v5661_v26 = vadd.f32 %v2041_v34, %v5441_v4  ;;  %v4129_v34 = vor.u32 %v4505_v13, %v4126_v31 }
 0xb37   : > { %2058 = vadd.xlane.f32.xlu0 %v5661_v26  ;;  %2344 = vmatpush.bf16.msrb.mxu3 %v4129_v34 }
 0xb61   : > { %v2024_v27 = vpop.f32.mrf.mxu0 }
 0xb62   : > { %v2025_v24 = vadd.f32 %v4611_v8, %v2024_v27  ;;  %v2043_v29 = vpop.f32.mrf.mxu1  ;;  %v4133_v27 = vor.u32 %v4507_v28, %v4132_v37 }
 0xb64   : > { %v2044_v30 = vadd.f32 %v2043_v29, %v2025_v24  ;;  %v4112_v24 = vld [vmem:[%s6357_s4 + $0x108] sm:$0xf]  ;;  %v4503_v29 = vld [vmem:[%s6357_s4 + $0x110] sm:$0xf0] }
 0xb66   : > { %v5665_v33 = vadd.f32 %v2044_v30, %v5448_v22  ;;  %v4502_v30 = vld [vmem:[%s6357_s4 + $0x10c] sm:$0xf] }
 0xb68   : > { %2060 = vadd.xlane.f32.xlu2 %v5665_v33 }
 0xb69   : > { %v2026_v61 = vpop.f32.mrf.mxu0 }
 0xb6a   : > { %v2027_v35 = vadd.f32 %v4611_v8, %v2026_v61  ;;  %v2045_v32 = vpop.f32.mrf.mxu1  ;;  %v4145_v8 = vor.u32 %v4510_v14, %v4144_v56  ;;  %v4113_v61 = vor.u32 %v4503_v29, %v4112_v24  ;;  %v4612_v24 = vld [vmem:[%s6393_s2 + $0x1] ss:$0 sm:$0xff] }
 0xb6c   : > { %v2046_v39 = vadd.f32 %v2045_v32, %v2027_v35  ;;  %2362 = vmatpush.bf16.msrb.mxu0 %v4145_v8  ;;  %v4114_v35 = vld [vmem:[%s6357_s4 + $0x114] sm:$0xf0]  ;;  %v4120_v32 = vld [vmem:[%s6357_s4 + $0x110] sm:$0xf]  ;;  %2326 = vmatpush.bf16.msra.mxu2 %v4113_v61 }
 0xb6e   : > { %v5669_v40 = vadd.f32 %v2046_v39, %v5453_v16  ;;  %v4504_v39 = vld [vmem:[%s6357_s4 + $0x118] sm:$0xf0] }
 0xb70   : > { %2062 = vadd.xlane.f32.xlu1 %v5669_v40  ;;  %2363 = vmatpush.bf16.msrb.mxu0 %v4133_v27 }
 0xba2   : > { %v2057_v4 = vpop.xlane.xlu1 %2056 }
 0xba3   : > { %v2064_v23 = vmul.f32 %v2057_v4, %v5046_v10  ;;  %v4117_v4 = vor.u32 %v4502_v30, %v4114_v35 }
 0xba5   : > { %v5674_v36 = vsub.f32 %v5657_v62, %v2064_v23  ;;  %v4121_v23 = vor.u32 %v4504_v39, %v4120_v32  ;;  %2345 = vmatpush.bf16.msrb.mxu3 %v4117_v4  ;;  %v4613_v32 = vld [vmem:[%s6356_s3 + $0x1] ss:$0 sm:$0xff] }
 0xba7   : > { %v2072_v22 = vmul.f32 %v5674_v36, %v5674_v36  ;;  %2364 = vmatpush.bf16.msrb.mxu0 %v4121_v23 }
 0xba9   : > { %2076 = vadd.xlane.f32.xlu0 %v2072_v22  ;;  %v4100_v22 = vld [vmem:[%s6357_s4 + $0xf0] sm:$0xf] }
 0xbaa   : > { %v2059_v42 = vpop.xlane.xlu0 %2058 }
 0xbab   : > { %v2065_v44 = vmul.f32 %v2059_v42, %v5046_v10  ;;  %v4500_v42 = vld [vmem:[%s6357_s4 + $0xf8] sm:$0xf0] }
 0xbad   : > { %v5680_v45 = vsub.f32 %v5661_v26, %v2065_v44  ;;  %v4499_v44 = vld [vmem:[%s6357_s4 + $0xf4] sm:$0xf] }
 0xbaf   : > { %v2073_v16 = vmul.f32 %v5680_v45, %v5680_v45 }
 0xbb1   : > { %2078 = vadd.xlane.f32.xlu2 %v2073_v16  ;;  %v4101_v16 = vor.u32 %v4500_v42, %v4100_v22 }
 0xbb3   : > { %2327 = vmatpush.bf16.msra.mxu2 %v4101_v16 }
 0xbdb   : > { %v2061_v17 = vpop.xlane.xlu2 %2060 }
 0xbdc   : > { %v2066_v46 = vmul.f32 %v2061_v17, %v5046_v10  ;;  %v4102_v17 = vld [vmem:[%s6357_s4 + $0xfc] sm:$0xf0] }
 0xbde   : > { %v5686_v47 = vsub.f32 %v5665_v33, %v2066_v46  ;;  %v4108_v46 = vld [vmem:[%s6357_s4 + $0xf8] sm:$0xf] }
 0xbe0   : > { %v2074_v48 = vmul.f32 %v5686_v47, %v5686_v47 }
 0xbe2   : > { %2080 = vadd.xlane.f32.xlu1 %v2074_v48  ;;  %v4501_v48 = vld [vmem:[%s6357_s4 + $0x100] sm:$0xf0] }
 0xbe3   : > { %v2063_v49 = vpop.xlane.xlu1 %2062 }
 0xbe4   : > { %v2067_v50 = vmul.f32 %v2063_v49, %v5046_v10  ;;  %v4105_v49 = vor.u32 %v4499_v44, %v4102_v17 }
 0xbe6   : > { %v5692_v51 = vsub.f32 %v5669_v40, %v2067_v50  ;;  %v4109_v50 = vor.u32 %v4501_v48, %v4108_v46  ;;  %2346 = vmatpush.bf16.msrb.mxu3 %v4105_v49 }
 0xbe8   : > { %v2075_v52 = vmul.f32 %v5692_v51, %v5692_v51  ;;  %2365 = vmatpush.bf16.msrb.mxu0 %v4109_v50 }
 0xbea   : > { %2082 = vadd.xlane.f32.xlu0 %v2075_v52  ;;  %v4088_v52 = vld [vmem:[%s6357_s4 + $0xd8] sm:$0xf]  ;;  %2347 = vmatpush.bf16.msrb.mxu3 %v4093_v60 }
 0xbeb   : > { %v4089_v55 = vor.u32 %v4497_v53, %v4088_v52 }
 0xbec   : > { %2366 = vmatpush.bf16.msrb.mxu0 %v4097_v63 }
 0xbed   : > { %2328 = vmatpush.bf16.msra.mxu2 %v4089_v55 }
 0xbee   : > { %2348 = vmatpush.bf16.msrb.mxu3 %v4081_v7 }
 0xbf0   : > { %2367 = vmatpush.bf16.msrb.mxu0 %v4085_v43  ;;  %v2188_v43 = vperm.slane %v4073_v6, 0 }
 0xbf1   : > { %2329 = vmatpush.bf16.msra.mxu2 %v4077_v1 }
 0xc1c   : > { %v2077_v59 = vpop.xlane.xlu0 %2076 }
 0xc1d   : > { %v2084_v0 = vmul.f32 %v2077_v59, %v5046_v10 }
 0xc1f   : > { %v2088_v9 = vadd.f32 1e-05, %v2084_v0 }
 0xc21   : > { %4718 = vrsqrt.f32 %v2088_v9  ;;  %vm2098_vm11 = vweird.f32 %v2088_v9 }
 0xc24   : > { %v2079_v11 = vpop.xlane.xlu2 %2078 }
 0xc25   : > { %v2085_v21 = vmul.f32 %v2079_v11, %v5046_v10 }
 0xc27   : > { %v4719_v5 = vpop.eup %4718  ;;  %v2089_v56 = vadd.f32 1e-05, %v2085_v21 }
 0xc28   : > { %v2093_v14 = vmul.f32 %v4719_v5, %v2088_v9  ;;  %vm2099_vm10 = vweird.f32 %v4719_v5  ;;  %v2189_v9 = vperm.slane %v4073_v6, 1 }
 0xc29   : > { %4720 = vrsqrt.f32 %v2089_v56  ;;  %vm2100_vm12 = vmor %vm2098_vm11, %vm2099_vm10  ;;  %vm2108_vm15 = vweird.f32 %v2089_v56 }
 0xc2a   : > { %v2094_v18 = vmul.f32 %v4719_v5, %v2093_v14 }
 0xc2c   : > { %v2095_v8 = vmul.f32 0.5, %v2094_v18 }
 0xc2e   : > { %v2096_v12 = vsub.f32 1.5, %v2095_v8 }
 0xc2f   : > { %v4721_v19 = vpop.eup %4720 }
 0xc30   : > { %v2097_v13 = vmul.f32 %v4719_v5, %v2096_v12  ;;  %v2103_v20 = vmul.f32 %v4721_v19, %v2089_v56  ;;  %vm2109_vm14 = vweird.f32 %v4721_v19 }
 0xc31   : > { %vm2110_vm0 = vmor %vm2108_vm15, %vm2109_vm14 }
 0xc32   : > { %v2104_v31 = vmul.f32 %v4721_v19, %v2103_v20  ;;  %v2101_v37 = vsel %vm2100_vm12, %v4719_v5, %v2097_v13 }
 0xc33   : > { %v2132_v27 = vmul.f32 %v2101_v37, %v5674_v36 }
 0xc34   : > { %v2105_v28 = vmul.f32 0.5, %v2104_v31 }
 0xc35   : > { %v2139_v35 = vmul.f32 %v4612_v24, %v2132_v27 }
 0xc36   : > { %v2106_v34 = vsub.f32 1.5, %v2105_v28 }
 0xc37   : > { %v2146_v4 = vadd.f32 %v4613_v32, %v2139_v35 }
 0xc38   : > { %v2107_v29 = vmul.f32 %v4721_v19, %v2106_v34 }
 0xc3a   : > { %v2111_v30 = vsel %vm2110_vm0, %v4721_v19, %v2107_v29 }
 0xc3b   : > { %v2133_v61 = vmul.f32 %v2111_v30, %v5680_v45  ;;  %v2190_v30 = vperm.slane %v4073_v6, 2 }
 0xc3d   : > { %v2140_v39 = vmul.f32 %v4612_v24, %v2133_v61 }
 0xc3f   : > { %v2147_v23 = vadd.f32 %v4613_v32, %v2140_v39 }
 0xc41   : > { %v2150_v22 = vpack.c.bf16 %v2147_v23, %v2146_v4 }
 0xc43   : > { %2330 = vmatmul.bf16.vlgmr.msra.gmra.mxu2 %v2150_v22  ;;  %2349 = vmatmul.bf16.vlgmr.msrb.gmra.mxu3 %v2150_v22 }
 0xc44   : > { %2368 = vmatmul.bf16.vlgmr.msrb.gmra.mxu0 %v2150_v22 }
 0xc55   : > { %v2081_v36 = vpop.xlane.xlu1 %2080 }
 0xc56   : > { %v2086_v42 = vmul.f32 %v2081_v36, %v5046_v10 }
 0xc58   : > { %v2090_v44 = vadd.f32 1e-05, %v2086_v42 }
 0xc5a   : > { %4722 = vrsqrt.f32 %v2090_v44  ;;  %vm2118_vm2 = vweird.f32 %v2090_v44 }
 0xc5d   : > { %v2083_v16 = vpop.xlane.xlu0 %2082 }
 0xc5e   : > { %v2087_v45 = vmul.f32 %v2083_v16, %v5046_v10 }
 0xc60   : > { %v4723_v17 = vpop.eup %4722  ;;  %v2091_v46 = vadd.f32 1e-05, %v2087_v45 }
 0xc61   : > { %v2113_v48 = vmul.f32 %v4723_v17, %v2090_v44  ;;  %vm2119_vm1 = vweird.f32 %v4723_v17 }
 0xc62   : > { %4724 = vrsqrt.f32 %v2091_v46  ;;  %vm2120_vm3 = vmor %vm2118_vm2, %vm2119_vm1  ;;  %vm2128_vm5 = vweird.f32 %v2091_v46 }
 0xc63   : > { %v2114_v49 = vmul.f32 %v4723_v17, %v2113_v48 }
 0xc65   : > { %v2115_v50 = vmul.f32 0.5, %v2114_v49 }
 0xc67   : > { %v2116_v52 = vsub.f32 1.5, %v2115_v50 }
 0xc68   : > { %v4725_v53 = vpop.eup %4724 }
 0xc69   : > { %v2117_v54 = vmul.f32 %v4723_v17, %v2116_v52  ;;  %v2123_v55 = vmul.f32 %v4725_v53, %v2091_v46  ;;  %vm2129_vm4 = vweird.f32 %v4725_v53 }
 0xc6a   : > { %vm2130_vm6 = vmor %vm2128_vm5, %vm2129_vm4 }
 0xc6b   : > { %v2124_v57 = vmul.f32 %v4725_v53, %v2123_v55  ;;  %v2121_v38 = vsel %vm2120_vm3, %v4723_v17, %v2117_v54 }
 0xc6c   : > { %v2134_v60 = vmul.f32 %v2121_v38, %v5686_v47 }
 0xc6d   : > { %v2125_v58 = vmul.f32 0.5, %v2124_v57 }
 0xc6e   : > { %v2141_v15 = vmul.f32 %v4612_v24, %v2134_v60 }
 0xc6f   : > { %v2126_v59 = vsub.f32 1.5, %v2125_v58 }
 0xc70   : > { %v2148_v1 = vadd.f32 %v4613_v32, %v2141_v15 }
 0xc71   : > { %v2127_v63 = vmul.f32 %v4725_v53, %v2126_v59 }
 0xc73   : > { %v2131_v25 = vsel %vm2130_vm6, %v4725_v53, %v2127_v63 }
 0xc74   : > { %v2135_v41 = vmul.f32 %v2131_v25, %v5692_v51 }
 0xc76   : > { %v2142_v0 = vmul.f32 %v4612_v24, %v2135_v41 }
 0xc78   : > { %v2149_v2 = vadd.f32 %v4613_v32, %v2142_v0 }
 0xc7a   : > { %v2151_v3 = vpack.c.bf16 %v2149_v2, %v2148_v1 }
 0xc7c   : > { %2335 = vmatmul.bf16.gmra.mxu2 %v2151_v3  ;;  %2354 = vmatmul.bf16.gmra.mxu3 %v2151_v3 }
 0xc7d   : > { %2373 = vmatmul.bf16.gmra.mxu0 %v2151_v3 }
 0xcc1   : > { %v2369_v27 = vpop.f32.mrf.mxu0 }
 0xcc2   : > { %v2370_v23 = vadd.f32 %v2369_v27, %v2190_v30 }
 0xcc4   : > { %v2387_v45 = vpack.c.bf16 %v2370_v23, %v2370_v23 }
 0xcc6   : > { %v2331_v7 = vpop.f32.mrf.mxu2  ;;  %v2350_v47 = vpop.f32.mrf.mxu3  ;;  %v2514_v38 = vunpack.c.l.b16 %v2387_v45 }
 0xcc7   : > { %v2332_v11 = vadd.f32 %v2331_v7, %v2188_v43  ;;  %v2351_v21 = vadd.f32 %v2350_v47, %v2189_v9 }
 0xcc9   : > { %v2379_v56 = vpack.c.bf16 %v2332_v11, %v2332_v11  ;;  %v2383_v14 = vpack.c.bf16 %v2351_v21, %v2351_v21  ;;  %v2371_v24 = vpop.f32.mrf.mxu0 }
 0xcca   : > { %v2372_v39 = vadd.f32 %v2371_v24, %v2190_v30 }
 0xccb   : > { %v2417_v13 = vunpack.c.l.b16 %v2379_v56  ;;  %v2427_v20 = vunpack.c.l.b16 %v2383_v14 }
 0xccc   : > { %v2388_v44 = vpack.c.bf16 %v2372_v39, %v2372_v39 }
 0xcce   : > { %v2333_v5 = vpop.f32.mrf.mxu2  ;;  %v2352_v51 = vpop.f32.mrf.mxu3  ;;  %v2515_v53 = vunpack.c.l.b16 %v2388_v44 }
 0xccf   : > { %v2334_v18 = vadd.f32 %v2333_v5, %v2188_v43  ;;  %v2353_v8 = vadd.f32 %v2352_v51, %v2189_v9  ;;  %v5892_v51 = vld [vmem:[%s5035_s28] ss:$0 sm:$0xff]  ;;  %s6394_s28 = smov 64  }
 0xcd0   : > { %v5868_v63 = vpack.c.b16 %v2515_v53, %v2514_v38 }
 0xcd1   : > { %v2380_v12 = vpack.c.bf16 %v2334_v18, %v2334_v18  ;;  %v2384_v19 = vpack.c.bf16 %v2353_v8, %v2353_v8 }
 0xcd3   : > { %v2418_v31 = vunpack.c.l.b16 %v2380_v12  ;;  %v2428_v37 = vunpack.c.l.b16 %v2384_v19 }
 0xcd5   : > { %v5857_v28 = vpack.c.b16 %v2418_v31, %v2417_v13  ;;  %v5859_v34 = vpack.c.b16 %v2428_v37, %v2427_v20 }
 0xcd7   : > { %2594 = vrot.lane.b32.xlu1 %v5859_v34, %s4892_s19  ;;  %2590 = vrot.lane.b32.xlu0 %v5857_v28, %s4892_s19  ;;  %v2440_v6 = vsel %vm925_vm13, %v5859_v34, 0 }
 0xcfa   : > { %v2374_v29 = vpop.f32.mrf.mxu0 }
 0xcfb   : > { %v2375_v61 = vadd.f32 %v2374_v29, %v2190_v30 }
 0xcfd   : > { %v2389_v22 = vpack.c.bf16 %v2375_v61, %v2375_v61 }
 0xcff   : > { %v2336_v35 = vpop.f32.mrf.mxu2  ;;  %v2355_v32 = vpop.f32.mrf.mxu3  ;;  %v2516_v17 = vunpack.c.l.b16 %v2389_v22 }
 0xd00   : > { %v2356_v42 = vadd.f32 %v2355_v32, %v2189_v9  ;;  %v2337_v58 = vadd.f32 %v2336_v35, %v2188_v43 }
 0xd02   : > { %v2376_v4 = vpop.f32.mrf.mxu0  ;;  %v2385_v50 = vpack.c.bf16 %v2356_v42, %v2356_v42  ;;  %v2381_v15 = vpack.c.bf16 %v2337_v58, %v2337_v58 }
 0xd03   : > { %v2377_v36 = vadd.f32 %v2376_v4, %v2190_v30 }
 0xd04   : > { %v2429_v59 = vunpack.c.l.b16 %v2385_v50  ;;  %v2419_v2 = vunpack.c.l.b16 %v2381_v15 }
 0xd05   : > { %v2390_v16 = vpack.c.bf16 %v2377_v36, %v2377_v36 }
 0xd07   : > { %v2517_v46 = vunpack.c.l.b16 %v2390_v16  ;;  %v2338_v48 = vpop.f32.mrf.mxu2  ;;  %v2357_v49 = vpop.f32.mrf.mxu3 }
 0xd08   : > { %v2358_v52 = vadd.f32 %v2357_v49, %v2189_v9  ;;  %v2339_v55 = vadd.f32 %v2338_v48, %v2188_v43 }
 0xd09   : > { %v5865_v54 = vpack.c.b16 %v2517_v46, %v2516_v17 }
 0xd0a   : > { %v2386_v57 = vpack.c.bf16 %v2358_v52, %v2358_v52  ;;  %v2382_v25 = vpack.c.bf16 %v2339_v55, %v2339_v55 }
 0xd0b   : > { %2534 = vmatpush.bf16.msrb.mxu2 %v5865_v54 }
 0xd0c   : > { %v2430_v60 = vunpack.c.l.b16 %v2386_v57  ;;  %v2420_v1 = vunpack.c.l.b16 %v2382_v25 }
 0xd0e   : > { %v5870_v41 = vpack.c.b16 %v2430_v60, %v2429_v59  ;;  %v5877_v3 = vpack.c.b16 %v2420_v1, %v2419_v2 }
 0xd0f   : > { %2535 = vmatpush.bf16.msrb.mxu2 %v5868_v63 }
 0xd10   : > { %2596 = vrot.lane.b32.xlu2 %v5870_v41, %s4892_s19  ;;  %v2443_v0 = vsel %vm925_vm13, %v5870_v41, 0 }
 0xd11   : > { %2451 = vmatpush.bf16.xpose.msra.mxu1 %v2443_v0 }
 0xd18   : > { %2592 = vrot.lane.b32.xlu2 %v5877_v3, %s4892_s19 }
 0xd19   : > { %2452 = vmatpush.bf16.xpose.msra.mxu1 %v2440_v6 }
 0xd20   : > { %4187 = vmatmul.msk.bf16.vlgmr.msra.gmra.mxu1 %vm925_vm13, %v5857_v28 }
 0xd30   : > { %4188 = vmatmul.msk.bf16.gmra.mxu1 %vm925_vm13, %v5877_v3 }
 0xd49   : > { %v2595_v43 = vpop.permute.xlu1 %2594  ;;  %v2591_v11 = vpop.permute.xlu0 %2590 }
 0xd4a   : > { %v2605_v9 = vsel %vm925_vm13, %v2595_v43, 0 }
 0xd6a   : > { %v2597_v7 = vpop.permute.xlu2 %2596 }
 0xd6b   : > { %v2608_v47 = vsel %vm925_vm13, %v2597_v7, 0 }
 0xd6c   : > { %2616 = vmatpush.bf16.xpose.msra.mxu0 %v2608_v47 }
 0xd72   : > { %v2593_v21 = vpop.permute.xlu2 %2592 }
 0xd74   : > { %2617 = vmatpush.bf16.xpose.msra.mxu0 %v2605_v9 }
 0xd7b   : > { %4201 = vmatmul.msk.bf16.vlgmr.msra.gmra.mxu0 %vm925_vm13, %v2591_v11 }
 0xd8b   : > { %4202 = vmatmul.msk.bf16.gmra.mxu0 %vm925_vm13, %v2593_v21 }
 0xd9d   : > { %v2454_v5 = vpop.f32.mrf.mxu1 }
 0xd9e   : > { %v2455_v56 = vadd.f32 %v5892_v51, %v2454_v5 }
 0xda0   : > { %v2464_v14 = vsel %vm925_vm13, %v2455_v56, -inf }
 0xda1   : > { %2465 = vmax.xlane.f32.xlu0 %v2464_v14 }
 0xda5   : > { %v2456_v18 = vpop.f32.mrf.mxu1 }
 0xda6   : > { %v2457_v8 = vadd.f32 %v5892_v51, %v2456_v18 }
 0xda8   : > { %v2467_v12 = vsel %vm925_vm13, %v2457_v8, -inf }
 0xda9   : > { %2468 = vmax.xlane.f32.xlu1 %v2467_v12 }
 0xdad   : > { %v2459_v19 = vpop.f32.mrf.mxu1 }
 0xdae   : > { %v2460_v13 = vadd.f32 %v5892_v51, %v2459_v19 }
 0xdb0   : > { %v2470_v20 = vsel %vm925_vm13, %v2460_v13, -inf }
 0xdb1   : > { %2471 = vmax.xlane.f32.xlu1 %v2470_v20 }
 0xdb5   : > { %v2461_v24 = vpop.f32.mrf.mxu1 }
 0xdb6   : > { %v2462_v29 = vadd.f32 %v5892_v51, %v2461_v24 }
 0xdb8   : > { %v2473_v32 = vsel %vm925_vm13, %v2462_v29, -inf }
 0xdf8   : > { %v2619_v31 = vpop.f32.mrf.mxu0 }
 0xdf9   : > { %v2620_v37 = vadd.f32 %v5892_v51, %v2619_v31 }
 0xdfb   : > { %v2629_v27 = vsel %vm925_vm13, %v2620_v37, -inf }
 0xdfc   : > { %2630 = vmax.xlane.f32.xlu2 %v2629_v27 }
 0xe00   : > { %v2621_v30 = vpop.f32.mrf.mxu0 }
 0xe01   : > { %v2622_v61 = vadd.f32 %v5892_v51, %v2621_v30 }
 0xe03   : > { %v2632_v35 = vsel %vm925_vm13, %v2622_v61, -inf }
 0xe04   : > { %2633 = vmax.xlane.f32.xlu0 %v2632_v35  ;;  %2474 = vmax.xlane.f32.xlu2 %v2473_v32 }
 0xe08   : > { %v2624_v39 = vpop.f32.mrf.mxu0 }
 0xe09   : > { %v2625_v4 = vadd.f32 %v5892_v51, %v2624_v39 }
 0xe0b   : > { %v2635_v23 = vsel %vm925_vm13, %v2625_v4, -inf }
 0xe0c   : > { %2636 = vmax.xlane.f32.xlu0 %v2635_v23 }
 0xe10   : > { %v2626_v22 = vpop.f32.mrf.mxu0 }
 0xe11   : > { %v2627_v36 = vadd.f32 %v5892_v51, %v2626_v22  ;;  %v4519_v22 = vld [vmem:[%s6359_s6 + $0x50] sm:$0xff] }
 0xe13   : > { %v2638_v42 = vsel %vm925_vm13, %v2627_v36, -inf }
 0xe14   : > { %v2466_v44 = vpop.xlane.xlu0 %2465  ;;  %2639 = vmax.xlane.f32.xlu1 %v2638_v42 }
 0xe15   : > { %v2476_v16 = vsub.f32 %v2455_v56, %v2466_v44 }
 0xe17   : > { %v2480_v45 = vmul.f32 1.442695, %v2476_v16 }
 0xe19   : > { %4726 = vpow2.f32 %v2480_v45 }
 0xe1c   : > { %v2469_v17 = vpop.xlane.xlu1 %2468 }
 0xe1d   : > { %v2477_v46 = vsub.f32 %v2457_v8, %v2469_v17 }
 0xe1f   : > { %v4727_v48 = vpop.eup %4726  ;;  %v2482_v49 = vmul.f32 1.442695, %v2477_v46 }
 0xe20   : > { %v2488_v50 = vsel %vm925_vm13, %v4727_v48, 0.0 }
 0xe21   : > { %4728 = vpow2.f32 %v2482_v49  ;;  %2489 = vadd.xlane.f32.xlu2 %v2488_v50 }
 0xe24   : > { %v2472_v52 = vpop.xlane.xlu1 %2471 }
 0xe25   : > { %v2478_v53 = vsub.f32 %v2460_v13, %v2472_v52 }
 0xe27   : > { %v4729_v55 = vpop.eup %4728  ;;  %v2484_v57 = vmul.f32 1.442695, %v2478_v53 }
 0xe28   : > { %v2491_v38 = vsel %vm925_vm13, %v4729_v55, 0.0 }
 0xe29   : > { %4730 = vpow2.f32 %v2484_v57  ;;  %2492 = vadd.xlane.f32.xlu0 %v2491_v38 }
 0xe2f   : > { %v5912_v58 = vpop.eup %4730 }
 0xe30   : > { %v2494_v59 = vsel %vm925_vm13, %v5912_v58, 0.0 }
 0xe31   : > { %2495 = vadd.xlane.f32.xlu2 %v2494_v59 }
 0xe3d   : > { %2677 = vrot.lane.b32.xlu0 %v5865_v54, %s4892_s19 }
 0xe6f   : > { %v2631_v60 = vpop.xlane.xlu2 %2630 }
 0xe70   : > { %v2641_v25 = vsub.f32 %v2620_v37, %v2631_v60 }
 0xe72   : > { %v2645_v15 = vmul.f32 1.442695, %v2641_v25 }
 0xe74   : > { %4732 = vpow2.f32 %v2645_v15 }
 0xe77   : > { %v2634_v0 = vpop.xlane.xlu0 %2633  ;;  %v2475_v1 = vpop.xlane.xlu2 %2474 }
 0xe78   : > { %v2642_v2 = vsub.f32 %v2622_v61, %v2634_v0  ;;  %v2479_v47 = vsub.f32 %v2462_v29, %v2475_v1 }
 0xe7a   : > { %v5918_v6 = vpop.eup %4732  ;;  %v2647_v7 = vmul.f32 1.442695, %v2642_v2  ;;  %v2486_v9 = vmul.f32 1.442695, %v2479_v47 }
 0xe7b   : > { %v2653_v43 = vsel %vm925_vm13, %v5918_v6, 0.0 }
 0xe7c   : > { %4734 = vpow2.f32 %v2647_v7  ;;  %2654 = vadd.xlane.f32.xlu1 %v2653_v43 }
 0xe7d   : > { %4736 = vpow2.f32 %v2486_v9 }
 0xe7f   : > { %v2637_v11 = vpop.xlane.xlu0 %2636 }
 0xe80   : > { %v2643_v21 = vsub.f32 %v2625_v4, %v2637_v11 }
 0xe82   : > { %v4735_v5 = vpop.eup %4734  ;;  %v2649_v56 = vmul.f32 1.442695, %v2643_v21 }
 0xe83   : > { %v2656_v14 = vsel %vm925_vm13, %v4735_v5, 0.0  ;;  %v4737_v8 = vpop.eup %4736 }
 0xe84   : > { %4738 = vpow2.f32 %v2649_v56  ;;  %2657 = vadd.xlane.f32.xlu2 %v2656_v14  ;;  %v2497_v31 = vsel %vm925_vm13, %v4737_v8, 0.0 }
 0xe87   : > { %v2640_v18 = vpop.xlane.xlu1 %2639 }
 0xe88   : > { %v2644_v12 = vsub.f32 %v2627_v36, %v2640_v18 }
 0xe8a   : > { %v5923_v19 = vpop.eup %4738  ;;  %v2651_v13 = vmul.f32 1.442695, %v2644_v12 }
 0xe8b   : > { %v2659_v20 = vsel %vm925_vm13, %v5923_v19, 0.0 }
 0xe8c   : > { %4740 = vpow2.f32 %v2651_v13  ;;  %2660 = vadd.xlane.f32.xlu0 %v2659_v20  ;;  %2498 = vadd.xlane.f32.xlu2 %v2497_v31 }
 0xe92   : > { %v5928_v37 = vpop.eup %4740 }
 0xe93   : > { %v2662_v27 = vsel %vm925_vm13, %v5928_v37, 0.0 }
 0xe94   : > { %2663 = vadd.xlane.f32.xlu2 %v2662_v27  ;;  %v2490_v24 = vpop.xlane.xlu2 %2489 }
 0xe95   : > { %2675 = vrot.lane.b32.xlu1 %v5868_v63, %s4892_s19  ;;  %4742 = vrcp.f32 %v2490_v24 }
 0xe9b   : > { %v4743_v30 = vpop.eup %4742 }
 0xe9c   : > { %v2493_v29 = vpop.xlane.xlu0 %2492  ;;  %v2504_v35 = vmul.f32 %v4743_v30, %v4727_v48 }
 0xe9d   : > { %4744 = vrcp.f32 %v2493_v29  ;;  %2755 = vrot.lane.b32.xlu1 %v5870_v41, %s6394_s28 }
 0xea0   : > { %2995 = vrot.lane.b32.xlu0 %v5865_v54, %s6395_s24 }
 0xea3   : > { %v4745_v61 = vpop.eup %4744 }
 0xea4   : > { %v2505_v32 = vmul.f32 %v4745_v61, %v4729_v55  ;;  %v2496_v23 = vpop.xlane.xlu2 %2495 }
 0xea5   : > { %2912 = vrot.lane.b32.xlu1 %v5859_v34, %s6395_s24 }
 0xea6   : > { %v2508_v39 = vpack.c.bf16 %v2505_v32, %v2504_v35  ;;  %v5987_v35 = vld [vmem:[%s6360_s7 + $0x1] ss:$0 sm:$0xff] }
 0xea8   : > { %4189 = vmatmul.msk.bf16.vlgmr.msrb.gmra.mxu2 %vm925_vm13, %v2508_v39 }
 0xeac   : > { %2914 = vrot.lane.b32.xlu2 %v5870_v41, %s6395_s24  ;;  %v4518_v41 = vld [vmem:[%s6359_s6 + $0x48] sm:$0xff] }
 0xead   : > { %2753 = vrot.lane.b32.xlu1 %v5859_v34, %s6394_s28  ;;  %v4520_v34 = vld [vmem:[%s6359_s6 + $0x58] sm:$0xff]  ;;  %2573 = vmatpush.bf16.msra.mxu3 %v4518_v41 }
 0xeae   : > { %2732 = vmatpush.bf16.msra.mxu2 %v4520_v34 }
 0xeaf   : > { %v2678_v4 = vpop.permute.xlu0 %2677 }
 0xeb0   : > { %2693 = vmatpush.bf16.msrb.mxu1 %v2678_v4 }
 0xeb2   : > { %2733 = vmatpush.bf16.msra.mxu2 %v4519_v22 }
 0xeb4   : > { %2908 = vrot.lane.b32.xlu2 %v5857_v28, %s6395_s24 }
 0xeb5   : > { %2749 = vrot.lane.b32.xlu1 %v5857_v28, %s6394_s28  ;;  %v4517_v28 = vld [vmem:[%s6359_s6 + $0x40] sm:$0xff] }
 0xeb6   : > { %2574 = vmatpush.bf16.msra.mxu3 %v4517_v28 }
 0xebc   : > { %2910 = vrot.lane.b32.xlu2 %v5877_v3, %s6395_s24 }
 0xebd   : > { %2751 = vrot.lane.b32.xlu1 %v5877_v3, %s6394_s28 }
 0xeef   : > { %v2655_v36 = vpop.xlane.xlu1 %2654 }
 0xef7   : > { %v2658_v3 = vpop.xlane.xlu2 %2657 }
 0xef8   : > { %4746 = vrcp.f32 %v2658_v3 }
 0xef9   : > { %4748 = vrcp.f32 %v2655_v36 }
 0xefa   : > { %4750 = vrcp.f32 %v2496_v23 }
 0xefe   : > { %v4747_v44 = vpop.eup %4746 }
 0xeff   : > { %v2499_v42 = vpop.xlane.xlu2 %2498  ;;  %v4749_v16 = vpop.eup %4748  ;;  %v2670_v17 = vmul.f32 %v4747_v44, %v4735_v5 }
 0xf00   : > { %4752 = vrcp.f32 %v2499_v42  ;;  %v4751_v45 = vpop.eup %4750  ;;  %v2669_v48 = vmul.f32 %v4749_v16, %v5918_v6  ;;  %v2661_v38 = vpop.xlane.xlu0 %2660 }
 0xf01   : > { %v2506_v52 = vmul.f32 %v4751_v45, %v5912_v58 }
 0xf02   : > { %v2673_v55 = vpack.c.bf16 %v2670_v17, %v2669_v48 }
 0xf06   : > { %v4753_v46 = vpop.eup %4752 }
 0xf07   : > { %v2664_v49 = vpop.xlane.xlu2 %2663  ;;  %v2676_v50 = vpop.permute.xlu1 %2675  ;;  %v2507_v53 = vmul.f32 %v4753_v46, %v4737_v8 }
 0xf08   : > { %2694 = vmatpush.bf16.msrb.mxu1 %v2676_v50  ;;  %4754 = vrcp.f32 %v2664_v49 }
 0xf09   : > { %v2509_v57 = vpack.c.bf16 %v2507_v53, %v2506_v52  ;;  %4756 = vrcp.f32 %v2661_v38 }
 0xf0b   : > { %4203 = vmatmul.msk.bf16.vlgmr.msrb.gmra.mxu1 %vm925_vm13, %v2673_v55  ;;  %4190 = vmatmul.msk.bf16.gmra.mxu2 %vm925_vm13, %v2509_v57 }
 0xf0e   : > { %v4755_v0 = vpop.eup %4754 }
 0xf0f   : > { %v2915_v59 = vpop.permute.xlu2 %2914  ;;  %v2756_v60 = vpop.permute.xlu1 %2755  ;;  %v2672_v1 = vmul.f32 %v4755_v0, %v5928_v37 }
 0xf10   : > { %v2926_v25 = vsel %vm925_vm13, %v2915_v59, 0  ;;  %v2767_v15 = vsel %vm925_vm13, %v2756_v60, 0  ;;  %v4757_v58 = vpop.eup %4756 }
 0xf11   : > { %2775 = vmatpush.bf16.xpose.msrb.mxu3 %v2767_v15  ;;  %2934 = vmatpush.bf16.xpose.msrb.mxu2 %v2926_v25  ;;  %v2671_v2 = vmul.f32 %v4757_v58, %v5923_v19 }
 0xf12   : > { %v2996_v56 = vpop.permute.xlu0 %2995 }
 0xf13   : > { %v2674_v47 = vpack.c.bf16 %v2672_v1, %v2671_v2 }
 0xf17   : > { %v2913_v6 = vpop.permute.xlu1 %2912  ;;  %v2909_v24 = vpop.permute.xlu2 %2908 }
 0xf18   : > { %v2923_v7 = vsel %vm925_vm13, %v2913_v6, 0 }
 0xf19   : > { %2935 = vmatpush.bf16.xpose.msrb.mxu2 %v2923_v7 }
 0xf1b   : > { %4204 = vmatmul.msk.bf16.gmra.mxu1 %vm925_vm13, %v2674_v47 }
 0xf1f   : > { %v2754_v43 = vpop.permute.xlu1 %2753  ;;  %v2911_v30 = vpop.permute.xlu2 %2910 }
 0xf20   : > { %v2764_v9 = vsel %vm925_vm13, %v2754_v43, 0 }
 0xf21   : > { %2776 = vmatpush.bf16.xpose.msrb.mxu3 %v2764_v9 }
 0xf27   : > { %v2750_v27 = vpop.permute.xlu1 %2749 }
 0xf2b   : > { %v2537_v11 = vpop.f32.mrf.mxu2 }
 0xf2f   : > { %v2752_v29 = vpop.permute.xlu1 %2751 }
 0xf33   : > { %v2539_v21 = vpop.f32.mrf.mxu2 }
 0xf34   : > { %v2547_v5 = vpack.c.bf16 %v2539_v21, %v2537_v11 }
 0xf36   : > { %4199 = vmatmul.msk.bf16.vlgmr.msra.gmra.mxu3 %vm925_vm13, %v2547_v5 }
 0xf37   : > { %3011 = vmatpush.bf16.msra.mxu3 %v2996_v56 }
 0xf88   : > { %v2696_v14 = vpop.f32.mrf.mxu1 }
 0xf8e   : > { %v2542_v18 = vpop.f32.mrf.mxu2 }
 0xf90   : > { %v2698_v8 = vpop.f32.mrf.mxu1 }
 0xf91   : > { %v2706_v12 = vpack.c.bf16 %v2698_v8, %v2696_v14 }
 0xf93   : > { %4213 = vmatmul.msk.bf16.vlgmr.msra.gmra.mxu2 %vm925_vm13, %v2706_v12 }
 0xf96   : > { %v2544_v19 = vpop.f32.mrf.mxu2 }
 0xf97   : > { %v2548_v13 = vpack.c.bf16 %v2544_v19, %v2542_v18 }
 0xf98   : > { %v2701_v20 = vpop.f32.mrf.mxu1 }
 0xf99   : > { %4200 = vmatmul.msk.bf16.gmra.mxu3 %vm925_vm13, %v2548_v13 }
 0xfa0   : > { %v2703_v31 = vpop.f32.mrf.mxu1 }
 0xfa1   : > { %v2707_v37 = vpack.c.bf16 %v2703_v31, %v2701_v20 }
 0xfa3   : > { %4214 = vmatmul.msk.bf16.gmra.mxu2 %vm925_vm13, %v2707_v37 }
 0xfa9   : > { %4215 = vmatmul.msk.bf16.vlgmr.msrb.gmra.mxu3 %vm925_vm13, %v2750_v27 }
 0xfb3   : > { %4229 = vmatmul.msk.bf16.vlgmr.msrb.gmra.mxu2 %vm925_vm13, %v2909_v24 }
 0xfb9   : > { %4216 = vmatmul.msk.bf16.gmra.mxu3 %vm925_vm13, %v2752_v29  ;;  %v2576_v61 = vpop.f32.mrf.mxu3 }
 0xfba   : > { %v2586_v32 = vadd.f32 %v5987_v35, %v2576_v61 }
 0xfc1   : > { %v5990_v39 = vpop.f32.mrf.mxu3 }
 0xfc3   : > { %4230 = vmatmul.msk.bf16.gmra.mxu2 %vm925_vm13, %v2911_v30 }
0x1016   : > { %v2735_v4 = vpop.f32.mrf.mxu2 }
0x1017   : > { %v5992_v41 = vadd.f32 %v2735_v4, %v2586_v32 }
0x101c   : > { %v2581_v34 = vpop.f32.mrf.mxu3 }
0x101d   : > { %v2588_v28 = vadd.f32 %v5987_v35, %v2581_v34 }
0x101e   : > { %v5994_v23 = vpop.f32.mrf.mxu2 }
0x1024   : > { %v2583_v22 = vpop.f32.mrf.mxu3 }
0x1025   : > { %v2589_v42 = vadd.f32 %v5987_v35, %v2583_v22 }
0x1026   : > { %v2740_v3 = vpop.f32.mrf.mxu2 }
0x1027   : > { %v5997_v36 = vadd.f32 %v2740_v3, %v2588_v28 }
0x102c   : > { %v2778_v44 = vpop.f32.mrf.mxu3 }
0x102d   : > { %v2779_v16 = vadd.f32 %v5892_v51, %v2778_v44 }
0x102e   : > { %v2742_v45 = vpop.f32.mrf.mxu2 }
0x102f   : > { %v6001_v17 = vadd.f32 %v2742_v45, %v2589_v42  ;;  %v2788_v46 = vsel %vm925_vm13, %v2779_v16, -inf }
0x1030   : > { %2789 = vmax.xlane.f32.xlu1 %v2788_v46 }
0x1034   : > { %v2780_v48 = vpop.f32.mrf.mxu3 }
0x1035   : > { %v2781_v49 = vadd.f32 %v5892_v51, %v2780_v48 }
0x1036   : > { %v2937_v50 = vpop.f32.mrf.mxu2 }
0x1037   : > { %v2791_v52 = vsel %vm925_vm13, %v2781_v49, -inf  ;;  %v2938_v58 = vadd.f32 %v5892_v51, %v2937_v50 }
0x1038   : > { %2792 = vmax.xlane.f32.xlu0 %v2791_v52 }
0x1039   : > { %v2947_v2 = vsel %vm925_vm13, %v2938_v58, -inf }
0x103c   : > { %v2783_v53 = vpop.f32.mrf.mxu3 }
0x103d   : > { %v6007_v55 = vadd.f32 %v5892_v51, %v2783_v53 }
0x103e   : > { %v2939_v57 = vpop.f32.mrf.mxu2 }
0x103f   : > { %v2940_v38 = vadd.f32 %v5892_v51, %v2939_v57  ;;  %v2794_v59 = vsel %vm925_vm13, %v6007_v55, -inf }
0x1040   : > { %2795 = vmax.xlane.f32.xlu0 %v2794_v59 }
0x1041   : > { %v2950_v60 = vsel %vm925_vm13, %v2940_v38, -inf }
0x1042   : > { %2951 = vmax.xlane.f32.xlu2 %v2950_v60 }
0x1044   : > { %v2785_v25 = vpop.f32.mrf.mxu3 }
0x1045   : > { %v2786_v15 = vadd.f32 %v5892_v51, %v2785_v25 }
0x1046   : > { %v2942_v1 = vpop.f32.mrf.mxu2 }
0x1047   : > { %v2797_v0 = vsel %vm925_vm13, %v2786_v15, -inf  ;;  %v2943_v6 = vadd.f32 %v5892_v51, %v2942_v1 }
0x1048   : > { %2798 = vmax.xlane.f32.xlu0 %v2797_v0 }
0x1049   : > { %2836 = vrot.lane.b32.xlu1 %v5865_v54, %s6394_s28  ;;  %v2953_v7 = vsel %vm925_vm13, %v2943_v6, -inf }
0x104e   : > { %v2944_v47 = vpop.f32.mrf.mxu2 }
0x104f   : > { %v2945_v43 = vadd.f32 %v5892_v51, %v2944_v47 }
0x1050   : > { %2948 = vmax.xlane.f32.xlu0 %v2947_v2 }
0x1051   : > { %v2956_v9 = vsel %vm925_vm13, %v2945_v43, -inf }
0x1058   : > { %2954 = vmax.xlane.f32.xlu0 %v2953_v7 }
0x1060   : > { %2957 = vmax.xlane.f32.xlu0 %v2956_v9 }
0x10a3   : > { %v2790_v11 = vpop.xlane.xlu1 %2789 }
0x10a4   : > { %v2800_v21 = vsub.f32 %v2779_v16, %v2790_v11 }
0x10a6   : > { %v2804_v54 = vmul.f32 1.442695, %v2800_v21 }
0x10a8   : > { %4758 = vpow2.f32 %v2804_v54 }
0x10ab   : > { %v2793_v5 = vpop.xlane.xlu0 %2792 }
0x10ac   : > { %v2801_v56 = vsub.f32 %v2781_v49, %v2793_v5 }
0x10ae   : > { %v6023_v14 = vpop.eup %4758  ;;  %v2806_v18 = vmul.f32 1.442695, %v2801_v56 }
0x10af   : > { %v2812_v8 = vsel %vm925_vm13, %v6023_v14, 0.0 }
0x10b0   : > { %4760 = vpow2.f32 %v2806_v18  ;;  %2813 = vadd.xlane.f32.xlu1 %v2812_v8 }
0x10b3   : > { %v2796_v12 = vpop.xlane.xlu0 %2795 }
0x10b5   : > { %v2952_v19 = vpop.xlane.xlu2 %2951 }
0x10b6   : > { %v2960_v51 = vsub.f32 %v2940_v38, %v2952_v19  ;;  %v4761_v13 = vpop.eup %4760  ;;  %v2802_v38 = vsub.f32 %v6007_v55, %v2796_v12 }
0x10b7   : > { %v2815_v31 = vsel %vm925_vm13, %v4761_v13, 0.0 }
0x10b8   : > { %v2965_v20 = vmul.f32 1.442695, %v2960_v51  ;;  %2816 = vadd.xlane.f32.xlu2 %v2815_v31  ;;  %v2808_v59 = vmul.f32 1.442695, %v2802_v38 }
0x10ba   : > { %4762 = vpow2.f32 %v2965_v20 }
0x10bb   : > { %v2799_v37 = vpop.xlane.xlu0 %2798  ;;  %v2837_v27 = vpop.permute.xlu1 %2836 }
0x10bc   : > { %2852 = vmatpush.bf16.msrb.mxu0 %v2837_v27  ;;  %v2803_v22 = vsub.f32 %v2786_v15, %v2799_v37 }
0x10be   : > { %v2810_v44 = vmul.f32 1.442695, %v2803_v22 }
0x10c0   : > { %v4763_v24 = vpop.eup %4762 }
0x10c1   : > { %v2974_v29 = vsel %vm925_vm13, %v4763_v24, 0.0 }
0x10c2   : > { %2975 = vadd.xlane.f32.xlu0 %v2974_v29 }
0x10c3   : > { %v2949_v30 = vpop.xlane.xlu0 %2948 }
0x10c4   : > { %v2959_v61 = vsub.f32 %v2938_v58, %v2949_v30  ;;  %v4522_v30 = vld [vmem:[%s6359_s6 + $0x68] sm:$0xff] }
0x10c5   : > { %2891 = vmatpush.bf16.msra.mxu1 %v4522_v30 }
0x10c6   : > { %v2963_v32 = vmul.f32 1.442695, %v2959_v61  ;;  %v4521_v61 = vld [vmem:[%s6359_s6 + $0x60] sm:$0xff] }
0x10c8   : > { %4764 = vpow2.f32 %v2963_v32  ;;  %v4524_v32 = vld [vmem:[%s6359_s6 + $0x78] sm:$0xff] }
0x10c9   : > { %2892 = vmatpush.bf16.msra.mxu1 %v4521_v61  ;;  %v4314_v61 = vld [vmem:[%s6363_s10 + $0xe8] sm:$0xf0] }
0x10cb   : > { %v2955_v4 = vpop.xlane.xlu0 %2954 }
0x10cc   : > { %v2961_v34 = vsub.f32 %v2943_v6, %v2955_v4  ;;  %v4523_v4 = vld [vmem:[%s6359_s6 + $0x70] sm:$0xff] }
0x10ce   : > { %v4765_v28 = vpop.eup %4764  ;;  %v2967_v3 = vmul.f32 1.442695, %v2961_v34 }
0x10cf   : > { %v2971_v42 = vsel %vm925_vm13, %v4765_v28, 0.0 }
0x10d0   : > { %4766 = vpow2.f32 %v2967_v3  ;;  %2972 = vadd.xlane.f32.xlu2 %v2971_v42 }
0x10d1   : > { %4768 = vpow2.f32 %v2810_v44 }
0x10d3   : > { %v2958_v49 = vpop.xlane.xlu0 %2957 }
0x10d4   : > { %v2962_v50 = vsub.f32 %v2945_v43, %v2958_v49 }
0x10d6   : > { %2834 = vrot.lane.b32.xlu0 %v5868_v63, %s6394_s28  ;;  %v4767_v16 = vpop.eup %4766  ;;  %v2969_v52 = vmul.f32 1.442695, %v2962_v50  ;;  %s6309_s28 = scalar_lea.vmem [#allocation2], %s3756_s21  ;;  %s4847_s21 = scalar_lea.hbm %s6369_s16, 96 }
0x10d7   : > { %v2977_v45 = vsel %vm925_vm13, %v4767_v16, 0.0  ;;  %v4769_v46 = vpop.eup %4768  ;;  %s3678_s23 = sshll.u32 %s6309_s28, 4  ;;  %s3679_s23 = int_to_ptr.vmem [resolvable:$true] %s3678_s23 }
0x10d8   : > { %2978 = vadd.xlane.f32.xlu1 %v2977_v45  ;;  %v2821_v48 = vsel %vm925_vm13, %v4769_v46, 0.0  ;;  %4770 = vpow2.f32 %v2969_v52 }
0x10d9   : > { %4772 = vpow2.f32 %v2808_v59  ;;  %v2587_v59 = vadd.f32 %v5987_v35, %v5990_v39 }
0x10de   : > { %v4771_v53 = vpop.eup %4770 }
0x10df   : > { %v2980_v57 = vsel %vm925_vm13, %v4771_v53, 0.0  ;;  %v4773_v60 = vpop.eup %4772 }
0x10e0   : > { %2822 = vadd.xlane.f32.xlu1 %v2821_v48  ;;  %v2818_v25 = vsel %vm925_vm13, %v4773_v60, 0.0 }
0x10e8   : > { %2993 = vrot.lane.b32.xlu2 %v5868_v63, %s6395_s24  ;;  %s4557_s24 = sshll.u32 %s5003_s25, 5  ;;  %s3666_s25 = scalar_lea.sflag [#allocation3], %s523_s18 }
0x10e9   : > { %s3677_s29 = scalar_lea.hbm %s6369_s16, %s4557_s24 }
0x10ea   : > { %s3680_s30 = sshll.u32 %s3677_s29, 4  ;;  %s3681_s30 = int_to_ptr.hbm [resolvable:$true] %s3680_s30 }
0x10eb   : > { %s4841_s1 = sshra.s32 %s3681_s30, 4  ;;  %s4842_s1 = int_to_ptr.hbm [resolvable:$true] %s4841_s1 }
0x10ec   : > { %s4843_s26 = scalar_lea.hbm %s4842_s1, 32  ;;  %p4848_p0 = scmp.lt.s32.totalorder %s4842_s1, %s6369_s16 }
0x10ed   : > { %p4844_p11 = scmp.ne.s32.totalorder %s4842_s1, %s4843_s26  ;;  %p4849_p1 = scmp.lt.s32.totalorder %s4847_s21, %s4843_s26 }
0x10ef   : > { %p4845_p12 = pnand %p4844_p11, %p5020_p5  ;;  %p4850_p2 = por %p4849_p1, %p4848_p0 }
0x10f1   : > { %p4846_p13 = pneg %p4845_p12 }
0x10f3   : > { %p4851_p3 = pnand %p4850_p2, %p4846_p13 }
0x1100   : > { %2981 = vadd.xlane.f32.xlu0 %v2980_v57 }
0x1111   : > { %2819 = vadd.xlane.f32.xlu2 %v2818_v25 }
0x1123   : > { %v2814_v0 = vpop.xlane.xlu1 %2813 }
0x112b   : > { %v2817_v15 = vpop.xlane.xlu2 %2816 }
0x112c   : > { %4774 = vrcp.f32 %v2817_v15  ;;  %v2746_v15 = vadd.f32 %v5994_v23, %v2587_v59 }
0x112d   : > { %4776 = vrcp.f32 %v2814_v0 }
0x1132   : > { %v4775_v58 = vpop.eup %4774 }
0x1133   : > { %v4777_v2 = vpop.eup %4776  ;;  %v2829_v6 = vmul.f32 %v4775_v58, %v4761_v13 }
0x1134   : > { %v2828_v55 = vmul.f32 %v4777_v2, %v6023_v14 }
0x1135   : > { %v2976_v63 = vpop.xlane.xlu0 %2975 }
0x1136   : > { %4778 = vrcp.f32 %v2976_v63  ;;  %v2832_v43 = vpack.c.bf16 %v2829_v6, %v2828_v55 }
0x113c   : > { %v4779_v47 = vpop.eup %4778 }
0x113d   : > { %v2988_v11 = vmul.f32 %v4779_v47, %v4763_v24 }
0x1143   : > { %v2973_v1 = vpop.xlane.xlu2 %2972 }
0x1144   : > { %4780 = vrcp.f32 %v2973_v1 }
0x1148   : > { %v2835_v7 = vpop.permute.xlu0 %2834 }
0x1149   : > { %2853 = vmatpush.bf16.msrb.mxu0 %v2835_v7 }
0x114a   : > { %v4781_v9 = vpop.eup %4780 }
0x114b   : > { %v2987_v21 = vmul.f32 %v4781_v9, %v4765_v28  ;;  %v2994_v54 = vpop.permute.xlu2 %2993  ;;  %v2979_v56 = vpop.xlane.xlu1 %2978 }
0x114c   : > { %4217 = vmatmul.msk.bf16.vlgmr.msrb.gmra.mxu0 %vm925_vm13, %v2832_v43  ;;  %3012 = vmatpush.bf16.msra.mxu3 %v2994_v54  ;;  %4782 = vrcp.f32 %v2979_v56 }
0x114d   : > { %v2991_v5 = vpack.c.bf16 %v2988_v11, %v2987_v21  ;;  %3050 = vmatpush.bf16.msra.mxu0 %v4524_v32 }
0x114f   : > { %4231 = vmatmul.msk.bf16.vlgmr.msra.gmra.mxu3 %vm925_vm13, %v2991_v5 }
0x1151   : > { %3051 = vmatpush.bf16.msra.mxu0 %v4523_v4  ;;  %v4304_v4 = vld [vmem:[%s6363_s10 + $0xd0] sm:$0xf] }
0x1152   : > { %v4783_v8 = vpop.eup %4782 }
0x1153   : > { %v2989_v12 = vmul.f32 %v4783_v8, %v4767_v16  ;;  %v2823_v13 = vpop.xlane.xlu1 %2822 }
0x1173   : > { %v2982_v18 = vpop.xlane.xlu0 %2981 }
0x1174   : > { %4784 = vrcp.f32 %v2982_v18 }
0x1175   : > { %4786 = vrcp.f32 %v2823_v13  ;;  %v4539_v13 = vld [vmem:[%s6363_s10 + $0xf4] sm:$0xf] }
0x117a   : > { %v4785_v14 = vpop.eup %4784 }
0x117b   : > { %v2990_v19 = vmul.f32 %v4785_v14, %v4771_v53  ;;  %v4787_v31 = vpop.eup %4786 }
0x117c   : > { %v2831_v27 = vmul.f32 %v4787_v31, %v4769_v46  ;;  %v4322_v31 = vld [vmem:[%s6363_s10 + $0xf8] sm:$0xf0] }
0x117d   : > { %v2992_v51 = vpack.c.bf16 %v2990_v19, %v2989_v12  ;;  %v4320_v19 = vld [vmem:[%s6363_s10 + $0xf0] sm:$0xf] }
0x117f   : > { %4232 = vmatmul.msk.bf16.gmra.mxu3 %vm925_vm13, %v2992_v51  ;;  %v4540_v51 = vld [vmem:[%s6363_s10 + $0xf4] sm:$0xf0] }
0x1184   : > { %v2820_v20 = vpop.xlane.xlu2 %2819 }
0x1185   : > { %4788 = vrcp.f32 %v2820_v20  ;;  %v4321_v20 = vor.u32 %v4540_v51, %v4320_v19 }
0x1187   : > { %3275 = vmatpush.bf16.msrb.mxu1 %v4321_v20 }
0x118b   : > { %v4789_v37 = vpop.eup %4788 }
0x118c   : > { %v2830_v24 = vmul.f32 %v4789_v37, %v4773_v60  ;;  %v4325_v37 = vor.u32 %v4539_v13, %v4322_v31 }
0x118e   : > { %v2833_v29 = vpack.c.bf16 %v2831_v27, %v2830_v24  ;;  %3294 = vmatpush.bf16.msra.mxu2 %v4325_v37  ;;  %v4312_v27 = vld [vmem:[%s6363_s10 + $0xe0] sm:$0xf]  ;;  %v4538_v24 = vld [vmem:[%s6363_s10 + $0xe4] sm:$0xf0] }
0x118f   : > { %v4313_v30 = vor.u32 %v4538_v24, %v4312_v27 }
0x1190   : > { %4218 = vmatmul.msk.bf16.gmra.mxu0 %vm925_vm13, %v2833_v29  ;;  %v4537_v29 = vld [vmem:[%s6363_s10 + $0xe4] sm:$0xf] }
0x1191   : > { %v4317_v32 = vor.u32 %v4537_v29, %v4314_v61  ;;  %3276 = vmatpush.bf16.msrb.mxu1 %v4313_v30 }
0x1193   : > { %3295 = vmatpush.bf16.msra.mxu2 %v4317_v32  ;;  %v4615_v32 = vld [vmem:[%s6361_s8 + $0x1] ss:$0 sm:$0xff] }
0x11c9   : > { %v2855_v34 = vpop.f32.mrf.mxu0 }
0x11d1   : > { %v2857_v28 = vpop.f32.mrf.mxu0 }
0x11d2   : > { %v2865_v22 = vpack.c.bf16 %v2857_v28, %v2855_v34  ;;  %v3014_v3 = vpop.f32.mrf.mxu3  ;;  %v4536_v34 = vld [vmem:[%s6363_s10 + $0xd4] sm:$0xf0]  ;;  %v4535_v28 = vld [vmem:[%s6363_s10 + $0xd4] sm:$0xf] }
0x11d4   : > { %4227 = vmatmul.msk.bf16.vlgmr.msra.gmra.mxu1 %vm925_vm13, %v2865_v22  ;;  %v4305_v22 = vor.u32 %v4536_v34, %v4304_v4 }
0x11d6   : > { %3277 = vmatpush.bf16.msrb.mxu1 %v4305_v22  ;;  %v4616_v22 = vld [vmem:[%s6362_s9 + $0x1] ss:$0 sm:$0xff] }
0x11da   : > { %v3016_v42 = vpop.f32.mrf.mxu3 }
0x11db   : > { %v3024_v44 = vpack.c.bf16 %v3016_v42, %v3014_v3  ;;  %v4306_v3 = vld [vmem:[%s6363_s10 + $0xd8] sm:$0xf0] }
0x11dc   : > { %v4309_v42 = vor.u32 %v4535_v28, %v4306_v3 }
0x11dd   : > { %4241 = vmatmul.msk.bf16.vlgmr.msra.gmra.mxu0 %vm925_vm13, %v3024_v44  ;;  %v4296_v44 = vld [vmem:[%s6363_s10 + $0xc0] sm:$0xf] }
0x11de   : > { %3296 = vmatpush.bf16.msra.mxu2 %v4309_v42 }
0x1202   : > { %v3019_v16 = vpop.f32.mrf.mxu3 }
0x120a   : > { %v3021_v45 = vpop.f32.mrf.mxu3 }
0x120b   : > { %v3025_v46 = vpack.c.bf16 %v3021_v45, %v3019_v16  ;;  %v4534_v16 = vld [vmem:[%s6363_s10 + $0xc4] sm:$0xf0]  ;;  %v4533_v45 = vld [vmem:[%s6363_s10 + $0xc4] sm:$0xf] }
0x120d   : > { %4242 = vmatmul.msk.bf16.gmra.mxu0 %vm925_vm13, %v3025_v46  ;;  %v2860_v48 = vpop.f32.mrf.mxu0  ;;  %v4297_v46 = vor.u32 %v4534_v16, %v4296_v44 }
0x120f   : > { %3278 = vmatpush.bf16.msrb.mxu1 %v4297_v46 }
0x1215   : > { %v2862_v49 = vpop.f32.mrf.mxu0 }
0x1216   : > { %v2866_v50 = vpack.c.bf16 %v2862_v49, %v2860_v48  ;;  %v4298_v48 = vld [vmem:[%s6363_s10 + $0xc8] sm:$0xf0] }
0x1217   : > { %v4301_v49 = vor.u32 %v4533_v45, %v4298_v48 }
0x1218   : > { %4228 = vmatmul.msk.bf16.gmra.mxu1 %vm925_vm13, %v2866_v50  ;;  %v4288_v50 = vld [vmem:[%s6363_s10 + $0xb0] sm:$0xf] }
0x1219   : > { %3297 = vmatpush.bf16.msra.mxu2 %v4301_v49 }
0x1251   : > { %v2894_v52 = vpop.f32.mrf.mxu1 }
0x1252   : > { %v2904_v53 = vadd.f32 %v2894_v52, %v5992_v41  ;;  %v4532_v52 = vld [vmem:[%s6363_s10 + $0xb4] sm:$0xf0] }
0x1259   : > { %v2896_v25 = vpop.f32.mrf.mxu1 }
0x125a   : > { %v3053_v57 = vpop.f32.mrf.mxu0  ;;  %v2905_v0 = vadd.f32 %v2896_v25, %v2746_v15  ;;  %v4280_v25 = vld [vmem:[%s6363_s10 + $0xa0] sm:$0xf]  ;;  %v4530_v15 = vld [vmem:[%s6363_s10 + $0xa4] sm:$0xf0] }
0x125b   : > { %v3063_v38 = vadd.f32 %v3053_v57, %v2904_v53  ;;  %v4531_v53 = vld [vmem:[%s6363_s10 + $0xb4] sm:$0xf]  ;;  %v4289_v57 = vor.u32 %v4532_v52, %v4288_v50 }
0x125d   : > { %v6064_v60 = vadd.f32 %v3063_v38, %v5657_v62  ;;  %v4290_v38 = vld [vmem:[%s6363_s10 + $0xb8] sm:$0xf0]  ;;  %3279 = vmatpush.bf16.msrb.mxu1 %v4289_v57 }
0x125e   : > { %v4293_v59 = vor.u32 %v4531_v53, %v4290_v38 }
0x125f   : > { %3075 = vadd.xlane.f32.xlu0 %v6064_v60 }
0x1260   : > { %3298 = vmatpush.bf16.msra.mxu2 %v4293_v59 }
0x1262   : > { %v3055_v63 = vpop.f32.mrf.mxu0 }
0x1263   : > { %v3064_v58 = vadd.f32 %v3055_v63, %v2905_v0  ;;  %v4529_v0 = vld [vmem:[%s6363_s10 + $0xa4] sm:$0xf]  ;;  %v4281_v63 = vor.u32 %v4530_v15, %v4280_v25 }
0x1265   : > { %v6069_v1 = vadd.f32 %v3064_v58, %v5661_v26  ;;  %v4282_v58 = vld [vmem:[%s6363_s10 + $0xa8] sm:$0xf0]  ;;  %3280 = vmatpush.bf16.msrb.mxu1 %v4281_v63 }
0x1267   : > { %3077 = vadd.xlane.f32.xlu2 %v6069_v1 }
0x128a   : > { %v3058_v41 = vpop.f32.mrf.mxu0 }
0x1292   : > { %v3060_v55 = vpop.f32.mrf.mxu0 }
0x1295   : > { %v2899_v2 = vpop.f32.mrf.mxu1 }
0x1296   : > { %v2906_v35 = vadd.f32 %v2899_v2, %v5997_v36  ;;  %v4272_v2 = vld [vmem:[%s6363_s10 + $0x90] sm:$0xf] }
0x1298   : > { %v3065_v39 = vadd.f32 %v3058_v41, %v2906_v35  ;;  %v4285_v41 = vor.u32 %v4529_v0, %v4282_v58  ;;  %v4528_v35 = vld [vmem:[%s6363_s10 + $0x94] sm:$0xf0] }
0x129a   : > { %v6074_v62 = vadd.f32 %v3065_v39, %v5665_v33  ;;  %3299 = vmatpush.bf16.msra.mxu2 %v4285_v41  ;;  %v4527_v39 = vld [vmem:[%s6363_s10 + $0x94] sm:$0xf] }
0x129c   : > { %3079 = vadd.xlane.f32.xlu1 %v6074_v62 }
0x129d   : > { %v2901_v23 = vpop.f32.mrf.mxu1 }
0x129e   : > { %v2907_v6 = vadd.f32 %v2901_v23, %v6001_v17  ;;  %v4273_v23 = vor.u32 %v4528_v35, %v4272_v2 }
0x12a0   : > { %v3066_v7 = vadd.f32 %v3060_v55, %v2907_v6  ;;  %v4274_v6 = vld [vmem:[%s6363_s10 + $0x98] sm:$0xf0]  ;;  %3281 = vmatpush.bf16.msrb.mxu1 %v4273_v23 }
0x12a1   : > { %v4277_v55 = vor.u32 %v4527_v39, %v4274_v6 }
0x12a2   : > { %v6079_v26 = vadd.f32 %v3066_v7, %v5669_v40 }
0x12a3   : > { %3300 = vmatpush.bf16.msra.mxu2 %v4277_v55 }
0x12a4   : > { %3081 = vadd.xlane.f32.xlu0 %v6079_v26 }
0x12d2   : > { %v3076_v47 = vpop.xlane.xlu0 %3075 }
0x12d3   : > { %v3083_v43 = vmul.f32 %v3076_v47, %v5046_v10 }
0x12d5   : > { %v6084_v36 = vsub.f32 %v6064_v60, %v3083_v43  ;;  %v4264_v43 = vld [vmem:[%s6363_s10 + $0x80] sm:$0xf] }
0x12d7   : > { %v3091_v33 = vmul.f32 %v6084_v36, %v6084_v36 }
0x12d9   : > { %3095 = vadd.xlane.f32.xlu2 %v3091_v33  ;;  %v4526_v33 = vld [vmem:[%s6363_s10 + $0x84] sm:$0xf0] }
0x12da   : > { %v3078_v9 = vpop.xlane.xlu2 %3077 }
0x12db   : > { %v3084_v17 = vmul.f32 %v3078_v9, %v5046_v10  ;;  %v4525_v9 = vld [vmem:[%s6363_s10 + $0x84] sm:$0xf] }
0x12dd   : > { %v6090_v11 = vsub.f32 %v6069_v1, %v3084_v17  ;;  %v4265_v17 = vor.u32 %v4526_v33, %v4264_v43 }
0x12df   : > { %v3092_v40 = vmul.f32 %v6090_v11, %v6090_v11  ;;  %3282 = vmatpush.bf16.msrb.mxu1 %v4265_v17  ;;  %v4548_v17 = vld [vmem:[%s6365_s12 + $0xb8] sm:$0xff] }
0x12e0   : > { %3523 = vmatpush.bf16.msrb.mxu3 %v4548_v17 }
0x12e1   : > { %3097 = vadd.xlane.f32.xlu1 %v3092_v40  ;;  %v4266_v40 = vld [vmem:[%s6363_s10 + $0x88] sm:$0xf0] }
0x130f   : > { %v3080_v21 = vpop.xlane.xlu1 %3079 }
0x1310   : > { %v3085_v54 = vmul.f32 %v3080_v21, %v5046_v10 }
0x1312   : > { %v6096_v5 = vsub.f32 %v6074_v62, %v3085_v54  ;;  %v4269_v54 = vor.u32 %v4525_v9, %v4266_v40  ;;  %v4546_v40 = vld [vmem:[%s6365_s12 + $0xa8] sm:$0xff] }
0x1314   : > { %v3093_v56 = vmul.f32 %v6096_v5, %v6096_v5  ;;  %3301 = vmatpush.bf16.msra.mxu2 %v4269_v54  ;;  %v4545_v54 = vld [vmem:[%s6365_s12 + $0xa0] sm:$0xff] }
0x1316   : > { %3099 = vadd.xlane.f32.xlu0 %v3093_v56 }
0x1317   : > { %v3082_v18 = vpop.xlane.xlu0 %3081 }
0x1318   : > { %v3086_v8 = vmul.f32 %v3082_v18, %v5046_v10 }
0x131a   : > { %v6102_v14 = vsub.f32 %v6079_v26, %v3086_v8 }
0x131c   : > { %v3094_v12 = vmul.f32 %v6102_v14, %v6102_v14 }
0x131e   : > { %3101 = vadd.xlane.f32.xlu2 %v3094_v12 }
0x134c   : > { %v3096_v7 = vpop.xlane.xlu2 %3095 }
0x134d   : > { %v3103_v47 = vmul.f32 %v3096_v7, %v5046_v10 }
0x134f   : > { %v3107_v21 = vadd.f32 1e-05, %v3103_v47 }
0x1351   : > { %4790 = vrsqrt.f32 %v3107_v21  ;;  %vm3117_vm7 = vweird.f32 %v3107_v21 }
0x1354   : > { %v3098_v56 = vpop.xlane.xlu1 %3097 }
0x1355   : > { %v3104_v18 = vmul.f32 %v3098_v56, %v5046_v10  ;;  %v4554_v56 = vld [vmem:[%s6365_s12 + $0xe8] sm:$0xff] }
0x1357   : > { %v4791_v8 = vpop.eup %4790  ;;  %v3108_v12 = vadd.f32 1e-05, %v3104_v18  ;;  %v4544_v18 = vld [vmem:[%s6365_s12 + $0x98] sm:$0xff] }
0x1358   : > { %v3112_v19 = vmul.f32 %v4791_v8, %v3107_v21  ;;  %vm3118_vm13 = vweird.f32 %v4791_v8  ;;  %v4555_v21 = vld [vmem:[%s6365_s12 + $0xf0] sm:$0xff] }
0x1359   : > { %4792 = vrsqrt.f32 %v3108_v12  ;;  %vm3119_vm8 = vmor %vm3117_vm7, %vm3118_vm13  ;;  %vm3127_vm10 = vweird.f32 %v3108_v12 }
0x135a   : > { %v3113_v51 = vmul.f32 %v4791_v8, %v3112_v19  ;;  %v4552_v19 = vld [vmem:[%s6365_s12 + $0xd8] sm:$0xff] }
0x135c   : > { %v3114_v13 = vmul.f32 0.5, %v3113_v51  ;;  %v4261_v51 = vld [vmem:[%s6364_s11 + $0x2] sm:$0x3] }
0x135e   : > { %v3115_v20 = vsub.f32 1.5, %v3114_v13  ;;  %v4542_v13 = vld [vmem:[%s6365_s12 + $0x88] sm:$0xff] }
0x135f   : > { %v4793_v31 = vpop.eup %4792 }
0x1360   : > { %v3116_v37 = vmul.f32 %v4791_v8, %v3115_v20  ;;  %v3122_v27 = vmul.f32 %v4793_v31, %v3108_v12  ;;  %vm3128_vm9 = vweird.f32 %v4793_v31  ;;  %v4543_v12 = vld [vmem:[%s6365_s12 + $0x90] sm:$0xff]  ;;  %v6255_v20 = vperm.slane %v4261_v51, 0 }
0x1361   : > { %vm3129_vm11 = vmor %vm3127_vm10, %vm3128_vm9 }
0x1362   : > { %v3123_v24 = vmul.f32 %v4793_v31, %v3122_v27  ;;  %v3120_v29 = vsel %vm3119_vm8, %v4791_v8, %v3116_v37  ;;  %v4553_v8 = vld [vmem:[%s6365_s12 + $0xe0] sm:$0xff] }
0x1363   : > { %v3151_v4 = vmul.f32 %v3120_v29, %v6084_v36  ;;  %v4541_v37 = vld [vmem:[%s6365_s12 + $0x80] sm:$0xff]  ;;  %v4550_v29 = vld [vmem:[%s6365_s12 + $0xc8] sm:$0xff] }
0x1364   : > { %v3124_v30 = vmul.f32 0.5, %v3123_v24 }
0x1365   : > { %v3158_v3 = vmul.f32 %v4615_v32, %v3151_v4  ;;  %v4549_v4 = vld [vmem:[%s6365_s12 + $0xc0] sm:$0xff] }
0x1366   : > { %v3125_v61 = vsub.f32 1.5, %v3124_v30 }
0x1367   : > { %v3165_v16 = vadd.f32 %v4616_v22, %v3158_v3 }
0x1368   : > { %v3126_v34 = vmul.f32 %v4793_v31, %v3125_v61  ;;  %v6267_v61 = vperm.slane %v4261_v51, 1 }
0x136a   : > { %v3130_v28 = vsel %vm3129_vm11, %v4793_v31, %v3126_v34  ;;  %v4551_v31 = vld [vmem:[%s6365_s12 + $0xd0] sm:$0xff] }
0x136b   : > { %v3152_v42 = vmul.f32 %v3130_v28, %v6090_v11 }
0x136d   : > { %v3159_v44 = vmul.f32 %v4615_v32, %v3152_v42 }
0x136f   : > { %v3166_v45 = vadd.f32 %v4616_v22, %v3159_v44 }
0x1371   : > { %v3169_v46 = vpack.c.bf16 %v3166_v45, %v3165_v16 }
0x1373   : > { %3283 = vmatmul.bf16.vlgmr.msrb.gmra.mxu1 %v3169_v46  ;;  %3302 = vmatmul.bf16.vlgmr.msra.gmra.mxu2 %v3169_v46 }
0x1389   : > { %v3100_v48 = vpop.xlane.xlu0 %3099 }
0x138a   : > { %v3105_v36 = vmul.f32 %v3100_v48, %v5046_v10 }
0x138c   : > { %v3109_v49 = vadd.f32 1e-05, %v3105_v36 }
0x138e   : > { %4794 = vrsqrt.f32 %v3109_v49  ;;  %vm3137_vm14 = vweird.f32 %v3109_v49 }
0x1391   : > { %v3102_v50 = vpop.xlane.xlu2 %3101 }
0x1392   : > { %v3106_v52 = vmul.f32 %v3102_v50, %v5046_v10 }
0x1394   : > { %v4795_v53 = vpop.eup %4794  ;;  %v3110_v57 = vadd.f32 1e-05, %v3106_v52 }
0x1395   : > { %v3132_v38 = vmul.f32 %v4795_v53, %v3109_v49  ;;  %vm3138_vm12 = vweird.f32 %v4795_v53 }
0x1396   : > { %4796 = vrsqrt.f32 %v3110_v57  ;;  %vm3139_vm15 = vmor %vm3137_vm14, %vm3138_vm12  ;;  %vm3147_vm1 = vweird.f32 %v3110_v57 }
0x1397   : > { %v3133_v59 = vmul.f32 %v4795_v53, %v3132_v38 }
0x1399   : > { %v3134_v11 = vmul.f32 0.5, %v3133_v59 }
0x139b   : > { %v3135_v25 = vsub.f32 1.5, %v3134_v11 }
0x139c   : > { %v4797_v15 = vpop.eup %4796 }
0x139d   : > { %v3136_v0 = vmul.f32 %v4795_v53, %v3135_v25  ;;  %v3142_v63 = vmul.f32 %v4797_v15, %v3110_v57  ;;  %vm3148_vm0 = vweird.f32 %v4797_v15 }
0x139e   : > { %vm3149_vm2 = vmor %vm3147_vm1, %vm3148_vm0 }
0x139f   : > { %v3143_v58 = vmul.f32 %v4797_v15, %v3142_v63  ;;  %v3140_v41 = vsel %vm3139_vm15, %v4795_v53, %v3136_v0 }
0x13a0   : > { %v3153_v39 = vmul.f32 %v3140_v41, %v6096_v5  ;;  %v4547_v5 = vld [vmem:[%s6365_s12 + $0xb0] sm:$0xff] }
0x13a1   : > { %v3144_v2 = vmul.f32 0.5, %v3143_v58  ;;  %3524 = vmatpush.bf16.msrb.mxu3 %v4547_v5 }
0x13a2   : > { %v3160_v7 = vmul.f32 %v4615_v32, %v3153_v39 }
0x13a3   : > { %v3145_v35 = vsub.f32 1.5, %v3144_v2 }
0x13a4   : > { %v3167_v43 = vadd.f32 %v4616_v22, %v3160_v7 }
0x13a5   : > { %v3146_v23 = vmul.f32 %v4797_v15, %v3145_v35  ;;  %3525 = vmatpush.bf16.msrb.mxu3 %v4546_v40 }
0x13a7   : > { %v3150_v6 = vsel %vm3149_vm2, %v4797_v15, %v3146_v23 }
0x13a8   : > { %v3154_v55 = vmul.f32 %v3150_v6, %v6102_v14  ;;  %v4556_v14 = vld [vmem:[%s6365_s12 + $0xf8] sm:$0xff] }
0x13a9   : > { %3542 = vmatpush.bf16.msrb.mxu0 %v4556_v14  ;;  %3526 = vmatpush.bf16.msrb.mxu3 %v4545_v54 }
0x13aa   : > { %v3161_v47 = vmul.f32 %v4615_v32, %v3154_v55 }
0x13ac   : > { %v3168_v33 = vadd.f32 %v4616_v22, %v3161_v47 }
0x13ad   : > { %3543 = vmatpush.bf16.msrb.mxu0 %v4555_v21  ;;  %3527 = vmatpush.bf16.msrb.mxu3 %v4544_v18 }
0x13ae   : > { %v3170_v9 = vpack.c.bf16 %v3168_v33, %v3167_v43 }
0x13b0   : > { %3288 = vmatmul.bf16.gmra.mxu1 %v3170_v9  ;;  %3307 = vmatmul.bf16.gmra.mxu2 %v3170_v9 }
0x13b1   : > { %3544 = vmatpush.bf16.msrb.mxu0 %v4554_v56  ;;  %3528 = vmatpush.bf16.msrb.mxu3 %v4543_v12 }
0x13b5   : > { %3545 = vmatpush.bf16.msrb.mxu0 %v4553_v8  ;;  %3529 = vmatpush.bf16.msrb.mxu3 %v4542_v13 }
0x13b9   : > { %3546 = vmatpush.bf16.msrb.mxu0 %v4552_v19  ;;  %3530 = vmatpush.bf16.msrb.mxu3 %v4541_v37 }
0x13bd   : > { %3547 = vmatpush.bf16.msrb.mxu0 %v4551_v31 }
0x13c1   : > { %3548 = vmatpush.bf16.msrb.mxu0 %v4550_v29 }
0x13c5   : > { %3549 = vmatpush.bf16.msrb.mxu0 %v4549_v4 }
0x13f0   : > { %v3284_v27 = vpop.f32.mrf.mxu1 }
0x13f1   : > { %v3285_v24 = vadd.f32 %v3284_v27, %v6255_v20 }
0x13f3   : > { %v3313_v30 = vmul.f32 %v3285_v24, %v3285_v24 }
0x13f5   : > { %v3321_v32 = vmul.f32 %v3313_v30, %v3285_v24 }
0x13f6   : > { %v3303_v34 = vpop.f32.mrf.mxu2 }
0x13f7   : > { %v3329_v28 = vmul.f32 0.044715, %v3321_v32  ;;  %v3304_v22 = vadd.f32 %v3303_v34, %v6267_v61 }
0x13f8   : > { %v3286_v3 = vpop.f32.mrf.mxu1 }
0x13f9   : > { %v3337_v42 = vadd.f32 %v3329_v28, %v3285_v24  ;;  %v3314_v44 = vmul.f32 %v3304_v22, %v3304_v22  ;;  %v3287_v16 = vadd.f32 %v3286_v3, %v6255_v20 }
0x13fb   : > { %v3345_v45 = vmul.f32 0.7978846, %v3337_v42  ;;  %v3322_v46 = vmul.f32 %v3314_v44, %v3304_v22  ;;  %v3315_v48 = vmul.f32 %v3287_v16, %v3287_v16 }
0x13fd   : > { %v3330_v36 = vmul.f32 0.044715, %v3322_v46  ;;  %v3323_v49 = vmul.f32 %v3315_v48, %v3287_v16  ;;  %4798 = vtanh.f32 %v3345_v45 }
0x13fe   : > { %v3305_v50 = vpop.f32.mrf.mxu2 }
0x13ff   : > { %v3338_v52 = vadd.f32 %v3330_v36, %v3304_v22  ;;  %v3331_v53 = vmul.f32 0.044715, %v3323_v49  ;;  %v3306_v57 = vadd.f32 %v3305_v50, %v6267_v61 }
0x1401   : > { %v3346_v38 = vmul.f32 0.7978846, %v3338_v52  ;;  %v3339_v59 = vadd.f32 %v3331_v53, %v3287_v16  ;;  %v3316_v11 = vmul.f32 %v3306_v57, %v3306_v57 }
0x1403   : > { %v3347_v25 = vmul.f32 0.7978846, %v3339_v59  ;;  %v3324_v15 = vmul.f32 %v3316_v11, %v3306_v57  ;;  %4800 = vtanh.f32 %v3346_v38  ;;  %v4799_v0 = vpop.eup %4798 }
0x1404   : > { %v3361_v41 = vadd.f32 1.0, %v4799_v0 }
0x1405   : > { %4802 = vtanh.f32 %v3347_v25  ;;  %v3332_v63 = vmul.f32 0.044715, %v3324_v15 }
0x1406   : > { %v3369_v23 = vmul.f32 0.5, %v3361_v41 }
0x1407   : > { %v3340_v58 = vadd.f32 %v3332_v63, %v3306_v57 }
0x1408   : > { %v3377_v47 = vmul.f32 %v3369_v23, %v3285_v24 }
0x1409   : > { %v3348_v2 = vmul.f32 0.7978846, %v3340_v58  ;;  %v4801_v35 = vpop.eup %4800 }
0x140a   : > { %v3362_v55 = vadd.f32 1.0, %v4801_v35 }
0x140b   : > { %v4803_v39 = vpop.eup %4802  ;;  %4804 = vtanh.f32 %v3348_v2 }
0x140c   : > { %v3363_v6 = vadd.f32 1.0, %v4803_v39  ;;  %v3370_v9 = vmul.f32 0.5, %v3362_v55 }
0x140e   : > { %v3371_v7 = vmul.f32 0.5, %v3363_v6  ;;  %v3378_v40 = vmul.f32 %v3370_v9, %v3304_v22  ;;  %v4617_v6 = vld [vmem:[%s6366_s13 + $0x1] ss:$0 sm:$0xff] }
0x1410   : > { %v3379_v43 = vmul.f32 %v3371_v7, %v3287_v16 }
0x1411   : > { %v4805_v33 = vpop.eup %4804 }
0x1412   : > { %v3385_v17 = vpack.c.bf16 %v3379_v43, %v3377_v47  ;;  %v3364_v5 = vadd.f32 1.0, %v4805_v33 }
0x1414   : > { %v3372_v14 = vmul.f32 0.5, %v3364_v5  ;;  %3531 = vmatmul.bf16.vlgmr.msrb.gmra.mxu3 %v3385_v17 }
0x1416   : > { %v3380_v21 = vmul.f32 %v3372_v14, %v3306_v57 }
0x1418   : > { %v3386_v54 = vpack.c.bf16 %v3380_v21, %v3378_v40 }
0x141a   : > { %3550 = vmatmul.bf16.vlgmr.msrb.gmra.mxu0 %v3386_v54 }
0x142d   : > { %v3289_v56 = vpop.f32.mrf.mxu1 }
0x142e   : > { %v3290_v18 = vadd.f32 %v3289_v56, %v6255_v20 }
0x1430   : > { %v3317_v8 = vmul.f32 %v3290_v18, %v3290_v18 }
0x1432   : > { %v3325_v12 = vmul.f32 %v3317_v8, %v3290_v18 }
0x1433   : > { %v3308_v19 = vpop.f32.mrf.mxu2 }
0x1434   : > { %v3333_v51 = vmul.f32 0.044715, %v3325_v12  ;;  %v3309_v13 = vadd.f32 %v3308_v19, %v6267_v61 }
0x1435   : > { %v3291_v31 = vpop.f32.mrf.mxu1 }
0x1436   : > { %v3341_v37 = vadd.f32 %v3333_v51, %v3290_v18  ;;  %v3318_v27 = vmul.f32 %v3309_v13, %v3309_v13  ;;  %v3292_v24 = vadd.f32 %v3291_v31, %v6255_v20 }
0x1438   : > { %v3349_v29 = vmul.f32 0.7978846, %v3341_v37  ;;  %v3326_v30 = vmul.f32 %v3318_v27, %v3309_v13  ;;  %v3319_v32 = vmul.f32 %v3292_v24, %v3292_v24 }
0x143a   : > { %v3334_v4 = vmul.f32 0.044715, %v3326_v30  ;;  %v3327_v34 = vmul.f32 %v3319_v32, %v3292_v24  ;;  %4806 = vtanh.f32 %v3349_v29 }
0x143b   : > { %v3310_v28 = vpop.f32.mrf.mxu2 }
0x143c   : > { %v3342_v22 = vadd.f32 %v3334_v4, %v3309_v13  ;;  %v3335_v3 = vmul.f32 0.044715, %v3327_v34  ;;  %v3311_v42 = vadd.f32 %v3310_v28, %v6267_v61 }
0x143e   : > { %v3350_v44 = vmul.f32 0.7978846, %v3342_v22  ;;  %v3343_v16 = vadd.f32 %v3335_v3, %v3292_v24  ;;  %v3320_v45 = vmul.f32 %v3311_v42, %v3311_v42 }
0x1440   : > { %v3351_v46 = vmul.f32 0.7978846, %v3343_v16  ;;  %v3328_v48 = vmul.f32 %v3320_v45, %v3311_v42  ;;  %4808 = vtanh.f32 %v3350_v44  ;;  %v4807_v36 = vpop.eup %4806 }
0x1441   : > { %v3365_v50 = vadd.f32 1.0, %v4807_v36 }
0x1442   : > { %4810 = vtanh.f32 %v3351_v46  ;;  %v3336_v20 = vmul.f32 0.044715, %v3328_v48 }
0x1443   : > { %v3373_v59 = vmul.f32 0.5, %v3365_v50 }
0x1444   : > { %v3344_v49 = vadd.f32 %v3336_v20, %v3311_v42 }
0x1445   : > { %v3381_v61 = vmul.f32 %v3373_v59, %v3290_v18 }
0x1446   : > { %v3352_v52 = vmul.f32 0.7978846, %v3344_v49  ;;  %v4809_v53 = vpop.eup %4808 }
0x1447   : > { %v3366_v25 = vadd.f32 1.0, %v4809_v53 }
0x1448   : > { %v4811_v57 = vpop.eup %4810  ;;  %4812 = vtanh.f32 %v3352_v52 }
0x1449   : > { %v3367_v38 = vadd.f32 1.0, %v4811_v57  ;;  %v3374_v41 = vmul.f32 0.5, %v3366_v25 }
0x144b   : > { %v3375_v11 = vmul.f32 0.5, %v3367_v38  ;;  %v3382_v35 = vmul.f32 %v3374_v41, %v3309_v13 }
0x144d   : > { %v3383_v15 = vmul.f32 %v3375_v11, %v3292_v24  ;;  %v4618_v11 = vld [vmem:[%s6367_s14] ss:$0 sm:$0xff] }
0x144e   : > { %v4813_v0 = vpop.eup %4812 }
0x144f   : > { %v3387_v63 = vpack.c.bf16 %v3383_v15, %v3381_v61  ;;  %v3368_v58 = vadd.f32 1.0, %v4813_v0  ;;  %v4619_v15 = vld [vmem:[%s6368_s15] ss:$0 sm:$0xff] }
0x1451   : > { %3536 = vmatmul.bf16.gmra.mxu3 %v3387_v63  ;;  %v3376_v2 = vmul.f32 0.5, %v3368_v58 }
0x1453   : > { %v3384_v39 = vmul.f32 %v3376_v2, %v3311_v42 }
0x1455   : > { %v3388_v23 = vpack.c.bf16 %v3384_v39, %v3382_v35 }
0x1457   : > { %3555 = vmatmul.bf16.gmra.mxu0 %v3388_v23 }
0x1497   : > { %v3532_v55 = vpop.f32.mrf.mxu3  ;;  %v3551_v7 = vpop.f32.mrf.mxu0 }
0x1498   : > { %v3533_v47 = vadd.f32 %v4617_v6, %v3532_v55 }
0x149a   : > { %v3552_v43 = vadd.f32 %v3551_v7, %v3533_v47 }
0x149c   : > { %v3561_v33 = vadd.f32 %v3552_v43, %v6064_v60 }
0x149e   : > { %3567 = vadd.xlane.f32.xlu1 %v3561_v33 }
0x149f   : > { %v3534_v9 = vpop.f32.mrf.mxu3  ;;  %v3553_v5 = vpop.f32.mrf.mxu0 }
0x14a0   : > { %v3535_v17 = vadd.f32 %v4617_v6, %v3534_v9 }
0x14a2   : > { %v3554_v14 = vadd.f32 %v3553_v5, %v3535_v17 }
0x14a4   : > { %v3562_v40 = vadd.f32 %v3554_v14, %v6069_v1 }
0x14a6   : > { %3569 = vadd.xlane.f32.xlu0 %v3562_v40 }
0x14d4   : > { %v3537_v21 = vpop.f32.mrf.mxu3  ;;  %v3556_v54 = vpop.f32.mrf.mxu0 }
0x14d5   : > { %v3538_v56 = vadd.f32 %v4617_v6, %v3537_v21 }
0x14d7   : > { %v3557_v18 = vadd.f32 %v3556_v54, %v3538_v56 }
0x14d9   : > { %v3563_v8 = vadd.f32 %v3557_v18, %v6074_v62 }
0x14db   : > { %3571 = vadd.xlane.f32.xlu2 %v3563_v8 }
0x14dc   : > { %v3539_v12 = vpop.f32.mrf.mxu3  ;;  %v3558_v51 = vpop.f32.mrf.mxu0 }
0x14dd   : > { %v3540_v19 = vadd.f32 %v4617_v6, %v3539_v12 }
0x14df   : > { %v3559_v13 = vadd.f32 %v3558_v51, %v3540_v19 }
0x14e1   : > { %v3564_v60 = vadd.f32 %v3559_v13, %v6079_v26 }
0x14e3   : > { %3573 = vadd.xlane.f32.xlu1 %v3564_v60 }
0x1511   : > { %v3568_v31 = vpop.xlane.xlu1 %3567 }
0x1512   : > { %v3575_v37 = vmul.f32 %v3568_v31, %v5046_v10 }
0x1514   : > { %v3579_v27 = vsub.f32 %v3561_v33, %v3575_v37 }
0x1516   : > { %v3583_v1 = vmul.f32 %v3579_v27, %v3579_v27 }
0x1518   : > { %3587 = vadd.xlane.f32.xlu0 %v3583_v1 }
0x1519   : > { %v3570_v24 = vpop.xlane.xlu0 %3569 }
0x151a   : > { %v3576_v29 = vmul.f32 %v3570_v24, %v5046_v10 }
0x151c   : > { %v3580_v30 = vsub.f32 %v3562_v40, %v3576_v29 }
0x151e   : > { %v3584_v32 = vmul.f32 %v3580_v30, %v3580_v30 }
0x1520   : > { %3589 = vadd.xlane.f32.xlu2 %v3584_v32 }
0x154e   : > { %v3572_v62 = vpop.xlane.xlu2 %3571 }
0x154f   : > { %v3577_v4 = vmul.f32 %v3572_v62, %v5046_v10 }
0x1551   : > { %v6289_v34 = vsub.f32 %v3563_v8, %v3577_v4 }
0x1553   : > { %v3585_v26 = vmul.f32 %v6289_v34, %v6289_v34 }
0x1555   : > { %3591 = vadd.xlane.f32.xlu1 %v3585_v26 }
0x1556   : > { %v3574_v28 = vpop.xlane.xlu1 %3573 }
0x1557   : > { %v3578_v22 = vmul.f32 %v3574_v28, %v5046_v10 }
0x1559   : > { %v6294_v3 = vsub.f32 %v3564_v60, %v3578_v22 }
0x155b   : > { %v3586_v42 = vmul.f32 %v6294_v3, %v6294_v3 }
0x155d   : > { %3593 = vadd.xlane.f32.xlu0 %v3586_v42 }
0x158b   : > { %v3588_v44 = vpop.xlane.xlu0 %3587 }
0x158c   : > { %v3595_v16 = vmul.f32 %v3588_v44, %v5046_v10 }
0x158e   : > { %v3599_v45 = vadd.f32 1e-05, %v3595_v16 }
0x1590   : > { %4814 = vrsqrt.f32 %v3599_v45  ;;  %vm3609_vm4 = vweird.f32 %v3599_v45 }
0x1593   : > { %v3590_v46 = vpop.xlane.xlu2 %3589 }
0x1594   : > { %v3596_v48 = vmul.f32 %v3590_v46, %v5046_v10 }
0x1596   : > { %v4815_v36 = vpop.eup %4814  ;;  %v3600_v20 = vadd.f32 1e-05, %v3596_v48 }
0x1597   : > { %v3604_v49 = vmul.f32 %v4815_v36, %v3599_v45  ;;  %vm3610_vm3 = vweird.f32 %v4815_v36 }
0x1598   : > { %4816 = vrsqrt.f32 %v3600_v20  ;;  %vm3611_vm5 = vmor %vm3609_vm4, %vm3610_vm3  ;;  %vm3619_vm13 = vweird.f32 %v3600_v20 }
0x1599   : > { %v3605_v50 = vmul.f32 %v4815_v36, %v3604_v49 }
0x159b   : > { %v3606_v52 = vmul.f32 0.5, %v3605_v50 }
0x159d   : > { %v3607_v53 = vsub.f32 1.5, %v3606_v52 }
0x159e   : > { %v4817_v57 = vpop.eup %4816 }
0x159f   : > { %v3608_v38 = vmul.f32 %v4815_v36, %v3607_v53  ;;  %v3614_v59 = vmul.f32 %v4817_v57, %v3600_v20  ;;  %vm3620_vm6 = vweird.f32 %v4817_v57 }
0x15a0   : > { %vm3621_vm7 = vmor %vm3619_vm13, %vm3620_vm6 }
0x15a1   : > { %v3612_v25 = vsel %vm3611_vm5, %v4815_v36, %v3608_v38  ;;  %v3615_v61 = vmul.f32 %v4817_v57, %v3614_v59 }
0x15a2   : > { %v3643_v0 = vmul.f32 %v3612_v25, %v3579_v27 }
0x15a3   : > { %v3616_v63 = vmul.f32 0.5, %v3615_v61 }
0x15a4   : > { %v3650_v58 = vmul.f32 %v4618_v11, %v3643_v0 }
0x15a5   : > { %v3617_v41 = vsub.f32 1.5, %v3616_v63 }
0x15a6   : > { %v3657_v2 = vadd.f32 %v4619_v15, %v3650_v58 }
0x15a7   : > { %v3618_v35 = vmul.f32 %v4817_v57, %v3617_v41 }
0x15a8   : > { %3661 = vst [vmem:[%s6309_s28] sm:$0xff] %v3657_v2 }
0x15a9   : > { %v3622_v39 = vsel %vm3621_vm7, %v4817_v57, %v3618_v35 }
0x15aa   : > { %v3644_v23 = vmul.f32 %v3622_v39, %v3580_v30 }
0x15ac   : > { %v3651_v6 = vmul.f32 %v4618_v11, %v3644_v23 }
0x15ae   : > { %v3658_v55 = vadd.f32 %v4619_v15, %v3651_v6 }
0x15b0   : > { %3662 = vst [vmem:[%s6309_s28 + $0x8] sm:$0xff] %v3658_v55 }
0x15c8   : > { %v3592_v7 = vpop.xlane.xlu1 %3591 }
0x15c9   : > { %v3597_v47 = vmul.f32 %v3592_v7, %v5046_v10 }
0x15cb   : > { %v3601_v43 = vadd.f32 1e-05, %v3597_v47 }
0x15cd   : > { %4818 = vrsqrt.f32 %v3601_v43  ;;  %vm3629_vm9 = vweird.f32 %v3601_v43 }
0x15d0   : > { %v3594_v33 = vpop.xlane.xlu0 %3593 }
0x15d1   : > { %v3598_v9 = vmul.f32 %v3594_v33, %v5046_v10 }
0x15d3   : > { %v4819_v17 = vpop.eup %4818  ;;  %v3602_v5 = vadd.f32 1e-05, %v3598_v9 }
0x15d4   : > { %v3624_v14 = vmul.f32 %v4819_v17, %v3601_v43  ;;  %vm3630_vm8 = vweird.f32 %v4819_v17 }
0x15d5   : > { %4820 = vrsqrt.f32 %v3602_v5  ;;  %vm3631_vm10 = vmor %vm3629_vm9, %vm3630_vm8  ;;  %vm3639_vm12 = vweird.f32 %v3602_v5 }
0x15d6   : > { %v3625_v40 = vmul.f32 %v4819_v17, %v3624_v14 }
0x15d8   : > { %v3626_v21 = vmul.f32 0.5, %v3625_v40 }
0x15da   : > { %v3627_v54 = vsub.f32 1.5, %v3626_v21 }
0x15db   : > { %v4821_v56 = vpop.eup %4820 }
0x15dc   : > { %v3628_v18 = vmul.f32 %v4819_v17, %v3627_v54  ;;  %v3634_v8 = vmul.f32 %v4821_v56, %v3602_v5  ;;  %vm3640_vm11 = vweird.f32 %v4821_v56 }
0x15dd   : > { %vm3641_vm14 = vmor %vm3639_vm12, %vm3640_vm11 }
0x15de   : > { %v3632_v12 = vsel %vm3631_vm10, %v4819_v17, %v3628_v18  ;;  %v3635_v19 = vmul.f32 %v4821_v56, %v3634_v8 }
0x15df   : > { %v3645_v10 = vmul.f32 %v3632_v12, %v6289_v34 }
0x15e0   : > { %v3636_v51 = vmul.f32 0.5, %v3635_v19 }
0x15e1   : > { %v3652_v13 = vmul.f32 %v4618_v11, %v3645_v10 }
0x15e2   : > { %v3637_v60 = vsub.f32 1.5, %v3636_v51 }
0x15e3   : > { %v3659_v31 = vadd.f32 %v4619_v15, %v3652_v13 }
0x15e4   : > { %v3638_v37 = vmul.f32 %v4821_v56, %v3637_v60 }
0x15e5   : > { %3663 = vst [vmem:[%s6309_s28 + $0x10] sm:$0xff] %v3659_v31 }
0x15e6   : > { %v3642_v27 = vsel %vm3641_vm14, %v4821_v56, %v3638_v37 }
0x15e7   : > { %v3646_v1 = vmul.f32 %v3642_v27, %v6294_v3 }
0x15e9   : > { %v3653_v24 = vmul.f32 %v4618_v11, %v3646_v1 }
0x15eb   : > { %v3660_v29 = vadd.f32 %v4619_v15, %v3653_v24 }
0x15ed   : > { %3664 = vst [vmem:[%s6309_s28 + $0x18] sm:$0xff] %v3660_v29 }
0x15ee   : > { %4854 = shalt.err (!%p4851_p3)
}
0x15ef   : > { %s4895_s18 = smov 128   ;;  %s4896_s28 = smov 8  }
0x15f0   : > { %4560 = dma.vmem_to_hbm [thread:$0]  (%p5020_p5), %s3679_s23, 512, %s3681_s30, %s3666_s25, %s4895_s18, %s4895_s18, %s4896_s28  }
0x15f1 PF: > { %s6396_s17 = sld [smem:[#allocation7_spill]] }
0x15f2   : > { %s6397_s29 = sld [smem:[#allocation5_spill]] }
0x15f7   : > { %p4566_p4 = scmp.ge.s32.totalorder %s6396_s17, 2 }
0x15f8   : > { %s3695_s20 = sand.u32 1, %s6397_s29  }
0x15f9   : > { %p4563_p7 = pnand %p4566_p4, %p5024_p6  ;;  %s3696_s27 = scalar_lea.sflag [#allocation3], %s3695_s20 }
0x15fb   : > { %p4564_p8 = pneg %p4563_p7 }
0x15fd   : > { %4872 = dma.done.wait (%p4564_p8), %s3696_s27, 512  }
0x15fe   : > { %4874 = vsyncadd (%p4564_p8), %s3696_s27, 4294966784  ;;  %s6399_s24 = sld [smem:[#allocation8_spill]]  ;;  %s6402_s21 = smov %s4881_s22 }
0x15ff   : > { %s6400_s1 = sld [smem:[#allocation6_spill]] }
0x1600   : > { %s6401_s23 = sld [smem:[#allocation9_spill]] }
0x1604   : > { %p26_p9 = scmp.ge.s32.totalorder %s6399_s24, 5  }
0x1605   : > { %s6403_s22 = smov %s6400_s1 }
0x1606   :  { %28 = sbr.rel (!%p26_p9) target bundleno = 7 (0x7), region = 134 }
0x160b   :  { %3702 = vsyncpa [#allocation3], 1 }
0x160c   :  { %3704 = vsyncpa [#allocation3 + $0x1], 1 }

</bundles_post_ra>
